<compile_context>
chip_gen: v6e
topology: v6e:2x2x1
jax: 0.10.0
libtpu: 0.0.40
codegen_flags: <defaults>
</compile_context>

<pallas_src>
import functools
import math

import jax
import jax.numpy as jnp
from jax.experimental import pallas as pl
from jax.experimental.pallas import tpu as pltpu

# ----------------------------- model config ---------------------------------
VOCAB = 100
MAX_POS = 512
HIDDEN = 32          # args.hidden_size
HEADS = 4            # encoder heads
FF = 64              # encoder feed-forward size
LAYERS = 2           # encoder.layers_num
LABELS = 3           # args.labels_num
CLA_HIDDEN = 128     # Classifier.cla_hidden_size (fixed in the module)
CLA_HEADS = 2        # Classifier.cla_heads_num   (fixed in the module)
SPEED = 0.5          # args.speed (entropy threshold)
POOLING = "first"    # args.pooling -> else-branch: hidden[:, 0, :]
LN_EPS = 1e-6
LOGIT_PAD = 128      # lane-dense padded width for the classifier logits

# ---- packed-buffer layout constants -----------------------------------------
TBL_ROWS = VOCAB + MAX_POS + 3            # word | pos | seg rows of the fused table
SEG_OFF = VOCAB + MAX_POS

# enc_wA per layer: [ e_wqkv(96) | e_wo(32) | c_w0(128) | e_w1(64) ]  -> (32, 320)
EA_QKV0, EA_QKV1 = 0, 3 * HIDDEN                       # 0 .. 96
EA_WO0, EA_WO1 = EA_QKV1, EA_QKV1 + HIDDEN             # 96 .. 128
EA_CW0_0, EA_CW0_1 = EA_WO1, EA_WO1 + CLA_HIDDEN       # 128 .. 256 (aligned)
EA_W1_0, EA_W1_1 = EA_CW0_1, EA_CW0_1 + FF             # 256 .. 320 (aligned start)
ENC_WA_W = EA_W1_1

# cla_w per layer: [ c_wqkv(384) | c_wo(128) | c_w1(128) | c_w2pad(128) ] -> (128, 768)
CA_QKV0, CA_QKV1 = 0, 3 * CLA_HIDDEN                   # 0 .. 384
CA_WO0, CA_WO1 = CA_QKV1, CA_QKV1 + CLA_HIDDEN         # 384 .. 512
CA_W1_0, CA_W1_1 = CA_WO1, CA_WO1 + CLA_HIDDEN         # 512 .. 640
CA_W2_0, CA_W2_1 = CA_W1_1, CA_W1_1 + LOGIT_PAD        # 640 .. 768
CLA_W_W = CA_W2_1

# vecs: one (NV, 384) f32 slab holding every bias / LayerNorm vector (left aligned).
VEC_W = 3 * CLA_HIDDEN                                 # 384 (widest vector: c_bqkv)
ROW_ELN_G, ROW_ELN_B = 0, 1
ENC_VROW0, ENC_VROWS = 2, 8          # per enc layer: bqkv, bo, ln1g, ln1b, b1, b2, ln2g, ln2b
CLA_VROW0 = ENC_VROW0 + LAYERS * ENC_VROWS
CLA_VROWS = 5                        # per cla layer: b0, bqkv, bo, b1, b2pad
NUM_VROWS = CLA_VROW0 + LAYERS * CLA_VROWS


# --------------------------- in-kernel math helpers ---------------------------
def _erf(x):
    # Abramowitz & Stegun 7.1.26 rational approximation, |err| < 1.5e-7.
    a1, a2, a3, a4, a5 = (0.254829592, -0.284496736, 1.421413741,
                          -1.453152027, 1.061405429)
    p = 0.3275911
    ax = jnp.abs(x)
    t = 1.0 / (1.0 + p * ax)
    poly = ((((a5 * t + a4) * t + a3) * t + a2) * t + a1) * t
    y = 1.0 - poly * jnp.exp(-ax * ax)
    return jnp.where(x >= 0, y, -y)


def _gelu(x):
    # exact-erf GELU (matches UER/torch), not the tanh approximation
    return 0.5 * x * (1.0 + _erf(x * (1.0 / math.sqrt(2.0))))


def _layernorm(x, g, b):
    mean = jnp.mean(x, axis=-1, keepdims=True)
    var = jnp.mean((x - mean) ** 2, axis=-1, keepdims=True)
    return (x - mean) * jax.lax.rsqrt(var + LN_EPS) * g + b


def _mha(x2d, neg_mask, wqkv, bqkv, wo, bo, *, B, S, heads, dim):
    """Multi-headed self-attention on a flattened (B*S, dim) activation.

    wqkv: (dim, 3*dim) fused projection, bqkv: (1, 3*dim),
    wo: (dim, dim), bo: (1, dim), neg_mask: (B, S, S) additive mask.

    Heads are unrolled at trace time (4 / 2 heads, S=8).  A head-batched einsum
    ('bqhd,bkhd->bhqk') was considered per the perf review but needs a 4-D
    mid-axis transpose / multi-batch-dim dot_general whose Mosaic lowering is
    uncertain, so the known-good per-head form is kept.
    """
    dh = dim // heads
    scale = 1.0 / math.sqrt(dh)
    qkv = jnp.dot(x2d, wqkv, preferred_element_type=jnp.float32) + bqkv  # (B*S, 3*dim)
    acc = None
    for h in range(heads):                      # small, fully unrolled at trace time
        q = qkv[:, h * dh:(h + 1) * dh].reshape(B, S, dh)
        k = qkv[:, dim + h * dh:dim + (h + 1) * dh].reshape(B, S, dh)
        v = qkv[:, 2 * dim + h * dh:2 * dim + (h + 1) * dh].reshape(B, S, dh)
        s = jnp.einsum("bqd,bkd->bqk", q, k,
                       preferred_element_type=jnp.float32) * scale       # (B, S, S)
        s = s + neg_mask
        s = s - jnp.max(s, axis=-1, keepdims=True)
        p = jnp.exp(s)
        # attention softmax normalization on the EUP (approx reciprocal is safe
        # here; the entropy-threshold softmax below stays exact).
        p = p * pl.reciprocal(jnp.sum(p, axis=-1, keepdims=True), approx=True)
        ctx = jnp.einsum("bqk,bkd->bqd", p, v,
                         preferred_element_type=jnp.float32)              # (B, S, dh)
        # per-head partial of the output projection (== concat(ctx_h) @ wo)
        part = jnp.dot(ctx.reshape(B * S, dh), wo[h * dh:(h + 1) * dh, :],
                       preferred_element_type=jnp.float32)
        acc = part if acc is None else acc + part
    return acc + bo                                                       # (B*S, dim)


# --------------------------- the fused whole-model kernel ---------------------
def _fastbert_kernel(rows_ref, mask_ref, tables_ref, enc_wA_ref, enc_w2_ref,
                     cla_w_ref, vecs_ref, out_ref, *, B, S):
    N = B * S
    tbl = tables_ref[...]                       # (TBL_ROWS, HIDDEN)
    vv = vecs_ref[...]                          # (NUM_VROWS, VEC_W)

    def vec(row, width):                        # (1, width) bias / LN vector
        return vv[row:row + 1, :width]

    # ---- fused embedding lookup: (word + pos + seg) as ONE one-hot-sum matmul ----
    rows = rows_ref[...]                        # (N, 3) int32 table-row ids
    col = jax.lax.broadcasted_iota(jnp.int32, (N, TBL_ROWS), 1)
    onehot3 = ((col == rows[:, 0:1]).astype(jnp.float32)
               + (col == rows[:, 1:2]).astype(jnp.float32)
               + (col == rows[:, 2:3]).astype(jnp.float32))               # (N, 615)
    emb = jnp.dot(onehot3, tbl, preferred_element_type=jnp.float32)       # (N, HIDDEN)
    x = _layernorm(emb, vec(ROW_ELN_G, HIDDEN), vec(ROW_ELN_B, HIDDEN))

    # Additive attention key-mask, built once and reused by every layer/classifier.
    msk = mask_ref[...]                                                    # (B, S) int32
    neg = jnp.where(msk > 0, 0.0, -10000.0)                                # (B, S)
    neg_mask = jnp.broadcast_to(neg[:, None, :], (B, S, S))                # (B, S, S)

    final = None      # per-sample selected logits (FastBERT early exit)
    decided = None    # (B, 1) bool: sample already exited at an earlier layer

    for i in range(LAYERS):
        wa = enc_wA_ref[i]          # (HIDDEN, 320)   [e_wqkv | e_wo | c_w0 | e_w1]
        w2 = enc_w2_ref[i]          # (FF, HIDDEN)
        cw = cla_w_ref[i]           # (CLA_HIDDEN, 768) [c_wqkv | c_wo | c_w1 | c_w2p]
        eb = ENC_VROW0 + i * ENC_VROWS
        cb = CLA_VROW0 + i * CLA_VROWS

        # ----- transformer layer i -----
        att = _mha(x, neg_mask,
                   wa[:, EA_QKV0:EA_QKV1], vec(eb + 0, 3 * HIDDEN),
                   wa[:, EA_WO0:EA_WO1], vec(eb + 1, HIDDEN),
                   B=B, S=S, heads=HEADS, dim=HIDDEN)
        inter = _layernorm(att + x, vec(eb + 2, HIDDEN), vec(eb + 3, HIDDEN))
        ff = _gelu(jnp.dot(inter, wa[:, EA_W1_0:EA_W1_1],
                           preferred_element_type=jnp.float32) + vec(eb + 4, FF))
        ff = jnp.dot(ff, w2, preferred_element_type=jnp.float32) + vec(eb + 5, HIDDEN)
        x = _layernorm(ff + inter, vec(eb + 6, HIDDEN), vec(eb + 7, HIDDEN))   # (N, H)

        # ----- per-layer classifier i -----
        h = jnp.tanh(jnp.dot(x, wa[:, EA_CW0_0:EA_CW0_1],
                             preferred_element_type=jnp.float32) + vec(cb + 0, CLA_HIDDEN))
        h = _mha(h, neg_mask,
                 cw[:, CA_QKV0:CA_QKV1], vec(cb + 1, 3 * CLA_HIDDEN),
                 cw[:, CA_WO0:CA_WO1], vec(cb + 2, CLA_HIDDEN),
                 B=B, S=S, heads=CLA_HEADS, dim=CLA_HIDDEN)
        pooled = h.reshape(B, S, CLA_HIDDEN)[:, 0, :]                      # pooling == 'first'
        o1 = jnp.tanh(jnp.dot(pooled, cw[:, CA_W1_0:CA_W1_1],
                              preferred_element_type=jnp.float32) + vec(cb + 3, CLA_HIDDEN))
        logits = jnp.dot(o1, cw[:, CA_W2_0:CA_W2_1],
                         preferred_element_type=jnp.float32) + vec(cb + 4, LOGIT_PAD)

        # ----- FastBERT early-exit bookkeeping (in-kernel) -----
        # A sample keeps the logits of the FIRST layer whose normalized entropy
        # is <= SPEED; otherwise the last layer's logits.
        if final is None:
            final = logits
        else:
            final = jnp.where(decided, final, logits)

        if i < LAYERS - 1:
            lg = logits[:, :LABELS]                                        # exact softmax
            z = lg - jnp.max(lg, axis=-1, keepdims=True)
            logp = z - jnp.log(jnp.sum(jnp.exp(z), axis=-1, keepdims=True))
            p = jnp.exp(logp)
            norm_ent = -jnp.sum(p * logp, axis=-1, keepdims=True) * (1.0 / math.log(LABELS))
            easy = norm_ent <= SPEED                                       # (B, 1) bool
            decided = easy if decided is None else (decided | easy)

    out_ref[...] = final                                                   # (B, LOGIT_PAD)


# ------------------------------ model forward ---------------------------------
def fastbert_forward(packed, src, label, mask):
    """FastBertClassifier.forward, eval mode, fast=True semantics. Returns (None, logits)."""
    del label  # unused in the fast inference branch
    B, S = src.shape
    N = B * S

    # Only trivial int32 row-index arithmetic stays outside the kernel: the actual
    # table lookups, LayerNorm, both transformer layers, both classifiers and the
    # entropy early-exit selection all run inside the single fused kernel.
    pos_rows = VOCAB + jnp.broadcast_to(jnp.arange(S, dtype=jnp.int32)[None, :], (B, S))
    emb_rows = jnp.stack([src.astype(jnp.int32), pos_rows,
                          SEG_OFF + mask.astype(jnp.int32)], axis=-1).reshape(N, 3)

    inputs = [
        emb_rows,                     # (N, 3)  int32 : word/pos/seg rows of fused table
        mask.astype(jnp.int32),       # (B, S)  int32 : attention key mask
        packed["tables"],             # (615, 32)     : word|pos|seg embedding table
        packed["enc_wA"],             # (L, 32, 320)  : e_wqkv | e_wo | c_w0 | e_w1
        packed["enc_w2"],             # (L, 64, 32)   : e_w2
        packed["cla_w"],              # (L, 128, 768) : c_wqkv | c_wo | c_w1 | c_w2pad
        packed["vecs"],               # (28, 384)     : every bias / LayerNorm vector
    ]

    out = pl.pallas_call(
        functools.partial(_fastbert_kernel, B=B, S=S),
        out_shape=jax.ShapeDtypeStruct((B, LOGIT_PAD), jnp.float32),
        in_specs=[pl.BlockSpec(memory_space=pltpu.MemorySpace.VMEM)] * len(inputs),
        out_specs=pl.BlockSpec(memory_space=pltpu.MemorySpace.VMEM),
        compiler_params=pltpu.CompilerParams(vmem_limit_bytes=32 * 1024 * 1024),
        cost_estimate=pl.CostEstimate(flops=4_000_000, transcendentals=20_000,
                                      bytes_accessed=1_200_000),
    )(*inputs)

    # Early-exit selection already happened in-kernel; pad lanes are exact zeros.
    # TODO(synk): the original dynamic batch shrink (nonzero/index_select early exit)
    # has no static-shape Pallas equivalent; replaced by full per-layer compute plus
    # an in-kernel per-sample select (identical returned logits).
    # TODO(synk): on v7x a batch-parallel grid could engage the 2nd TensorCore, but
    # with B=2 and an overhead/DMA-bound kernel the single-program path is kept.
    logits = out[:, :LABELS]                                               # (B, LABELS)
    return None, logits


# ------------------------------ parameter init --------------------------------
def _dense(key, fan_in, fan_out):
    w = jax.random.normal(key, (fan_in, fan_out), jnp.float32) * 0.02
    b = jnp.zeros((fan_out,), jnp.float32)
    return w, b


def _attn_params(key, dim):
    ks = jax.random.split(key, 4)
    wq, bq = _dense(ks[0], dim, dim)
    wk, bk = _dense(ks[1], dim, dim)
    wv, bv = _dense(ks[2], dim, dim)
    wo, bo = _dense(ks[3], dim, dim)
    return dict(wq=wq, bq=bq, wk=wk, bk=bk, wv=wv, bv=bv, wo=wo, bo=bo)


def init_params(key):
    keys = jax.random.split(key, 3 + 2 * LAYERS)
    emb_keys = jax.random.split(keys[0], 3)
    params = {
        "embedding": {
            "word_emb": jax.random.normal(emb_keys[0], (VOCAB, HIDDEN), jnp.float32) * 0.02,
            "pos_emb": jax.random.normal(emb_keys[1], (MAX_POS, HIDDEN), jnp.float32) * 0.02,
            "seg_emb": jax.random.normal(emb_keys[2], (3, HIDDEN), jnp.float32) * 0.02,
            "ln_g": jnp.ones((HIDDEN,), jnp.float32),
            "ln_b": jnp.zeros((HIDDEN,), jnp.float32),
        },
        "layers": [],
        "classifiers": [],
    }
    for i in range(LAYERS):
        lk = jax.random.split(keys[1 + i], 3)
        w1, b1 = _dense(lk[1], HIDDEN, FF)
        w2, b2 = _dense(lk[2], FF, HIDDEN)
        params["layers"].append({
            "attn": _attn_params(lk[0], HIDDEN),
            "ln1_g": jnp.ones((HIDDEN,), jnp.float32),
            "ln1_b": jnp.zeros((HIDDEN,), jnp.float32),
            "w1": w1, "b1": b1, "w2": w2, "b2": b2,
            "ln2_g": jnp.ones((HIDDEN,), jnp.float32),
            "ln2_b": jnp.zeros((HIDDEN,), jnp.float32),
        })
    for i in range(LAYERS):
        ck = jax.random.split(keys[1 + LAYERS + i], 4)
        w0, b0 = _dense(ck[0], HIDDEN, CLA_HIDDEN)
        w1, b1 = _dense(ck[2], CLA_HIDDEN, CLA_HIDDEN)
        w2, b2 = _dense(ck[3], CLA_HIDDEN, LABELS)
        params["classifiers"].append({
            "w0": w0, "b0": b0,
            "attn": _attn_params(ck[1], CLA_HIDDEN),
            "w1": w1, "b1": b1, "w2": w2, "b2": b2,
        })
    return params


def pack_params(params):
    """Coalesce all weights into a handful of large, statically-sliceable buffers:
       one fused embedding table, 3 weight slabs, one bias/LN vector slab."""
    L, C = params["layers"], params["classifiers"]

    def fused_qkv_w(attn):
        return jnp.concatenate([attn["wq"], attn["wk"], attn["wv"]], axis=1)   # (D, 3D)

    def fused_qkv_b(attn):
        return jnp.concatenate([attn["bq"], attn["bk"], attn["bv"]], axis=0)   # (3D,)

    # fused embedding table: rows [0,100)=word, [100,612)=pos, [612,615)=seg
    tables = jnp.concatenate([params["embedding"]["word_emb"],
                              params["embedding"]["pos_emb"],
                              params["embedding"]["seg_emb"]], axis=0)

    enc_wA = jnp.stack([jnp.concatenate([fused_qkv_w(L[i]["attn"]),
                                         L[i]["attn"]["wo"],
                                         C[i]["w0"],
                                         L[i]["w1"]], axis=1)
                        for i in range(LAYERS)], axis=0)                        # (L, 32, 320)
    enc_w2 = jnp.stack([L[i]["w2"] for i in range(LAYERS)], axis=0)             # (L, 64, 32)

    # classifier slab; the 3-wide head is zero-padded to a 128-lane-aligned slot
    cla_w = jnp.stack([jnp.concatenate([fused_qkv_w(C[i]["attn"]),
                                        C[i]["attn"]["wo"],
                                        C[i]["w1"],
                                        jnp.pad(C[i]["w2"],
                                                ((0, 0), (0, LOGIT_PAD - LABELS)))],
                                       axis=1)
                       for i in range(LAYERS)], axis=0)                         # (L, 128, 768)

    def row(v):
        return jnp.pad(v, (0, VEC_W - v.shape[0]))

    rows = [row(params["embedding"]["ln_g"]), row(params["embedding"]["ln_b"])]
    for i in range(LAYERS):
        rows += [row(fused_qkv_b(L[i]["attn"])), row(L[i]["attn"]["bo"]),
                 row(L[i]["ln1_g"]), row(L[i]["ln1_b"]),
                 row(L[i]["b1"]), row(L[i]["b2"]),
                 row(L[i]["ln2_g"]), row(L[i]["ln2_b"])]
    for i in range(LAYERS):
        rows += [row(C[i]["b0"]), row(fused_qkv_b(C[i]["attn"])), row(C[i]["attn"]["bo"]),
                 row(C[i]["b1"]), row(jnp.pad(C[i]["b2"], (0, LOGIT_PAD - LABELS)))]
    vecs = jnp.stack(rows, axis=0)                                              # (28, 384)
    assert vecs.shape == (NUM_VROWS, VEC_W)

    return {"tables": tables, "enc_wA": enc_wA, "enc_w2": enc_w2,
            "cla_w": cla_w, "vecs": vecs}


# ----------------------------------- main --------------------------------------
if __name__ == "__main__":
    B, S = 2, 8
    key = jax.random.PRNGKey(0)
    k_src, _ = jax.random.split(key)
    src = jax.random.randint(k_src, (B, S), 1, VOCAB).astype(jnp.int32)
    # second sample has 3 padding positions
    mask = jnp.array([[1] * S, [1] * (S - 3) + [0] * 3], dtype=jnp.int32)
    label = jnp.zeros((B,), jnp.int32)

    params = init_params(jax.random.PRNGKey(42))
    packed = pack_params(params)

    fwd = jax.jit(functools.partial(fastbert_forward, packed))
    loss, logits = fwd(src, label, mask)
    logits = jax.block_until_ready(logits)

    assert loss is None
    assert logits.shape == (B, LABELS)
    assert logits.dtype == jnp.float32
    assert bool(jnp.all(jnp.isfinite(logits)))
    print("KERNEL_OK")
</pallas_src>

<mosaic_0001>
module attributes {stable_mosaic.version = 11 : i64} {
  func.func @_fastbert_kernel(%arg0: memref<16x3xi32, #tpu.memory_space<vmem>>, %arg1: memref<2x8xi32, #tpu.memory_space<vmem>>, %arg2: memref<615x32xf32, #tpu.memory_space<vmem>>, %arg3: memref<2x32x320xf32, #tpu.memory_space<vmem>>, %arg4: memref<2x64x32xf32, #tpu.memory_space<vmem>>, %arg5: memref<2x128x768xf32, #tpu.memory_space<vmem>>, %arg6: memref<28x384xf32, #tpu.memory_space<vmem>>, %arg7: memref<2x128xf32, #tpu.memory_space<vmem>>) attributes {dimension_semantics = [], scalar_prefetch = 0 : i64, scratch_operands = 0 : i64, tpu.core_type = #tpu.core_type<tc>} {
    %c0 = arith.constant 0 : index
    %c0_0 = arith.constant 0 : index
    %0 = vector.load %arg2[%c0, %c0_0] : memref<615x32xf32, #tpu.memory_space<vmem>>, vector<615x32xf32>
    %c0_1 = arith.constant 0 : index
    %c0_2 = arith.constant 0 : index
    %1 = vector.load %arg6[%c0_1, %c0_2] : memref<28x384xf32, #tpu.memory_space<vmem>>, vector<28x384xf32>
    %c0_3 = arith.constant 0 : index
    %c0_4 = arith.constant 0 : index
    %2 = vector.load %arg0[%c0_3, %c0_4] : memref<16x3xi32, #tpu.memory_space<vmem>>, vector<16x3xi32>
    %3 = tpu.iota {dimensions = array<i32: 1>} : vector<16x615xi32>
    %4 = vector.extract_strided_slice %2 {offsets = [0, 0], sizes = [16, 1], strides = [1, 1]} : vector<16x3xi32> to vector<16x1xi32>
    %5 = vector.broadcast %4 : vector<16x1xi32> to vector<16x615xi32>
    %6 = arith.cmpi eq, %3, %5 : vector<16x615xi32>
    %7 = arith.extui %6 : vector<16x615xi1> to vector<16x615xi32>
    %8 = arith.sitofp %7 : vector<16x615xi32> to vector<16x615xf32>
    %9 = vector.extract_strided_slice %2 {offsets = [0, 1], sizes = [16, 1], strides = [1, 1]} : vector<16x3xi32> to vector<16x1xi32>
    %10 = vector.broadcast %9 : vector<16x1xi32> to vector<16x615xi32>
    %11 = arith.cmpi eq, %3, %10 : vector<16x615xi32>
    %12 = arith.extui %11 : vector<16x615xi1> to vector<16x615xi32>
    %13 = arith.sitofp %12 : vector<16x615xi32> to vector<16x615xf32>
    %14 = arith.addf %8, %13 : vector<16x615xf32>
    %15 = vector.extract_strided_slice %2 {offsets = [0, 2], sizes = [16, 1], strides = [1, 1]} : vector<16x3xi32> to vector<16x1xi32>
    %16 = vector.broadcast %15 : vector<16x1xi32> to vector<16x615xi32>
    %17 = arith.cmpi eq, %3, %16 : vector<16x615xi32>
    %18 = arith.extui %17 : vector<16x615xi1> to vector<16x615xi32>
    %19 = arith.sitofp %18 : vector<16x615xi32> to vector<16x615xf32>
    %20 = arith.addf %14, %19 : vector<16x615xf32>
    %cst = arith.constant dense<0.000000e+00> : vector<16x32xf32>
    %21 = tpu.matmul %20, %0, %cst {dimension_numbers = #tpu.dot_dimension_numbers<[1], [0], [0], [1], [0, 0, 1, 1], [], []>} : vector<16x615xf32>, vector<615x32xf32>, vector<16x32xf32> -> vector<16x32xf32>
    %22 = vector.extract_strided_slice %1 {offsets = [0, 0], sizes = [1, 32], strides = [1, 1]} : vector<28x384xf32> to vector<1x32xf32>
    %23 = vector.extract_strided_slice %1 {offsets = [1, 0], sizes = [1, 32], strides = [1, 1]} : vector<28x384xf32> to vector<1x32xf32>
    %cst_5 = arith.constant dense<0.000000e+00> : vector<16xf32>
    %24 = vector.multi_reduction <add>, %21, %cst_5 [1] : vector<16x32xf32> to vector<16xf32>
    %25 = vector.shape_cast %24 : vector<16xf32> to vector<16x1xf32>
    %cst_6 = arith.constant 3.200000e+01 : f32
    %26 = vector.broadcast %cst_6 : f32 to vector<16x1xf32>
    %27 = arith.divf %25, %26 : vector<16x1xf32>
    %28 = vector.broadcast %27 : vector<16x1xf32> to vector<16x32xf32>
    %29 = arith.subf %21, %28 : vector<16x32xf32>
    %30 = arith.mulf %29, %29 : vector<16x32xf32>
    %cst_7 = arith.constant dense<0.000000e+00> : vector<16xf32>
    %31 = vector.multi_reduction <add>, %30, %cst_7 [1] : vector<16x32xf32> to vector<16xf32>
    %32 = vector.shape_cast %31 : vector<16xf32> to vector<16x1xf32>
    %cst_8 = arith.constant 3.200000e+01 : f32
    %33 = vector.broadcast %cst_8 : f32 to vector<16x1xf32>
    %34 = arith.divf %32, %33 : vector<16x1xf32>
    %35 = vector.broadcast %27 : vector<16x1xf32> to vector<16x32xf32>
    %36 = arith.subf %21, %35 : vector<16x32xf32>
    %cst_9 = arith.constant 9.99999997E-7 : f32
    %37 = vector.broadcast %cst_9 : f32 to vector<16x1xf32>
    %38 = arith.addf %34, %37 : vector<16x1xf32>
    %39 = math.rsqrt %38 : vector<16x1xf32>
    %40 = vector.broadcast %39 : vector<16x1xf32> to vector<16x32xf32>
    %41 = arith.mulf %36, %40 : vector<16x32xf32>
    %42 = vector.broadcast %22 : vector<1x32xf32> to vector<16x32xf32>
    %43 = arith.mulf %41, %42 : vector<16x32xf32>
    %44 = vector.broadcast %23 : vector<1x32xf32> to vector<16x32xf32>
    %45 = arith.addf %43, %44 : vector<16x32xf32>
    %c0_10 = arith.constant 0 : index
    %c0_11 = arith.constant 0 : index
    %46 = vector.load %arg1[%c0_10, %c0_11] : memref<2x8xi32, #tpu.memory_space<vmem>>, vector<2x8xi32>
    %c0_i32 = arith.constant 0 : i32
    %47 = vector.broadcast %c0_i32 : i32 to vector<2x8xi32>
    %48 = arith.cmpi sgt, %46, %47 : vector<2x8xi32>
    %cst_12 = arith.constant 0.000000e+00 : f32
    %cst_13 = arith.constant -1.000000e+04 : f32
    %49 = vector.broadcast %cst_12 : f32 to vector<2x8xf32>
    %50 = vector.broadcast %cst_13 : f32 to vector<2x8xf32>
    %51 = arith.select %48, %49, %50 : vector<2x8xi1>, vector<2x8xf32>
    %52 = vector.shape_cast %51 : vector<2x8xf32> to vector<2x1x8xf32>
    %53 = vector.shape_cast %52 : vector<2x1x8xf32> to vector<2x1x8xf32>
    %54 = vector.broadcast %53 : vector<2x1x8xf32> to vector<2x8x8xf32>
    %c0_14 = arith.constant 0 : index
    %c0_15 = arith.constant 0 : index
    %c0_16 = arith.constant 0 : index
    %55 = vector.load %arg3[%c0_14, %c0_15, %c0_16] : memref<2x32x320xf32, #tpu.memory_space<vmem>>, vector<1x32x320xf32>
    %56 = vector.shape_cast %55 : vector<1x32x320xf32> to vector<32x320xf32>
    %c0_17 = arith.constant 0 : index
    %c0_18 = arith.constant 0 : index
    %c0_19 = arith.constant 0 : index
    %57 = vector.load %arg4[%c0_17, %c0_18, %c0_19] : memref<2x64x32xf32, #tpu.memory_space<vmem>>, vector<1x64x32xf32>
    %58 = vector.shape_cast %57 : vector<1x64x32xf32> to vector<64x32xf32>
    %c0_20 = arith.constant 0 : index
    %c0_21 = arith.constant 0 : index
    %c0_22 = arith.constant 0 : index
    %59 = vector.load %arg5[%c0_20, %c0_21, %c0_22] : memref<2x128x768xf32, #tpu.memory_space<vmem>>, vector<1x128x768xf32>
    %60 = vector.shape_cast %59 : vector<1x128x768xf32> to vector<128x768xf32>
    %61 = vector.extract_strided_slice %56 {offsets = [0, 0], sizes = [32, 96], strides = [1, 1]} : vector<32x320xf32> to vector<32x96xf32>
    %62 = vector.extract_strided_slice %1 {offsets = [2, 0], sizes = [1, 96], strides = [1, 1]} : vector<28x384xf32> to vector<1x96xf32>
    %63 = vector.extract_strided_slice %56 {offsets = [0, 96], sizes = [32, 32], strides = [1, 1]} : vector<32x320xf32> to vector<32x32xf32>
    %64 = vector.extract_strided_slice %1 {offsets = [3, 0], sizes = [1, 32], strides = [1, 1]} : vector<28x384xf32> to vector<1x32xf32>
    %cst_23 = arith.constant dense<0.000000e+00> : vector<16x96xf32>
    %65 = tpu.matmul %45, %61, %cst_23 {dimension_numbers = #tpu.dot_dimension_numbers<[1], [0], [0], [1], [0, 0, 1, 1], [], []>} : vector<16x32xf32>, vector<32x96xf32>, vector<16x96xf32> -> vector<16x96xf32>
    %66 = vector.broadcast %62 : vector<1x96xf32> to vector<16x96xf32>
    %67 = arith.addf %65, %66 : vector<16x96xf32>
    %68 = vector.extract_strided_slice %67 {offsets = [0, 0], sizes = [16, 8], strides = [1, 1]} : vector<16x96xf32> to vector<16x8xf32>
    %69 = vector.shape_cast %68 : vector<16x8xf32> to vector<2x8x8xf32>
    %70 = vector.extract_strided_slice %67 {offsets = [0, 32], sizes = [16, 8], strides = [1, 1]} : vector<16x96xf32> to vector<16x8xf32>
    %71 = vector.shape_cast %70 : vector<16x8xf32> to vector<2x8x8xf32>
    %72 = vector.extract_strided_slice %67 {offsets = [0, 64], sizes = [16, 8], strides = [1, 1]} : vector<16x96xf32> to vector<16x8xf32>
    %73 = vector.shape_cast %72 : vector<16x8xf32> to vector<2x8x8xf32>
    "tpu.trace_start"() <{level = 10 : i32, message = "bqd,bkd->bqk"}> : () -> ()
    %cst_24 = arith.constant dense<0.000000e+00> : vector<2x8x8xf32>
    %74 = tpu.matmul %69, %71, %cst_24 {dimension_numbers = #tpu.dot_dimension_numbers<[2], [2], [1], [1], [0, 0, 0, 1, 1, 1], [0], [0]>} : vector<2x8x8xf32>, vector<2x8x8xf32>, vector<2x8x8xf32> -> vector<2x8x8xf32>
    "tpu.trace_stop"() : () -> ()
    %cst_25 = arith.constant 0.353553385 : f32
    %75 = vector.broadcast %cst_25 : f32 to vector<2x8x8xf32>
    %76 = arith.mulf %74, %75 : vector<2x8x8xf32>
    %77 = arith.addf %76, %54 : vector<2x8x8xf32>
    %cst_26 = arith.constant dense<0xFF800000> : vector<2x8xf32>
    %78 = vector.multi_reduction <maximumf>, %77, %cst_26 [2] : vector<2x8x8xf32> to vector<2x8xf32>
    %79 = vector.shape_cast %78 : vector<2x8xf32> to vector<2x8x1xf32>
    %80 = vector.broadcast %79 : vector<2x8x1xf32> to vector<2x8x8xf32>
    %81 = arith.subf %77, %80 : vector<2x8x8xf32>
    %82 = math.exp %81 : vector<2x8x8xf32>
    %cst_27 = arith.constant dense<0.000000e+00> : vector<2x8xf32>
    %83 = vector.multi_reduction <add>, %82, %cst_27 [2] : vector<2x8x8xf32> to vector<2x8xf32>
    %84 = vector.shape_cast %83 : vector<2x8xf32> to vector<2x8x1xf32>
    %85 = tpu.reciprocal %84 {approx = true} : vector<2x8x1xf32> -> vector<2x8x1xf32>
    %86 = vector.broadcast %85 : vector<2x8x1xf32> to vector<2x8x8xf32>
    %87 = arith.mulf %82, %86 : vector<2x8x8xf32>
    "tpu.trace_start"() <{level = 10 : i32, message = "bqk,bkd->bqd"}> : () -> ()
    %cst_28 = arith.constant dense<0.000000e+00> : vector<2x8x8xf32>
    %88 = tpu.matmul %87, %73, %cst_28 {dimension_numbers = #tpu.dot_dimension_numbers<[2], [1], [1], [2], [0, 0, 0, 1, 1, 2], [0], [0]>} : vector<2x8x8xf32>, vector<2x8x8xf32>, vector<2x8x8xf32> -> vector<2x8x8xf32>
    "tpu.trace_stop"() : () -> ()
    %89 = vector.shape_cast %88 : vector<2x8x8xf32> to vector<16x8xf32>
    %90 = vector.extract_strided_slice %63 {offsets = [0, 0], sizes = [8, 32], strides = [1, 1]} : vector<32x32xf32> to vector<8x32xf32>
    %cst_29 = arith.constant dense<0.000000e+00> : vector<16x32xf32>
    %91 = tpu.matmul %89, %90, %cst_29 {dimension_numbers = #tpu.dot_dimension_numbers<[1], [0], [0], [1], [0, 0, 1, 1], [], []>} : vector<16x8xf32>, vector<8x32xf32>, vector<16x32xf32> -> vector<16x32xf32>
    %92 = vector.extract_strided_slice %67 {offsets = [0, 8], sizes = [16, 8], strides = [1, 1]} : vector<16x96xf32> to vector<16x8xf32>
    %93 = vector.shape_cast %92 : vector<16x8xf32> to vector<2x8x8xf32>
    %94 = vector.extract_strided_slice %67 {offsets = [0, 40], sizes = [16, 8], strides = [1, 1]} : vector<16x96xf32> to vector<16x8xf32>
    %95 = vector.shape_cast %94 : vector<16x8xf32> to vector<2x8x8xf32>
    %96 = vector.extract_strided_slice %67 {offsets = [0, 72], sizes = [16, 8], strides = [1, 1]} : vector<16x96xf32> to vector<16x8xf32>
    %97 = vector.shape_cast %96 : vector<16x8xf32> to vector<2x8x8xf32>
    "tpu.trace_start"() <{level = 10 : i32, message = "bqd,bkd->bqk"}> : () -> ()
    %cst_30 = arith.constant dense<0.000000e+00> : vector<2x8x8xf32>
    %98 = tpu.matmul %93, %95, %cst_30 {dimension_numbers = #tpu.dot_dimension_numbers<[2], [2], [1], [1], [0, 0, 0, 1, 1, 1], [0], [0]>} : vector<2x8x8xf32>, vector<2x8x8xf32>, vector<2x8x8xf32> -> vector<2x8x8xf32>
    "tpu.trace_stop"() : () -> ()
    %cst_31 = arith.constant 0.353553385 : f32
    %99 = vector.broadcast %cst_31 : f32 to vector<2x8x8xf32>
    %100 = arith.mulf %98, %99 : vector<2x8x8xf32>
    %101 = arith.addf %100, %54 : vector<2x8x8xf32>
    %cst_32 = arith.constant dense<0xFF800000> : vector<2x8xf32>
    %102 = vector.multi_reduction <maximumf>, %101, %cst_32 [2] : vector<2x8x8xf32> to vector<2x8xf32>
    %103 = vector.shape_cast %102 : vector<2x8xf32> to vector<2x8x1xf32>
    %104 = vector.broadcast %103 : vector<2x8x1xf32> to vector<2x8x8xf32>
    %105 = arith.subf %101, %104 : vector<2x8x8xf32>
    %106 = math.exp %105 : vector<2x8x8xf32>
    %cst_33 = arith.constant dense<0.000000e+00> : vector<2x8xf32>
    %107 = vector.multi_reduction <add>, %106, %cst_33 [2] : vector<2x8x8xf32> to vector<2x8xf32>
    %108 = vector.shape_cast %107 : vector<2x8xf32> to vector<2x8x1xf32>
    %109 = tpu.reciprocal %108 {approx = true} : vector<2x8x1xf32> -> vector<2x8x1xf32>
    %110 = vector.broadcast %109 : vector<2x8x1xf32> to vector<2x8x8xf32>
    %111 = arith.mulf %106, %110 : vector<2x8x8xf32>
    "tpu.trace_start"() <{level = 10 : i32, message = "bqk,bkd->bqd"}> : () -> ()
    %cst_34 = arith.constant dense<0.000000e+00> : vector<2x8x8xf32>
    %112 = tpu.matmul %111, %97, %cst_34 {dimension_numbers = #tpu.dot_dimension_numbers<[2], [1], [1], [2], [0, 0, 0, 1, 1, 2], [0], [0]>} : vector<2x8x8xf32>, vector<2x8x8xf32>, vector<2x8x8xf32> -> vector<2x8x8xf32>
    "tpu.trace_stop"() : () -> ()
    %113 = vector.shape_cast %112 : vector<2x8x8xf32> to vector<16x8xf32>
    %114 = vector.extract_strided_slice %63 {offsets = [8, 0], sizes = [8, 32], strides = [1, 1]} : vector<32x32xf32> to vector<8x32xf32>
    %cst_35 = arith.constant dense<0.000000e+00> : vector<16x32xf32>
    %115 = tpu.matmul %113, %114, %cst_35 {dimension_numbers = #tpu.dot_dimension_numbers<[1], [0], [0], [1], [0, 0, 1, 1], [], []>} : vector<16x8xf32>, vector<8x32xf32>, vector<16x32xf32> -> vector<16x32xf32>
    %116 = arith.addf %91, %115 : vector<16x32xf32>
    %117 = vector.extract_strided_slice %67 {offsets = [0, 16], sizes = [16, 8], strides = [1, 1]} : vector<16x96xf32> to vector<16x8xf32>
    %118 = vector.shape_cast %117 : vector<16x8xf32> to vector<2x8x8xf32>
    %119 = vector.extract_strided_slice %67 {offsets = [0, 48], sizes = [16, 8], strides = [1, 1]} : vector<16x96xf32> to vector<16x8xf32>
    %120 = vector.shape_cast %119 : vector<16x8xf32> to vector<2x8x8xf32>
    %121 = vector.extract_strided_slice %67 {offsets = [0, 80], sizes = [16, 8], strides = [1, 1]} : vector<16x96xf32> to vector<16x8xf32>
    %122 = vector.shape_cast %121 : vector<16x8xf32> to vector<2x8x8xf32>
    "tpu.trace_start"() <{level = 10 : i32, message = "bqd,bkd->bqk"}> : () -> ()
    %cst_36 = arith.constant dense<0.000000e+00> : vector<2x8x8xf32>
    %123 = tpu.matmul %118, %120, %cst_36 {dimension_numbers = #tpu.dot_dimension_numbers<[2], [2], [1], [1], [0, 0, 0, 1, 1, 1], [0], [0]>} : vector<2x8x8xf32>, vector<2x8x8xf32>, vector<2x8x8xf32> -> vector<2x8x8xf32>
    "tpu.trace_stop"() : () -> ()
    %cst_37 = arith.constant 0.353553385 : f32
    %124 = vector.broadcast %cst_37 : f32 to vector<2x8x8xf32>
    %125 = arith.mulf %123, %124 : vector<2x8x8xf32>
    %126 = arith.addf %125, %54 : vector<2x8x8xf32>
    %cst_38 = arith.constant dense<0xFF800000> : vector<2x8xf32>
    %127 = vector.multi_reduction <maximumf>, %126, %cst_38 [2] : vector<2x8x8xf32> to vector<2x8xf32>
    %128 = vector.shape_cast %127 : vector<2x8xf32> to vector<2x8x1xf32>
    %129 = vector.broadcast %128 : vector<2x8x1xf32> to vector<2x8x8xf32>
    %130 = arith.subf %126, %129 : vector<2x8x8xf32>
    %131 = math.exp %130 : vector<2x8x8xf32>
    %cst_39 = arith.constant dense<0.000000e+00> : vector<2x8xf32>
    %132 = vector.multi_reduction <add>, %131, %cst_39 [2] : vector<2x8x8xf32> to vector<2x8xf32>
    %133 = vector.shape_cast %132 : vector<2x8xf32> to vector<2x8x1xf32>
    %134 = tpu.reciprocal %133 {approx = true} : vector<2x8x1xf32> -> vector<2x8x1xf32>
    %135 = vector.broadcast %134 : vector<2x8x1xf32> to vector<2x8x8xf32>
    %136 = arith.mulf %131, %135 : vector<2x8x8xf32>
    "tpu.trace_start"() <{level = 10 : i32, message = "bqk,bkd->bqd"}> : () -> ()
    %cst_40 = arith.constant dense<0.000000e+00> : vector<2x8x8xf32>
    %137 = tpu.matmul %136, %122, %cst_40 {dimension_numbers = #tpu.dot_dimension_numbers<[2], [1], [1], [2], [0, 0, 0, 1, 1, 2], [0], [0]>} : vector<2x8x8xf32>, vector<2x8x8xf32>, vector<2x8x8xf32> -> vector<2x8x8xf32>
    "tpu.trace_stop"() : () -> ()
    %138 = vector.shape_cast %137 : vector<2x8x8xf32> to vector<16x8xf32>
    %139 = vector.extract_strided_slice %63 {offsets = [16, 0], sizes = [8, 32], strides = [1, 1]} : vector<32x32xf32> to vector<8x32xf32>
    %cst_41 = arith.constant dense<0.000000e+00> : vector<16x32xf32>
    %140 = tpu.matmul %138, %139, %cst_41 {dimension_numbers = #tpu.dot_dimension_numbers<[1], [0], [0], [1], [0, 0, 1, 1], [], []>} : vector<16x8xf32>, vector<8x32xf32>, vector<16x32xf32> -> vector<16x32xf32>
    %141 = arith.addf %116, %140 : vector<16x32xf32>
    %142 = vector.extract_strided_slice %67 {offsets = [0, 24], sizes = [16, 8], strides = [1, 1]} : vector<16x96xf32> to vector<16x8xf32>
    %143 = vector.shape_cast %142 : vector<16x8xf32> to vector<2x8x8xf32>
    %144 = vector.extract_strided_slice %67 {offsets = [0, 56], sizes = [16, 8], strides = [1, 1]} : vector<16x96xf32> to vector<16x8xf32>
    %145 = vector.shape_cast %144 : vector<16x8xf32> to vector<2x8x8xf32>
    %146 = vector.extract_strided_slice %67 {offsets = [0, 88], sizes = [16, 8], strides = [1, 1]} : vector<16x96xf32> to vector<16x8xf32>
    %147 = vector.shape_cast %146 : vector<16x8xf32> to vector<2x8x8xf32>
    "tpu.trace_start"() <{level = 10 : i32, message = "bqd,bkd->bqk"}> : () -> ()
    %cst_42 = arith.constant dense<0.000000e+00> : vector<2x8x8xf32>
    %148 = tpu.matmul %143, %145, %cst_42 {dimension_numbers = #tpu.dot_dimension_numbers<[2], [2], [1], [1], [0, 0, 0, 1, 1, 1], [0], [0]>} : vector<2x8x8xf32>, vector<2x8x8xf32>, vector<2x8x8xf32> -> vector<2x8x8xf32>
    "tpu.trace_stop"() : () -> ()
    %cst_43 = arith.constant 0.353553385 : f32
    %149 = vector.broadcast %cst_43 : f32 to vector<2x8x8xf32>
    %150 = arith.mulf %148, %149 : vector<2x8x8xf32>
    %151 = arith.addf %150, %54 : vector<2x8x8xf32>
    %cst_44 = arith.constant dense<0xFF800000> : vector<2x8xf32>
    %152 = vector.multi_reduction <maximumf>, %151, %cst_44 [2] : vector<2x8x8xf32> to vector<2x8xf32>
    %153 = vector.shape_cast %152 : vector<2x8xf32> to vector<2x8x1xf32>
    %154 = vector.broadcast %153 : vector<2x8x1xf32> to vector<2x8x8xf32>
    %155 = arith.subf %151, %154 : vector<2x8x8xf32>
    %156 = math.exp %155 : vector<2x8x8xf32>
    %cst_45 = arith.constant dense<0.000000e+00> : vector<2x8xf32>
    %157 = vector.multi_reduction <add>, %156, %cst_45 [2] : vector<2x8x8xf32> to vector<2x8xf32>
    %158 = vector.shape_cast %157 : vector<2x8xf32> to vector<2x8x1xf32>
    %159 = tpu.reciprocal %158 {approx = true} : vector<2x8x1xf32> -> vector<2x8x1xf32>
    %160 = vector.broadcast %159 : vector<2x8x1xf32> to vector<2x8x8xf32>
    %161 = arith.mulf %156, %160 : vector<2x8x8xf32>
    "tpu.trace_start"() <{level = 10 : i32, message = "bqk,bkd->bqd"}> : () -> ()
    %cst_46 = arith.constant dense<0.000000e+00> : vector<2x8x8xf32>
    %162 = tpu.matmul %161, %147, %cst_46 {dimension_numbers = #tpu.dot_dimension_numbers<[2], [1], [1], [2], [0, 0, 0, 1, 1, 2], [0], [0]>} : vector<2x8x8xf32>, vector<2x8x8xf32>, vector<2x8x8xf32> -> vector<2x8x8xf32>
    "tpu.trace_stop"() : () -> ()
    %163 = vector.shape_cast %162 : vector<2x8x8xf32> to vector<16x8xf32>
    %164 = vector.extract_strided_slice %63 {offsets = [24, 0], sizes = [8, 32], strides = [1, 1]} : vector<32x32xf32> to vector<8x32xf32>
    %cst_47 = arith.constant dense<0.000000e+00> : vector<16x32xf32>
    %165 = tpu.matmul %163, %164, %cst_47 {dimension_numbers = #tpu.dot_dimension_numbers<[1], [0], [0], [1], [0, 0, 1, 1], [], []>} : vector<16x8xf32>, vector<8x32xf32>, vector<16x32xf32> -> vector<16x32xf32>
    %166 = arith.addf %141, %165 : vector<16x32xf32>
    %167 = vector.broadcast %64 : vector<1x32xf32> to vector<16x32xf32>
    %168 = arith.addf %166, %167 : vector<16x32xf32>
    %169 = arith.addf %168, %45 : vector<16x32xf32>
    %170 = vector.extract_strided_slice %1 {offsets = [4, 0], sizes = [1, 32], strides = [1, 1]} : vector<28x384xf32> to vector<1x32xf32>
    %171 = vector.extract_strided_slice %1 {offsets = [5, 0], sizes = [1, 32], strides = [1, 1]} : vector<28x384xf32> to vector<1x32xf32>
    %cst_48 = arith.constant dense<0.000000e+00> : vector<16xf32>
    %172 = vector.multi_reduction <add>, %169, %cst_48 [1] : vector<16x32xf32> to vector<16xf32>
    %173 = vector.shape_cast %172 : vector<16xf32> to vector<16x1xf32>
    %cst_49 = arith.constant 3.200000e+01 : f32
    %174 = vector.broadcast %cst_49 : f32 to vector<16x1xf32>
    %175 = arith.divf %173, %174 : vector<16x1xf32>
    %176 = vector.broadcast %175 : vector<16x1xf32> to vector<16x32xf32>
    %177 = arith.subf %169, %176 : vector<16x32xf32>
    %178 = arith.mulf %177, %177 : vector<16x32xf32>
    %cst_50 = arith.constant dense<0.000000e+00> : vector<16xf32>
    %179 = vector.multi_reduction <add>, %178, %cst_50 [1] : vector<16x32xf32> to vector<16xf32>
    %180 = vector.shape_cast %179 : vector<16xf32> to vector<16x1xf32>
    %cst_51 = arith.constant 3.200000e+01 : f32
    %181 = vector.broadcast %cst_51 : f32 to vector<16x1xf32>
    %182 = arith.divf %180, %181 : vector<16x1xf32>
    %183 = vector.broadcast %175 : vector<16x1xf32> to vector<16x32xf32>
    %184 = arith.subf %169, %183 : vector<16x32xf32>
    %cst_52 = arith.constant 9.99999997E-7 : f32
    %185 = vector.broadcast %cst_52 : f32 to vector<16x1xf32>
    %186 = arith.addf %182, %185 : vector<16x1xf32>
    %187 = math.rsqrt %186 : vector<16x1xf32>
    %188 = vector.broadcast %187 : vector<16x1xf32> to vector<16x32xf32>
    %189 = arith.mulf %184, %188 : vector<16x32xf32>
    %190 = vector.broadcast %170 : vector<1x32xf32> to vector<16x32xf32>
    %191 = arith.mulf %189, %190 : vector<16x32xf32>
    %192 = vector.broadcast %171 : vector<1x32xf32> to vector<16x32xf32>
    %193 = arith.addf %191, %192 : vector<16x32xf32>
    %194 = vector.extract_strided_slice %56 {offsets = [0, 256], sizes = [32, 64], strides = [1, 1]} : vector<32x320xf32> to vector<32x64xf32>
    %cst_53 = arith.constant dense<0.000000e+00> : vector<16x64xf32>
    %195 = tpu.matmul %193, %194, %cst_53 {dimension_numbers = #tpu.dot_dimension_numbers<[1], [0], [0], [1], [0, 0, 1, 1], [], []>} : vector<16x32xf32>, vector<32x64xf32>, vector<16x64xf32> -> vector<16x64xf32>
    %196 = vector.extract_strided_slice %1 {offsets = [6, 0], sizes = [1, 64], strides = [1, 1]} : vector<28x384xf32> to vector<1x64xf32>
    %197 = vector.broadcast %196 : vector<1x64xf32> to vector<16x64xf32>
    %198 = arith.addf %195, %197 : vector<16x64xf32>
    %cst_54 = arith.constant 5.000000e-01 : f32
    %199 = vector.broadcast %cst_54 : f32 to vector<16x64xf32>
    %200 = arith.mulf %199, %198 : vector<16x64xf32>
    %cst_55 = arith.constant 0.707106769 : f32
    %201 = vector.broadcast %cst_55 : f32 to vector<16x64xf32>
    %202 = arith.mulf %198, %201 : vector<16x64xf32>
    %203 = math.absf %202 : vector<16x64xf32>
    %cst_56 = arith.constant 0.327591091 : f32
    %204 = vector.broadcast %cst_56 : f32 to vector<16x64xf32>
    %205 = arith.mulf %204, %203 : vector<16x64xf32>
    %cst_57 = arith.constant 1.000000e+00 : f32
    %206 = vector.broadcast %cst_57 : f32 to vector<16x64xf32>
    %207 = arith.addf %206, %205 : vector<16x64xf32>
    %cst_58 = arith.constant 1.000000e+00 : f32
    %208 = vector.broadcast %cst_58 : f32 to vector<16x64xf32>
    %209 = arith.divf %208, %207 : vector<16x64xf32>
    %cst_59 = arith.constant 1.06140542 : f32
    %210 = vector.broadcast %cst_59 : f32 to vector<16x64xf32>
    %211 = arith.mulf %210, %209 : vector<16x64xf32>
    %cst_60 = arith.constant -1.45315206 : f32
    %212 = vector.broadcast %cst_60 : f32 to vector<16x64xf32>
    %213 = arith.addf %211, %212 : vector<16x64xf32>
    %214 = arith.mulf %213, %209 : vector<16x64xf32>
    %cst_61 = arith.constant 1.42141378 : f32
    %215 = vector.broadcast %cst_61 : f32 to vector<16x64xf32>
    %216 = arith.addf %214, %215 : vector<16x64xf32>
    %217 = arith.mulf %216, %209 : vector<16x64xf32>
    %cst_62 = arith.constant -0.284496725 : f32
    %218 = vector.broadcast %cst_62 : f32 to vector<16x64xf32>
    %219 = arith.addf %217, %218 : vector<16x64xf32>
    %220 = arith.mulf %219, %209 : vector<16x64xf32>
    %cst_63 = arith.constant 0.254829586 : f32
    %221 = vector.broadcast %cst_63 : f32 to vector<16x64xf32>
    %222 = arith.addf %220, %221 : vector<16x64xf32>
    %223 = arith.mulf %222, %209 : vector<16x64xf32>
    %cst_64 = arith.constant 0.000000e+00 : f32
    %224 = vector.broadcast %cst_64 : f32 to vector<16x64xf32>
    %225 = arith.subf %224, %203 : vector<16x64xf32>
    %226 = arith.mulf %225, %203 : vector<16x64xf32>
    %227 = math.exp %226 : vector<16x64xf32>
    %228 = arith.mulf %223, %227 : vector<16x64xf32>
    %cst_65 = arith.constant 1.000000e+00 : f32
    %229 = vector.broadcast %cst_65 : f32 to vector<16x64xf32>
    %230 = arith.subf %229, %228 : vector<16x64xf32>
    %cst_66 = arith.constant 0.000000e+00 : f32
    %231 = vector.broadcast %cst_66 : f32 to vector<16x64xf32>
    %232 = arith.cmpf oge, %202, %231 : vector<16x64xf32>
    %cst_67 = arith.constant 0.000000e+00 : f32
    %233 = vector.broadcast %cst_67 : f32 to vector<16x64xf32>
    %234 = arith.subf %233, %230 : vector<16x64xf32>
    %235 = arith.select %232, %230, %234 : vector<16x64xi1>, vector<16x64xf32>
    %cst_68 = arith.constant 1.000000e+00 : f32
    %236 = vector.broadcast %cst_68 : f32 to vector<16x64xf32>
    %237 = arith.addf %236, %235 : vector<16x64xf32>
    %238 = arith.mulf %200, %237 : vector<16x64xf32>
    %cst_69 = arith.constant dense<0.000000e+00> : vector<16x32xf32>
    %239 = tpu.matmul %238, %58, %cst_69 {dimension_numbers = #tpu.dot_dimension_numbers<[1], [0], [0], [1], [0, 0, 1, 1], [], []>} : vector<16x64xf32>, vector<64x32xf32>, vector<16x32xf32> -> vector<16x32xf32>
    %240 = vector.extract_strided_slice %1 {offsets = [7, 0], sizes = [1, 32], strides = [1, 1]} : vector<28x384xf32> to vector<1x32xf32>
    %241 = vector.broadcast %240 : vector<1x32xf32> to vector<16x32xf32>
    %242 = arith.addf %239, %241 : vector<16x32xf32>
    %243 = arith.addf %242, %193 : vector<16x32xf32>
    %244 = vector.extract_strided_slice %1 {offsets = [8, 0], sizes = [1, 32], strides = [1, 1]} : vector<28x384xf32> to vector<1x32xf32>
    %245 = vector.extract_strided_slice %1 {offsets = [9, 0], sizes = [1, 32], strides = [1, 1]} : vector<28x384xf32> to vector<1x32xf32>
    %cst_70 = arith.constant dense<0.000000e+00> : vector<16xf32>
    %246 = vector.multi_reduction <add>, %243, %cst_70 [1] : vector<16x32xf32> to vector<16xf32>
    %247 = vector.shape_cast %246 : vector<16xf32> to vector<16x1xf32>
    %cst_71 = arith.constant 3.200000e+01 : f32
    %248 = vector.broadcast %cst_71 : f32 to vector<16x1xf32>
    %249 = arith.divf %247, %248 : vector<16x1xf32>
    %250 = vector.broadcast %249 : vector<16x1xf32> to vector<16x32xf32>
    %251 = arith.subf %243, %250 : vector<16x32xf32>
    %252 = arith.mulf %251, %251 : vector<16x32xf32>
    %cst_72 = arith.constant dense<0.000000e+00> : vector<16xf32>
    %253 = vector.multi_reduction <add>, %252, %cst_72 [1] : vector<16x32xf32> to vector<16xf32>
    %254 = vector.shape_cast %253 : vector<16xf32> to vector<16x1xf32>
    %cst_73 = arith.constant 3.200000e+01 : f32
    %255 = vector.broadcast %cst_73 : f32 to vector<16x1xf32>
    %256 = arith.divf %254, %255 : vector<16x1xf32>
    %257 = vector.broadcast %249 : vector<16x1xf32> to vector<16x32xf32>
    %258 = arith.subf %243, %257 : vector<16x32xf32>
    %cst_74 = arith.constant 9.99999997E-7 : f32
    %259 = vector.broadcast %cst_74 : f32 to vector<16x1xf32>
    %260 = arith.addf %256, %259 : vector<16x1xf32>
    %261 = math.rsqrt %260 : vector<16x1xf32>
    %262 = vector.broadcast %261 : vector<16x1xf32> to vector<16x32xf32>
    %263 = arith.mulf %258, %262 : vector<16x32xf32>
    %264 = vector.broadcast %244 : vector<1x32xf32> to vector<16x32xf32>
    %265 = arith.mulf %263, %264 : vector<16x32xf32>
    %266 = vector.broadcast %245 : vector<1x32xf32> to vector<16x32xf32>
    %267 = arith.addf %265, %266 : vector<16x32xf32>
    %268 = vector.extract_strided_slice %56 {offsets = [0, 128], sizes = [32, 128], strides = [1, 1]} : vector<32x320xf32> to vector<32x128xf32>
    %cst_75 = arith.constant dense<0.000000e+00> : vector<16x128xf32>
    %269 = tpu.matmul %267, %268, %cst_75 {dimension_numbers = #tpu.dot_dimension_numbers<[1], [0], [0], [1], [0, 0, 1, 1], [], []>} : vector<16x32xf32>, vector<32x128xf32>, vector<16x128xf32> -> vector<16x128xf32>
    %270 = vector.extract_strided_slice %1 {offsets = [18, 0], sizes = [1, 128], strides = [1, 1]} : vector<28x384xf32> to vector<1x128xf32>
    %271 = vector.broadcast %270 : vector<1x128xf32> to vector<16x128xf32>
    %272 = arith.addf %269, %271 : vector<16x128xf32>
    %273 = math.tanh %272 : vector<16x128xf32>
    %274 = vector.extract_strided_slice %60 {offsets = [0, 0], sizes = [128, 384], strides = [1, 1]} : vector<128x768xf32> to vector<128x384xf32>
    %275 = vector.extract_strided_slice %1 {offsets = [19, 0], sizes = [1, 384], strides = [1, 1]} : vector<28x384xf32> to vector<1x384xf32>
    %276 = vector.extract_strided_slice %60 {offsets = [0, 384], sizes = [128, 128], strides = [1, 1]} : vector<128x768xf32> to vector<128x128xf32>
    %277 = vector.extract_strided_slice %1 {offsets = [20, 0], sizes = [1, 128], strides = [1, 1]} : vector<28x384xf32> to vector<1x128xf32>
    %cst_76 = arith.constant dense<0.000000e+00> : vector<16x384xf32>
    %278 = tpu.matmul %273, %274, %cst_76 {dimension_numbers = #tpu.dot_dimension_numbers<[1], [0], [0], [1], [0, 0, 1, 1], [], []>} : vector<16x128xf32>, vector<128x384xf32>, vector<16x384xf32> -> vector<16x384xf32>
    %279 = vector.broadcast %275 : vector<1x384xf32> to vector<16x384xf32>
    %280 = arith.addf %278, %279 : vector<16x384xf32>
    %281 = vector.extract_strided_slice %280 {offsets = [0, 0], sizes = [16, 64], strides = [1, 1]} : vector<16x384xf32> to vector<16x64xf32>
    %282 = vector.shape_cast %281 : vector<16x64xf32> to vector<2x8x64xf32>
    %283 = vector.extract_strided_slice %280 {offsets = [0, 128], sizes = [16, 64], strides = [1, 1]} : vector<16x384xf32> to vector<16x64xf32>
    %284 = vector.shape_cast %283 : vector<16x64xf32> to vector<2x8x64xf32>
    %285 = vector.extract_strided_slice %280 {offsets = [0, 256], sizes = [16, 64], strides = [1, 1]} : vector<16x384xf32> to vector<16x64xf32>
    %286 = vector.shape_cast %285 : vector<16x64xf32> to vector<2x8x64xf32>
    "tpu.trace_start"() <{level = 10 : i32, message = "bqd,bkd->bqk"}> : () -> ()
    %cst_77 = arith.constant dense<0.000000e+00> : vector<2x8x8xf32>
    %287 = tpu.matmul %282, %284, %cst_77 {dimension_numbers = #tpu.dot_dimension_numbers<[2], [2], [1], [1], [0, 0, 0, 1, 1, 1], [0], [0]>} : vector<2x8x64xf32>, vector<2x8x64xf32>, vector<2x8x8xf32> -> vector<2x8x8xf32>
    "tpu.trace_stop"() : () -> ()
    %cst_78 = arith.constant 1.250000e-01 : f32
    %288 = vector.broadcast %cst_78 : f32 to vector<2x8x8xf32>
    %289 = arith.mulf %287, %288 : vector<2x8x8xf32>
    %290 = arith.addf %289, %54 : vector<2x8x8xf32>
    %cst_79 = arith.constant dense<0xFF800000> : vector<2x8xf32>
    %291 = vector.multi_reduction <maximumf>, %290, %cst_79 [2] : vector<2x8x8xf32> to vector<2x8xf32>
    %292 = vector.shape_cast %291 : vector<2x8xf32> to vector<2x8x1xf32>
    %293 = vector.broadcast %292 : vector<2x8x1xf32> to vector<2x8x8xf32>
    %294 = arith.subf %290, %293 : vector<2x8x8xf32>
    %295 = math.exp %294 : vector<2x8x8xf32>
    %cst_80 = arith.constant dense<0.000000e+00> : vector<2x8xf32>
    %296 = vector.multi_reduction <add>, %295, %cst_80 [2] : vector<2x8x8xf32> to vector<2x8xf32>
    %297 = vector.shape_cast %296 : vector<2x8xf32> to vector<2x8x1xf32>
    %298 = tpu.reciprocal %297 {approx = true} : vector<2x8x1xf32> -> vector<2x8x1xf32>
    %299 = vector.broadcast %298 : vector<2x8x1xf32> to vector<2x8x8xf32>
    %300 = arith.mulf %295, %299 : vector<2x8x8xf32>
    "tpu.trace_start"() <{level = 10 : i32, message = "bqk,bkd->bqd"}> : () -> ()
    %cst_81 = arith.constant dense<0.000000e+00> : vector<2x8x64xf32>
    %301 = tpu.matmul %300, %286, %cst_81 {dimension_numbers = #tpu.dot_dimension_numbers<[2], [1], [1], [2], [0, 0, 0, 1, 1, 2], [0], [0]>} : vector<2x8x8xf32>, vector<2x8x64xf32>, vector<2x8x64xf32> -> vector<2x8x64xf32>
    "tpu.trace_stop"() : () -> ()
    %302 = vector.shape_cast %301 : vector<2x8x64xf32> to vector<16x64xf32>
    %303 = vector.extract_strided_slice %276 {offsets = [0, 0], sizes = [64, 128], strides = [1, 1]} : vector<128x128xf32> to vector<64x128xf32>
    %cst_82 = arith.constant dense<0.000000e+00> : vector<16x128xf32>
    %304 = tpu.matmul %302, %303, %cst_82 {dimension_numbers = #tpu.dot_dimension_numbers<[1], [0], [0], [1], [0, 0, 1, 1], [], []>} : vector<16x64xf32>, vector<64x128xf32>, vector<16x128xf32> -> vector<16x128xf32>
    %305 = vector.extract_strided_slice %280 {offsets = [0, 64], sizes = [16, 64], strides = [1, 1]} : vector<16x384xf32> to vector<16x64xf32>
    %306 = vector.shape_cast %305 : vector<16x64xf32> to vector<2x8x64xf32>
    %307 = vector.extract_strided_slice %280 {offsets = [0, 192], sizes = [16, 64], strides = [1, 1]} : vector<16x384xf32> to vector<16x64xf32>
    %308 = vector.shape_cast %307 : vector<16x64xf32> to vector<2x8x64xf32>
    %309 = vector.extract_strided_slice %280 {offsets = [0, 320], sizes = [16, 64], strides = [1, 1]} : vector<16x384xf32> to vector<16x64xf32>
    %310 = vector.shape_cast %309 : vector<16x64xf32> to vector<2x8x64xf32>
    "tpu.trace_start"() <{level = 10 : i32, message = "bqd,bkd->bqk"}> : () -> ()
    %cst_83 = arith.constant dense<0.000000e+00> : vector<2x8x8xf32>
    %311 = tpu.matmul %306, %308, %cst_83 {dimension_numbers = #tpu.dot_dimension_numbers<[2], [2], [1], [1], [0, 0, 0, 1, 1, 1], [0], [0]>} : vector<2x8x64xf32>, vector<2x8x64xf32>, vector<2x8x8xf32> -> vector<2x8x8xf32>
    "tpu.trace_stop"() : () -> ()
    %cst_84 = arith.constant 1.250000e-01 : f32
    %312 = vector.broadcast %cst_84 : f32 to vector<2x8x8xf32>
    %313 = arith.mulf %311, %312 : vector<2x8x8xf32>
    %314 = arith.addf %313, %54 : vector<2x8x8xf32>
    %cst_85 = arith.constant dense<0xFF800000> : vector<2x8xf32>
    %315 = vector.multi_reduction <maximumf>, %314, %cst_85 [2] : vector<2x8x8xf32> to vector<2x8xf32>
    %316 = vector.shape_cast %315 : vector<2x8xf32> to vector<2x8x1xf32>
    %317 = vector.broadcast %316 : vector<2x8x1xf32> to vector<2x8x8xf32>
    %318 = arith.subf %314, %317 : vector<2x8x8xf32>
    %319 = math.exp %318 : vector<2x8x8xf32>
    %cst_86 = arith.constant dense<0.000000e+00> : vector<2x8xf32>
    %320 = vector.multi_reduction <add>, %319, %cst_86 [2] : vector<2x8x8xf32> to vector<2x8xf32>
    %321 = vector.shape_cast %320 : vector<2x8xf32> to vector<2x8x1xf32>
    %322 = tpu.reciprocal %321 {approx = true} : vector<2x8x1xf32> -> vector<2x8x1xf32>
    %323 = vector.broadcast %322 : vector<2x8x1xf32> to vector<2x8x8xf32>
    %324 = arith.mulf %319, %323 : vector<2x8x8xf32>
    "tpu.trace_start"() <{level = 10 : i32, message = "bqk,bkd->bqd"}> : () -> ()
    %cst_87 = arith.constant dense<0.000000e+00> : vector<2x8x64xf32>
    %325 = tpu.matmul %324, %310, %cst_87 {dimension_numbers = #tpu.dot_dimension_numbers<[2], [1], [1], [2], [0, 0, 0, 1, 1, 2], [0], [0]>} : vector<2x8x8xf32>, vector<2x8x64xf32>, vector<2x8x64xf32> -> vector<2x8x64xf32>
    "tpu.trace_stop"() : () -> ()
    %326 = vector.shape_cast %325 : vector<2x8x64xf32> to vector<16x64xf32>
    %327 = vector.extract_strided_slice %276 {offsets = [64, 0], sizes = [64, 128], strides = [1, 1]} : vector<128x128xf32> to vector<64x128xf32>
    %cst_88 = arith.constant dense<0.000000e+00> : vector<16x128xf32>
    %328 = tpu.matmul %326, %327, %cst_88 {dimension_numbers = #tpu.dot_dimension_numbers<[1], [0], [0], [1], [0, 0, 1, 1], [], []>} : vector<16x64xf32>, vector<64x128xf32>, vector<16x128xf32> -> vector<16x128xf32>
    %329 = arith.addf %304, %328 : vector<16x128xf32>
    %330 = vector.broadcast %277 : vector<1x128xf32> to vector<16x128xf32>
    %331 = arith.addf %329, %330 : vector<16x128xf32>
    %332 = vector.shape_cast %331 : vector<16x128xf32> to vector<2x8x128xf32>
    %333 = vector.extract_strided_slice %332 {offsets = [0, 0, 0], sizes = [2, 1, 128], strides = [1, 1, 1]} : vector<2x8x128xf32> to vector<2x1x128xf32>
    %334 = vector.shape_cast %333 : vector<2x1x128xf32> to vector<2x128xf32>
    %335 = vector.extract_strided_slice %60 {offsets = [0, 512], sizes = [128, 128], strides = [1, 1]} : vector<128x768xf32> to vector<128x128xf32>
    %cst_89 = arith.constant dense<0.000000e+00> : vector<2x128xf32>
    %336 = tpu.matmul %334, %335, %cst_89 {dimension_numbers = #tpu.dot_dimension_numbers<[1], [0], [0], [1], [0, 0, 1, 1], [], []>} : vector<2x128xf32>, vector<128x128xf32>, vector<2x128xf32> -> vector<2x128xf32>
    %337 = vector.extract_strided_slice %1 {offsets = [21, 0], sizes = [1, 128], strides = [1, 1]} : vector<28x384xf32> to vector<1x128xf32>
    %338 = vector.broadcast %337 : vector<1x128xf32> to vector<2x128xf32>
    %339 = arith.addf %336, %338 : vector<2x128xf32>
    %340 = math.tanh %339 : vector<2x128xf32>
    %341 = vector.extract_strided_slice %60 {offsets = [0, 640], sizes = [128, 128], strides = [1, 1]} : vector<128x768xf32> to vector<128x128xf32>
    %cst_90 = arith.constant dense<0.000000e+00> : vector<2x128xf32>
    %342 = tpu.matmul %340, %341, %cst_90 {dimension_numbers = #tpu.dot_dimension_numbers<[1], [0], [0], [1], [0, 0, 1, 1], [], []>} : vector<2x128xf32>, vector<128x128xf32>, vector<2x128xf32> -> vector<2x128xf32>
    %343 = vector.extract_strided_slice %1 {offsets = [22, 0], sizes = [1, 128], strides = [1, 1]} : vector<28x384xf32> to vector<1x128xf32>
    %344 = vector.broadcast %343 : vector<1x128xf32> to vector<2x128xf32>
    %345 = arith.addf %342, %344 : vector<2x128xf32>
    %346 = vector.extract_strided_slice %345 {offsets = [0, 0], sizes = [2, 3], strides = [1, 1]} : vector<2x128xf32> to vector<2x3xf32>
    %cst_91 = arith.constant dense<0xFF800000> : vector<2xf32>
    %347 = vector.multi_reduction <maximumf>, %346, %cst_91 [1] : vector<2x3xf32> to vector<2xf32>
    %348 = vector.shape_cast %347 : vector<2xf32> to vector<2x1xf32>
    %349 = vector.broadcast %348 : vector<2x1xf32> to vector<2x3xf32>
    %350 = arith.subf %346, %349 : vector<2x3xf32>
    %351 = math.exp %350 : vector<2x3xf32>
    %cst_92 = arith.constant dense<0.000000e+00> : vector<2xf32>
    %352 = vector.multi_reduction <add>, %351, %cst_92 [1] : vector<2x3xf32> to vector<2xf32>
    %353 = vector.shape_cast %352 : vector<2xf32> to vector<2x1xf32>
    %354 = math.log %353 : vector<2x1xf32>
    %355 = vector.broadcast %354 : vector<2x1xf32> to vector<2x3xf32>
    %356 = arith.subf %350, %355 : vector<2x3xf32>
    %357 = math.exp %356 : vector<2x3xf32>
    %358 = arith.mulf %357, %356 : vector<2x3xf32>
    %cst_93 = arith.constant dense<0.000000e+00> : vector<2xf32>
    %359 = vector.multi_reduction <add>, %358, %cst_93 [1] : vector<2x3xf32> to vector<2xf32>
    %360 = vector.shape_cast %359 : vector<2xf32> to vector<2x1xf32>
    %cst_94 = arith.constant 0.000000e+00 : f32
    %361 = vector.broadcast %cst_94 : f32 to vector<2x1xf32>
    %362 = arith.subf %361, %360 : vector<2x1xf32>
    %cst_95 = arith.constant 0.910239219 : f32
    %363 = vector.broadcast %cst_95 : f32 to vector<2x1xf32>
    %364 = arith.mulf %362, %363 : vector<2x1xf32>
    %cst_96 = arith.constant 5.000000e-01 : f32
    %365 = vector.broadcast %cst_96 : f32 to vector<2x1xf32>
    %366 = arith.cmpf ole, %364, %365 : vector<2x1xf32>
    %c1 = arith.constant 1 : index
    %c0_97 = arith.constant 0 : index
    %c0_98 = arith.constant 0 : index
    %367 = vector.load %arg3[%c1, %c0_97, %c0_98] : memref<2x32x320xf32, #tpu.memory_space<vmem>>, vector<1x32x320xf32>
    %368 = vector.shape_cast %367 : vector<1x32x320xf32> to vector<32x320xf32>
    %c1_99 = arith.constant 1 : index
    %c0_100 = arith.constant 0 : index
    %c0_101 = arith.constant 0 : index
    %369 = vector.load %arg4[%c1_99, %c0_100, %c0_101] : memref<2x64x32xf32, #tpu.memory_space<vmem>>, vector<1x64x32xf32>
    %370 = vector.shape_cast %369 : vector<1x64x32xf32> to vector<64x32xf32>
    %c1_102 = arith.constant 1 : index
    %c0_103 = arith.constant 0 : index
    %c0_104 = arith.constant 0 : index
    %371 = vector.load %arg5[%c1_102, %c0_103, %c0_104] : memref<2x128x768xf32, #tpu.memory_space<vmem>>, vector<1x128x768xf32>
    %372 = vector.shape_cast %371 : vector<1x128x768xf32> to vector<128x768xf32>
    %373 = vector.extract_strided_slice %368 {offsets = [0, 0], sizes = [32, 96], strides = [1, 1]} : vector<32x320xf32> to vector<32x96xf32>
    %374 = vector.extract_strided_slice %1 {offsets = [10, 0], sizes = [1, 96], strides = [1, 1]} : vector<28x384xf32> to vector<1x96xf32>
    %375 = vector.extract_strided_slice %368 {offsets = [0, 96], sizes = [32, 32], strides = [1, 1]} : vector<32x320xf32> to vector<32x32xf32>
    %376 = vector.extract_strided_slice %1 {offsets = [11, 0], sizes = [1, 32], strides = [1, 1]} : vector<28x384xf32> to vector<1x32xf32>
    %cst_105 = arith.constant dense<0.000000e+00> : vector<16x96xf32>
    %377 = tpu.matmul %267, %373, %cst_105 {dimension_numbers = #tpu.dot_dimension_numbers<[1], [0], [0], [1], [0, 0, 1, 1], [], []>} : vector<16x32xf32>, vector<32x96xf32>, vector<16x96xf32> -> vector<16x96xf32>
    %378 = vector.broadcast %374 : vector<1x96xf32> to vector<16x96xf32>
    %379 = arith.addf %377, %378 : vector<16x96xf32>
    %380 = vector.extract_strided_slice %379 {offsets = [0, 0], sizes = [16, 8], strides = [1, 1]} : vector<16x96xf32> to vector<16x8xf32>
    %381 = vector.shape_cast %380 : vector<16x8xf32> to vector<2x8x8xf32>
    %382 = vector.extract_strided_slice %379 {offsets = [0, 32], sizes = [16, 8], strides = [1, 1]} : vector<16x96xf32> to vector<16x8xf32>
    %383 = vector.shape_cast %382 : vector<16x8xf32> to vector<2x8x8xf32>
    %384 = vector.extract_strided_slice %379 {offsets = [0, 64], sizes = [16, 8], strides = [1, 1]} : vector<16x96xf32> to vector<16x8xf32>
    %385 = vector.shape_cast %384 : vector<16x8xf32> to vector<2x8x8xf32>
    "tpu.trace_start"() <{level = 10 : i32, message = "bqd,bkd->bqk"}> : () -> ()
    %cst_106 = arith.constant dense<0.000000e+00> : vector<2x8x8xf32>
    %386 = tpu.matmul %381, %383, %cst_106 {dimension_numbers = #tpu.dot_dimension_numbers<[2], [2], [1], [1], [0, 0, 0, 1, 1, 1], [0], [0]>} : vector<2x8x8xf32>, vector<2x8x8xf32>, vector<2x8x8xf32> -> vector<2x8x8xf32>
    "tpu.trace_stop"() : () -> ()
    %cst_107 = arith.constant 0.353553385 : f32
    %387 = vector.broadcast %cst_107 : f32 to vector<2x8x8xf32>
    %388 = arith.mulf %386, %387 : vector<2x8x8xf32>
    %389 = arith.addf %388, %54 : vector<2x8x8xf32>
    %cst_108 = arith.constant dense<0xFF800000> : vector<2x8xf32>
    %390 = vector.multi_reduction <maximumf>, %389, %cst_108 [2] : vector<2x8x8xf32> to vector<2x8xf32>
    %391 = vector.shape_cast %390 : vector<2x8xf32> to vector<2x8x1xf32>
    %392 = vector.broadcast %391 : vector<2x8x1xf32> to vector<2x8x8xf32>
    %393 = arith.subf %389, %392 : vector<2x8x8xf32>
    %394 = math.exp %393 : vector<2x8x8xf32>
    %cst_109 = arith.constant dense<0.000000e+00> : vector<2x8xf32>
    %395 = vector.multi_reduction <add>, %394, %cst_109 [2] : vector<2x8x8xf32> to vector<2x8xf32>
    %396 = vector.shape_cast %395 : vector<2x8xf32> to vector<2x8x1xf32>
    %397 = tpu.reciprocal %396 {approx = true} : vector<2x8x1xf32> -> vector<2x8x1xf32>
    %398 = vector.broadcast %397 : vector<2x8x1xf32> to vector<2x8x8xf32>
    %399 = arith.mulf %394, %398 : vector<2x8x8xf32>
    "tpu.trace_start"() <{level = 10 : i32, message = "bqk,bkd->bqd"}> : () -> ()
    %cst_110 = arith.constant dense<0.000000e+00> : vector<2x8x8xf32>
    %400 = tpu.matmul %399, %385, %cst_110 {dimension_numbers = #tpu.dot_dimension_numbers<[2], [1], [1], [2], [0, 0, 0, 1, 1, 2], [0], [0]>} : vector<2x8x8xf32>, vector<2x8x8xf32>, vector<2x8x8xf32> -> vector<2x8x8xf32>
    "tpu.trace_stop"() : () -> ()
    %401 = vector.shape_cast %400 : vector<2x8x8xf32> to vector<16x8xf32>
    %402 = vector.extract_strided_slice %375 {offsets = [0, 0], sizes = [8, 32], strides = [1, 1]} : vector<32x32xf32> to vector<8x32xf32>
    %cst_111 = arith.constant dense<0.000000e+00> : vector<16x32xf32>
    %403 = tpu.matmul %401, %402, %cst_111 {dimension_numbers = #tpu.dot_dimension_numbers<[1], [0], [0], [1], [0, 0, 1, 1], [], []>} : vector<16x8xf32>, vector<8x32xf32>, vector<16x32xf32> -> vector<16x32xf32>
    %404 = vector.extract_strided_slice %379 {offsets = [0, 8], sizes = [16, 8], strides = [1, 1]} : vector<16x96xf32> to vector<16x8xf32>
    %405 = vector.shape_cast %404 : vector<16x8xf32> to vector<2x8x8xf32>
    %406 = vector.extract_strided_slice %379 {offsets = [0, 40], sizes = [16, 8], strides = [1, 1]} : vector<16x96xf32> to vector<16x8xf32>
    %407 = vector.shape_cast %406 : vector<16x8xf32> to vector<2x8x8xf32>
    %408 = vector.extract_strided_slice %379 {offsets = [0, 72], sizes = [16, 8], strides = [1, 1]} : vector<16x96xf32> to vector<16x8xf32>
    %409 = vector.shape_cast %408 : vector<16x8xf32> to vector<2x8x8xf32>
    "tpu.trace_start"() <{level = 10 : i32, message = "bqd,bkd->bqk"}> : () -> ()
    %cst_112 = arith.constant dense<0.000000e+00> : vector<2x8x8xf32>
    %410 = tpu.matmul %405, %407, %cst_112 {dimension_numbers = #tpu.dot_dimension_numbers<[2], [2], [1], [1], [0, 0, 0, 1, 1, 1], [0], [0]>} : vector<2x8x8xf32>, vector<2x8x8xf32>, vector<2x8x8xf32> -> vector<2x8x8xf32>
    "tpu.trace_stop"() : () -> ()
    %cst_113 = arith.constant 0.353553385 : f32
    %411 = vector.broadcast %cst_113 : f32 to vector<2x8x8xf32>
    %412 = arith.mulf %410, %411 : vector<2x8x8xf32>
    %413 = arith.addf %412, %54 : vector<2x8x8xf32>
    %cst_114 = arith.constant dense<0xFF800000> : vector<2x8xf32>
    %414 = vector.multi_reduction <maximumf>, %413, %cst_114 [2] : vector<2x8x8xf32> to vector<2x8xf32>
    %415 = vector.shape_cast %414 : vector<2x8xf32> to vector<2x8x1xf32>
    %416 = vector.broadcast %415 : vector<2x8x1xf32> to vector<2x8x8xf32>
    %417 = arith.subf %413, %416 : vector<2x8x8xf32>
    %418 = math.exp %417 : vector<2x8x8xf32>
    %cst_115 = arith.constant dense<0.000000e+00> : vector<2x8xf32>
    %419 = vector.multi_reduction <add>, %418, %cst_115 [2] : vector<2x8x8xf32> to vector<2x8xf32>
    %420 = vector.shape_cast %419 : vector<2x8xf32> to vector<2x8x1xf32>
    %421 = tpu.reciprocal %420 {approx = true} : vector<2x8x1xf32> -> vector<2x8x1xf32>
    %422 = vector.broadcast %421 : vector<2x8x1xf32> to vector<2x8x8xf32>
    %423 = arith.mulf %418, %422 : vector<2x8x8xf32>
    "tpu.trace_start"() <{level = 10 : i32, message = "bqk,bkd->bqd"}> : () -> ()
    %cst_116 = arith.constant dense<0.000000e+00> : vector<2x8x8xf32>
    %424 = tpu.matmul %423, %409, %cst_116 {dimension_numbers = #tpu.dot_dimension_numbers<[2], [1], [1], [2], [0, 0, 0, 1, 1, 2], [0], [0]>} : vector<2x8x8xf32>, vector<2x8x8xf32>, vector<2x8x8xf32> -> vector<2x8x8xf32>
    "tpu.trace_stop"() : () -> ()
    %425 = vector.shape_cast %424 : vector<2x8x8xf32> to vector<16x8xf32>
    %426 = vector.extract_strided_slice %375 {offsets = [8, 0], sizes = [8, 32], strides = [1, 1]} : vector<32x32xf32> to vector<8x32xf32>
    %cst_117 = arith.constant dense<0.000000e+00> : vector<16x32xf32>
    %427 = tpu.matmul %425, %426, %cst_117 {dimension_numbers = #tpu.dot_dimension_numbers<[1], [0], [0], [1], [0, 0, 1, 1], [], []>} : vector<16x8xf32>, vector<8x32xf32>, vector<16x32xf32> -> vector<16x32xf32>
    %428 = arith.addf %403, %427 : vector<16x32xf32>
    %429 = vector.extract_strided_slice %379 {offsets = [0, 16], sizes = [16, 8], strides = [1, 1]} : vector<16x96xf32> to vector<16x8xf32>
    %430 = vector.shape_cast %429 : vector<16x8xf32> to vector<2x8x8xf32>
    %431 = vector.extract_strided_slice %379 {offsets = [0, 48], sizes = [16, 8], strides = [1, 1]} : vector<16x96xf32> to vector<16x8xf32>
    %432 = vector.shape_cast %431 : vector<16x8xf32> to vector<2x8x8xf32>
    %433 = vector.extract_strided_slice %379 {offsets = [0, 80], sizes = [16, 8], strides = [1, 1]} : vector<16x96xf32> to vector<16x8xf32>
    %434 = vector.shape_cast %433 : vector<16x8xf32> to vector<2x8x8xf32>
    "tpu.trace_start"() <{level = 10 : i32, message = "bqd,bkd->bqk"}> : () -> ()
    %cst_118 = arith.constant dense<0.000000e+00> : vector<2x8x8xf32>
    %435 = tpu.matmul %430, %432, %cst_118 {dimension_numbers = #tpu.dot_dimension_numbers<[2], [2], [1], [1], [0, 0, 0, 1, 1, 1], [0], [0]>} : vector<2x8x8xf32>, vector<2x8x8xf32>, vector<2x8x8xf32> -> vector<2x8x8xf32>
    "tpu.trace_stop"() : () -> ()
    %cst_119 = arith.constant 0.353553385 : f32
    %436 = vector.broadcast %cst_119 : f32 to vector<2x8x8xf32>
    %437 = arith.mulf %435, %436 : vector<2x8x8xf32>
    %438 = arith.addf %437, %54 : vector<2x8x8xf32>
    %cst_120 = arith.constant dense<0xFF800000> : vector<2x8xf32>
    %439 = vector.multi_reduction <maximumf>, %438, %cst_120 [2] : vector<2x8x8xf32> to vector<2x8xf32>
    %440 = vector.shape_cast %439 : vector<2x8xf32> to vector<2x8x1xf32>
    %441 = vector.broadcast %440 : vector<2x8x1xf32> to vector<2x8x8xf32>
    %442 = arith.subf %438, %441 : vector<2x8x8xf32>
    %443 = math.exp %442 : vector<2x8x8xf32>
    %cst_121 = arith.constant dense<0.000000e+00> : vector<2x8xf32>
    %444 = vector.multi_reduction <add>, %443, %cst_121 [2] : vector<2x8x8xf32> to vector<2x8xf32>
    %445 = vector.shape_cast %444 : vector<2x8xf32> to vector<2x8x1xf32>
    %446 = tpu.reciprocal %445 {approx = true} : vector<2x8x1xf32> -> vector<2x8x1xf32>
    %447 = vector.broadcast %446 : vector<2x8x1xf32> to vector<2x8x8xf32>
    %448 = arith.mulf %443, %447 : vector<2x8x8xf32>
    "tpu.trace_start"() <{level = 10 : i32, message = "bqk,bkd->bqd"}> : () -> ()
    %cst_122 = arith.constant dense<0.000000e+00> : vector<2x8x8xf32>
    %449 = tpu.matmul %448, %434, %cst_122 {dimension_numbers = #tpu.dot_dimension_numbers<[2], [1], [1], [2], [0, 0, 0, 1, 1, 2], [0], [0]>} : vector<2x8x8xf32>, vector<2x8x8xf32>, vector<2x8x8xf32> -> vector<2x8x8xf32>
    "tpu.trace_stop"() : () -> ()
    %450 = vector.shape_cast %449 : vector<2x8x8xf32> to vector<16x8xf32>
    %451 = vector.extract_strided_slice %375 {offsets = [16, 0], sizes = [8, 32], strides = [1, 1]} : vector<32x32xf32> to vector<8x32xf32>
    %cst_123 = arith.constant dense<0.000000e+00> : vector<16x32xf32>
    %452 = tpu.matmul %450, %451, %cst_123 {dimension_numbers = #tpu.dot_dimension_numbers<[1], [0], [0], [1], [0, 0, 1, 1], [], []>} : vector<16x8xf32>, vector<8x32xf32>, vector<16x32xf32> -> vector<16x32xf32>
    %453 = arith.addf %428, %452 : vector<16x32xf32>
    %454 = vector.extract_strided_slice %379 {offsets = [0, 24], sizes = [16, 8], strides = [1, 1]} : vector<16x96xf32> to vector<16x8xf32>
    %455 = vector.shape_cast %454 : vector<16x8xf32> to vector<2x8x8xf32>
    %456 = vector.extract_strided_slice %379 {offsets = [0, 56], sizes = [16, 8], strides = [1, 1]} : vector<16x96xf32> to vector<16x8xf32>
    %457 = vector.shape_cast %456 : vector<16x8xf32> to vector<2x8x8xf32>
    %458 = vector.extract_strided_slice %379 {offsets = [0, 88], sizes = [16, 8], strides = [1, 1]} : vector<16x96xf32> to vector<16x8xf32>
    %459 = vector.shape_cast %458 : vector<16x8xf32> to vector<2x8x8xf32>
    "tpu.trace_start"() <{level = 10 : i32, message = "bqd,bkd->bqk"}> : () -> ()
    %cst_124 = arith.constant dense<0.000000e+00> : vector<2x8x8xf32>
    %460 = tpu.matmul %455, %457, %cst_124 {dimension_numbers = #tpu.dot_dimension_numbers<[2], [2], [1], [1], [0, 0, 0, 1, 1, 1], [0], [0]>} : vector<2x8x8xf32>, vector<2x8x8xf32>, vector<2x8x8xf32> -> vector<2x8x8xf32>
    "tpu.trace_stop"() : () -> ()
    %cst_125 = arith.constant 0.353553385 : f32
    %461 = vector.broadcast %cst_125 : f32 to vector<2x8x8xf32>
    %462 = arith.mulf %460, %461 : vector<2x8x8xf32>
    %463 = arith.addf %462, %54 : vector<2x8x8xf32>
    %cst_126 = arith.constant dense<0xFF800000> : vector<2x8xf32>
    %464 = vector.multi_reduction <maximumf>, %463, %cst_126 [2] : vector<2x8x8xf32> to vector<2x8xf32>
    %465 = vector.shape_cast %464 : vector<2x8xf32> to vector<2x8x1xf32>
    %466 = vector.broadcast %465 : vector<2x8x1xf32> to vector<2x8x8xf32>
    %467 = arith.subf %463, %466 : vector<2x8x8xf32>
    %468 = math.exp %467 : vector<2x8x8xf32>
    %cst_127 = arith.constant dense<0.000000e+00> : vector<2x8xf32>
    %469 = vector.multi_reduction <add>, %468, %cst_127 [2] : vector<2x8x8xf32> to vector<2x8xf32>
    %470 = vector.shape_cast %469 : vector<2x8xf32> to vector<2x8x1xf32>
    %471 = tpu.reciprocal %470 {approx = true} : vector<2x8x1xf32> -> vector<2x8x1xf32>
    %472 = vector.broadcast %471 : vector<2x8x1xf32> to vector<2x8x8xf32>
    %473 = arith.mulf %468, %472 : vector<2x8x8xf32>
    "tpu.trace_start"() <{level = 10 : i32, message = "bqk,bkd->bqd"}> : () -> ()
    %cst_128 = arith.constant dense<0.000000e+00> : vector<2x8x8xf32>
    %474 = tpu.matmul %473, %459, %cst_128 {dimension_numbers = #tpu.dot_dimension_numbers<[2], [1], [1], [2], [0, 0, 0, 1, 1, 2], [0], [0]>} : vector<2x8x8xf32>, vector<2x8x8xf32>, vector<2x8x8xf32> -> vector<2x8x8xf32>
    "tpu.trace_stop"() : () -> ()
    %475 = vector.shape_cast %474 : vector<2x8x8xf32> to vector<16x8xf32>
    %476 = vector.extract_strided_slice %375 {offsets = [24, 0], sizes = [8, 32], strides = [1, 1]} : vector<32x32xf32> to vector<8x32xf32>
    %cst_129 = arith.constant dense<0.000000e+00> : vector<16x32xf32>
    %477 = tpu.matmul %475, %476, %cst_129 {dimension_numbers = #tpu.dot_dimension_numbers<[1], [0], [0], [1], [0, 0, 1, 1], [], []>} : vector<16x8xf32>, vector<8x32xf32>, vector<16x32xf32> -> vector<16x32xf32>
    %478 = arith.addf %453, %477 : vector<16x32xf32>
    %479 = vector.broadcast %376 : vector<1x32xf32> to vector<16x32xf32>
    %480 = arith.addf %478, %479 : vector<16x32xf32>
    %481 = arith.addf %480, %267 : vector<16x32xf32>
    %482 = vector.extract_strided_slice %1 {offsets = [12, 0], sizes = [1, 32], strides = [1, 1]} : vector<28x384xf32> to vector<1x32xf32>
    %483 = vector.extract_strided_slice %1 {offsets = [13, 0], sizes = [1, 32], strides = [1, 1]} : vector<28x384xf32> to vector<1x32xf32>
    %cst_130 = arith.constant dense<0.000000e+00> : vector<16xf32>
    %484 = vector.multi_reduction <add>, %481, %cst_130 [1] : vector<16x32xf32> to vector<16xf32>
    %485 = vector.shape_cast %484 : vector<16xf32> to vector<16x1xf32>
    %cst_131 = arith.constant 3.200000e+01 : f32
    %486 = vector.broadcast %cst_131 : f32 to vector<16x1xf32>
    %487 = arith.divf %485, %486 : vector<16x1xf32>
    %488 = vector.broadcast %487 : vector<16x1xf32> to vector<16x32xf32>
    %489 = arith.subf %481, %488 : vector<16x32xf32>
    %490 = arith.mulf %489, %489 : vector<16x32xf32>
    %cst_132 = arith.constant dense<0.000000e+00> : vector<16xf32>
    %491 = vector.multi_reduction <add>, %490, %cst_132 [1] : vector<16x32xf32> to vector<16xf32>
    %492 = vector.shape_cast %491 : vector<16xf32> to vector<16x1xf32>
    %cst_133 = arith.constant 3.200000e+01 : f32
    %493 = vector.broadcast %cst_133 : f32 to vector<16x1xf32>
    %494 = arith.divf %492, %493 : vector<16x1xf32>
    %495 = vector.broadcast %487 : vector<16x1xf32> to vector<16x32xf32>
    %496 = arith.subf %481, %495 : vector<16x32xf32>
    %cst_134 = arith.constant 9.99999997E-7 : f32
    %497 = vector.broadcast %cst_134 : f32 to vector<16x1xf32>
    %498 = arith.addf %494, %497 : vector<16x1xf32>
    %499 = math.rsqrt %498 : vector<16x1xf32>
    %500 = vector.broadcast %499 : vector<16x1xf32> to vector<16x32xf32>
    %501 = arith.mulf %496, %500 : vector<16x32xf32>
    %502 = vector.broadcast %482 : vector<1x32xf32> to vector<16x32xf32>
    %503 = arith.mulf %501, %502 : vector<16x32xf32>
    %504 = vector.broadcast %483 : vector<1x32xf32> to vector<16x32xf32>
    %505 = arith.addf %503, %504 : vector<16x32xf32>
    %506 = vector.extract_strided_slice %368 {offsets = [0, 256], sizes = [32, 64], strides = [1, 1]} : vector<32x320xf32> to vector<32x64xf32>
    %cst_135 = arith.constant dense<0.000000e+00> : vector<16x64xf32>
    %507 = tpu.matmul %505, %506, %cst_135 {dimension_numbers = #tpu.dot_dimension_numbers<[1], [0], [0], [1], [0, 0, 1, 1], [], []>} : vector<16x32xf32>, vector<32x64xf32>, vector<16x64xf32> -> vector<16x64xf32>
    %508 = vector.extract_strided_slice %1 {offsets = [14, 0], sizes = [1, 64], strides = [1, 1]} : vector<28x384xf32> to vector<1x64xf32>
    %509 = vector.broadcast %508 : vector<1x64xf32> to vector<16x64xf32>
    %510 = arith.addf %507, %509 : vector<16x64xf32>
    %cst_136 = arith.constant 5.000000e-01 : f32
    %511 = vector.broadcast %cst_136 : f32 to vector<16x64xf32>
    %512 = arith.mulf %511, %510 : vector<16x64xf32>
    %cst_137 = arith.constant 0.707106769 : f32
    %513 = vector.broadcast %cst_137 : f32 to vector<16x64xf32>
    %514 = arith.mulf %510, %513 : vector<16x64xf32>
    %515 = math.absf %514 : vector<16x64xf32>
    %cst_138 = arith.constant 0.327591091 : f32
    %516 = vector.broadcast %cst_138 : f32 to vector<16x64xf32>
    %517 = arith.mulf %516, %515 : vector<16x64xf32>
    %cst_139 = arith.constant 1.000000e+00 : f32
    %518 = vector.broadcast %cst_139 : f32 to vector<16x64xf32>
    %519 = arith.addf %518, %517 : vector<16x64xf32>
    %cst_140 = arith.constant 1.000000e+00 : f32
    %520 = vector.broadcast %cst_140 : f32 to vector<16x64xf32>
    %521 = arith.divf %520, %519 : vector<16x64xf32>
    %cst_141 = arith.constant 1.06140542 : f32
    %522 = vector.broadcast %cst_141 : f32 to vector<16x64xf32>
    %523 = arith.mulf %522, %521 : vector<16x64xf32>
    %cst_142 = arith.constant -1.45315206 : f32
    %524 = vector.broadcast %cst_142 : f32 to vector<16x64xf32>
    %525 = arith.addf %523, %524 : vector<16x64xf32>
    %526 = arith.mulf %525, %521 : vector<16x64xf32>
    %cst_143 = arith.constant 1.42141378 : f32
    %527 = vector.broadcast %cst_143 : f32 to vector<16x64xf32>
    %528 = arith.addf %526, %527 : vector<16x64xf32>
    %529 = arith.mulf %528, %521 : vector<16x64xf32>
    %cst_144 = arith.constant -0.284496725 : f32
    %530 = vector.broadcast %cst_144 : f32 to vector<16x64xf32>
    %531 = arith.addf %529, %530 : vector<16x64xf32>
    %532 = arith.mulf %531, %521 : vector<16x64xf32>
    %cst_145 = arith.constant 0.254829586 : f32
    %533 = vector.broadcast %cst_145 : f32 to vector<16x64xf32>
    %534 = arith.addf %532, %533 : vector<16x64xf32>
    %535 = arith.mulf %534, %521 : vector<16x64xf32>
    %cst_146 = arith.constant 0.000000e+00 : f32
    %536 = vector.broadcast %cst_146 : f32 to vector<16x64xf32>
    %537 = arith.subf %536, %515 : vector<16x64xf32>
    %538 = arith.mulf %537, %515 : vector<16x64xf32>
    %539 = math.exp %538 : vector<16x64xf32>
    %540 = arith.mulf %535, %539 : vector<16x64xf32>
    %cst_147 = arith.constant 1.000000e+00 : f32
    %541 = vector.broadcast %cst_147 : f32 to vector<16x64xf32>
    %542 = arith.subf %541, %540 : vector<16x64xf32>
    %cst_148 = arith.constant 0.000000e+00 : f32
    %543 = vector.broadcast %cst_148 : f32 to vector<16x64xf32>
    %544 = arith.cmpf oge, %514, %543 : vector<16x64xf32>
    %cst_149 = arith.constant 0.000000e+00 : f32
    %545 = vector.broadcast %cst_149 : f32 to vector<16x64xf32>
    %546 = arith.subf %545, %542 : vector<16x64xf32>
    %547 = arith.select %544, %542, %546 : vector<16x64xi1>, vector<16x64xf32>
    %cst_150 = arith.constant 1.000000e+00 : f32
    %548 = vector.broadcast %cst_150 : f32 to vector<16x64xf32>
    %549 = arith.addf %548, %547 : vector<16x64xf32>
    %550 = arith.mulf %512, %549 : vector<16x64xf32>
    %cst_151 = arith.constant dense<0.000000e+00> : vector<16x32xf32>
    %551 = tpu.matmul %550, %370, %cst_151 {dimension_numbers = #tpu.dot_dimension_numbers<[1], [0], [0], [1], [0, 0, 1, 1], [], []>} : vector<16x64xf32>, vector<64x32xf32>, vector<16x32xf32> -> vector<16x32xf32>
    %552 = vector.extract_strided_slice %1 {offsets = [15, 0], sizes = [1, 32], strides = [1, 1]} : vector<28x384xf32> to vector<1x32xf32>
    %553 = vector.broadcast %552 : vector<1x32xf32> to vector<16x32xf32>
    %554 = arith.addf %551, %553 : vector<16x32xf32>
    %555 = arith.addf %554, %505 : vector<16x32xf32>
    %556 = vector.extract_strided_slice %1 {offsets = [16, 0], sizes = [1, 32], strides = [1, 1]} : vector<28x384xf32> to vector<1x32xf32>
    %557 = vector.extract_strided_slice %1 {offsets = [17, 0], sizes = [1, 32], strides = [1, 1]} : vector<28x384xf32> to vector<1x32xf32>
    %cst_152 = arith.constant dense<0.000000e+00> : vector<16xf32>
    %558 = vector.multi_reduction <add>, %555, %cst_152 [1] : vector<16x32xf32> to vector<16xf32>
    %559 = vector.shape_cast %558 : vector<16xf32> to vector<16x1xf32>
    %cst_153 = arith.constant 3.200000e+01 : f32
    %560 = vector.broadcast %cst_153 : f32 to vector<16x1xf32>
    %561 = arith.divf %559, %560 : vector<16x1xf32>
    %562 = vector.broadcast %561 : vector<16x1xf32> to vector<16x32xf32>
    %563 = arith.subf %555, %562 : vector<16x32xf32>
    %564 = arith.mulf %563, %563 : vector<16x32xf32>
    %cst_154 = arith.constant dense<0.000000e+00> : vector<16xf32>
    %565 = vector.multi_reduction <add>, %564, %cst_154 [1] : vector<16x32xf32> to vector<16xf32>
    %566 = vector.shape_cast %565 : vector<16xf32> to vector<16x1xf32>
    %cst_155 = arith.constant 3.200000e+01 : f32
    %567 = vector.broadcast %cst_155 : f32 to vector<16x1xf32>
    %568 = arith.divf %566, %567 : vector<16x1xf32>
    %569 = vector.broadcast %561 : vector<16x1xf32> to vector<16x32xf32>
    %570 = arith.subf %555, %569 : vector<16x32xf32>
    %cst_156 = arith.constant 9.99999997E-7 : f32
    %571 = vector.broadcast %cst_156 : f32 to vector<16x1xf32>
    %572 = arith.addf %568, %571 : vector<16x1xf32>
    %573 = math.rsqrt %572 : vector<16x1xf32>
    %574 = vector.broadcast %573 : vector<16x1xf32> to vector<16x32xf32>
    %575 = arith.mulf %570, %574 : vector<16x32xf32>
    %576 = vector.broadcast %556 : vector<1x32xf32> to vector<16x32xf32>
    %577 = arith.mulf %575, %576 : vector<16x32xf32>
    %578 = vector.broadcast %557 : vector<1x32xf32> to vector<16x32xf32>
    %579 = arith.addf %577, %578 : vector<16x32xf32>
    %580 = vector.extract_strided_slice %368 {offsets = [0, 128], sizes = [32, 128], strides = [1, 1]} : vector<32x320xf32> to vector<32x128xf32>
    %cst_157 = arith.constant dense<0.000000e+00> : vector<16x128xf32>
    %581 = tpu.matmul %579, %580, %cst_157 {dimension_numbers = #tpu.dot_dimension_numbers<[1], [0], [0], [1], [0, 0, 1, 1], [], []>} : vector<16x32xf32>, vector<32x128xf32>, vector<16x128xf32> -> vector<16x128xf32>
    %582 = vector.extract_strided_slice %1 {offsets = [23, 0], sizes = [1, 128], strides = [1, 1]} : vector<28x384xf32> to vector<1x128xf32>
    %583 = vector.broadcast %582 : vector<1x128xf32> to vector<16x128xf32>
    %584 = arith.addf %581, %583 : vector<16x128xf32>
    %585 = math.tanh %584 : vector<16x128xf32>
    %586 = vector.extract_strided_slice %372 {offsets = [0, 0], sizes = [128, 384], strides = [1, 1]} : vector<128x768xf32> to vector<128x384xf32>
    %587 = vector.extract_strided_slice %1 {offsets = [24, 0], sizes = [1, 384], strides = [1, 1]} : vector<28x384xf32> to vector<1x384xf32>
    %588 = vector.extract_strided_slice %372 {offsets = [0, 384], sizes = [128, 128], strides = [1, 1]} : vector<128x768xf32> to vector<128x128xf32>
    %589 = vector.extract_strided_slice %1 {offsets = [25, 0], sizes = [1, 128], strides = [1, 1]} : vector<28x384xf32> to vector<1x128xf32>
    %cst_158 = arith.constant dense<0.000000e+00> : vector<16x384xf32>
    %590 = tpu.matmul %585, %586, %cst_158 {dimension_numbers = #tpu.dot_dimension_numbers<[1], [0], [0], [1], [0, 0, 1, 1], [], []>} : vector<16x128xf32>, vector<128x384xf32>, vector<16x384xf32> -> vector<16x384xf32>
    %591 = vector.broadcast %587 : vector<1x384xf32> to vector<16x384xf32>
    %592 = arith.addf %590, %591 : vector<16x384xf32>
    %593 = vector.extract_strided_slice %592 {offsets = [0, 0], sizes = [16, 64], strides = [1, 1]} : vector<16x384xf32> to vector<16x64xf32>
    %594 = vector.shape_cast %593 : vector<16x64xf32> to vector<2x8x64xf32>
    %595 = vector.extract_strided_slice %592 {offsets = [0, 128], sizes = [16, 64], strides = [1, 1]} : vector<16x384xf32> to vector<16x64xf32>
    %596 = vector.shape_cast %595 : vector<16x64xf32> to vector<2x8x64xf32>
    %597 = vector.extract_strided_slice %592 {offsets = [0, 256], sizes = [16, 64], strides = [1, 1]} : vector<16x384xf32> to vector<16x64xf32>
    %598 = vector.shape_cast %597 : vector<16x64xf32> to vector<2x8x64xf32>
    "tpu.trace_start"() <{level = 10 : i32, message = "bqd,bkd->bqk"}> : () -> ()
    %cst_159 = arith.constant dense<0.000000e+00> : vector<2x8x8xf32>
    %599 = tpu.matmul %594, %596, %cst_159 {dimension_numbers = #tpu.dot_dimension_numbers<[2], [2], [1], [1], [0, 0, 0, 1, 1, 1], [0], [0]>} : vector<2x8x64xf32>, vector<2x8x64xf32>, vector<2x8x8xf32> -> vector<2x8x8xf32>
    "tpu.trace_stop"() : () -> ()
    %cst_160 = arith.constant 1.250000e-01 : f32
    %600 = vector.broadcast %cst_160 : f32 to vector<2x8x8xf32>
    %601 = arith.mulf %599, %600 : vector<2x8x8xf32>
    %602 = arith.addf %601, %54 : vector<2x8x8xf32>
    %cst_161 = arith.constant dense<0xFF800000> : vector<2x8xf32>
    %603 = vector.multi_reduction <maximumf>, %602, %cst_161 [2] : vector<2x8x8xf32> to vector<2x8xf32>
    %604 = vector.shape_cast %603 : vector<2x8xf32> to vector<2x8x1xf32>
    %605 = vector.broadcast %604 : vector<2x8x1xf32> to vector<2x8x8xf32>
    %606 = arith.subf %602, %605 : vector<2x8x8xf32>
    %607 = math.exp %606 : vector<2x8x8xf32>
    %cst_162 = arith.constant dense<0.000000e+00> : vector<2x8xf32>
    %608 = vector.multi_reduction <add>, %607, %cst_162 [2] : vector<2x8x8xf32> to vector<2x8xf32>
    %609 = vector.shape_cast %608 : vector<2x8xf32> to vector<2x8x1xf32>
    %610 = tpu.reciprocal %609 {approx = true} : vector<2x8x1xf32> -> vector<2x8x1xf32>
    %611 = vector.broadcast %610 : vector<2x8x1xf32> to vector<2x8x8xf32>
    %612 = arith.mulf %607, %611 : vector<2x8x8xf32>
    "tpu.trace_start"() <{level = 10 : i32, message = "bqk,bkd->bqd"}> : () -> ()
    %cst_163 = arith.constant dense<0.000000e+00> : vector<2x8x64xf32>
    %613 = tpu.matmul %612, %598, %cst_163 {dimension_numbers = #tpu.dot_dimension_numbers<[2], [1], [1], [2], [0, 0, 0, 1, 1, 2], [0], [0]>} : vector<2x8x8xf32>, vector<2x8x64xf32>, vector<2x8x64xf32> -> vector<2x8x64xf32>
    "tpu.trace_stop"() : () -> ()
    %614 = vector.shape_cast %613 : vector<2x8x64xf32> to vector<16x64xf32>
    %615 = vector.extract_strided_slice %588 {offsets = [0, 0], sizes = [64, 128], strides = [1, 1]} : vector<128x128xf32> to vector<64x128xf32>
    %cst_164 = arith.constant dense<0.000000e+00> : vector<16x128xf32>
    %616 = tpu.matmul %614, %615, %cst_164 {dimension_numbers = #tpu.dot_dimension_numbers<[1], [0], [0], [1], [0, 0, 1, 1], [], []>} : vector<16x64xf32>, vector<64x128xf32>, vector<16x128xf32> -> vector<16x128xf32>
    %617 = vector.extract_strided_slice %592 {offsets = [0, 64], sizes = [16, 64], strides = [1, 1]} : vector<16x384xf32> to vector<16x64xf32>
    %618 = vector.shape_cast %617 : vector<16x64xf32> to vector<2x8x64xf32>
    %619 = vector.extract_strided_slice %592 {offsets = [0, 192], sizes = [16, 64], strides = [1, 1]} : vector<16x384xf32> to vector<16x64xf32>
    %620 = vector.shape_cast %619 : vector<16x64xf32> to vector<2x8x64xf32>
    %621 = vector.extract_strided_slice %592 {offsets = [0, 320], sizes = [16, 64], strides = [1, 1]} : vector<16x384xf32> to vector<16x64xf32>
    %622 = vector.shape_cast %621 : vector<16x64xf32> to vector<2x8x64xf32>
    "tpu.trace_start"() <{level = 10 : i32, message = "bqd,bkd->bqk"}> : () -> ()
    %cst_165 = arith.constant dense<0.000000e+00> : vector<2x8x8xf32>
    %623 = tpu.matmul %618, %620, %cst_165 {dimension_numbers = #tpu.dot_dimension_numbers<[2], [2], [1], [1], [0, 0, 0, 1, 1, 1], [0], [0]>} : vector<2x8x64xf32>, vector<2x8x64xf32>, vector<2x8x8xf32> -> vector<2x8x8xf32>
    "tpu.trace_stop"() : () -> ()
    %cst_166 = arith.constant 1.250000e-01 : f32
    %624 = vector.broadcast %cst_166 : f32 to vector<2x8x8xf32>
    %625 = arith.mulf %623, %624 : vector<2x8x8xf32>
    %626 = arith.addf %625, %54 : vector<2x8x8xf32>
    %cst_167 = arith.constant dense<0xFF800000> : vector<2x8xf32>
    %627 = vector.multi_reduction <maximumf>, %626, %cst_167 [2] : vector<2x8x8xf32> to vector<2x8xf32>
    %628 = vector.shape_cast %627 : vector<2x8xf32> to vector<2x8x1xf32>
    %629 = vector.broadcast %628 : vector<2x8x1xf32> to vector<2x8x8xf32>
    %630 = arith.subf %626, %629 : vector<2x8x8xf32>
    %631 = math.exp %630 : vector<2x8x8xf32>
    %cst_168 = arith.constant dense<0.000000e+00> : vector<2x8xf32>
    %632 = vector.multi_reduction <add>, %631, %cst_168 [2] : vector<2x8x8xf32> to vector<2x8xf32>
    %633 = vector.shape_cast %632 : vector<2x8xf32> to vector<2x8x1xf32>
    %634 = tpu.reciprocal %633 {approx = true} : vector<2x8x1xf32> -> vector<2x8x1xf32>
    %635 = vector.broadcast %634 : vector<2x8x1xf32> to vector<2x8x8xf32>
    %636 = arith.mulf %631, %635 : vector<2x8x8xf32>
    "tpu.trace_start"() <{level = 10 : i32, message = "bqk,bkd->bqd"}> : () -> ()
    %cst_169 = arith.constant dense<0.000000e+00> : vector<2x8x64xf32>
    %637 = tpu.matmul %636, %622, %cst_169 {dimension_numbers = #tpu.dot_dimension_numbers<[2], [1], [1], [2], [0, 0, 0, 1, 1, 2], [0], [0]>} : vector<2x8x8xf32>, vector<2x8x64xf32>, vector<2x8x64xf32> -> vector<2x8x64xf32>
    "tpu.trace_stop"() : () -> ()
    %638 = vector.shape_cast %637 : vector<2x8x64xf32> to vector<16x64xf32>
    %639 = vector.extract_strided_slice %588 {offsets = [64, 0], sizes = [64, 128], strides = [1, 1]} : vector<128x128xf32> to vector<64x128xf32>
    %cst_170 = arith.constant dense<0.000000e+00> : vector<16x128xf32>
    %640 = tpu.matmul %638, %639, %cst_170 {dimension_numbers = #tpu.dot_dimension_numbers<[1], [0], [0], [1], [0, 0, 1, 1], [], []>} : vector<16x64xf32>, vector<64x128xf32>, vector<16x128xf32> -> vector<16x128xf32>
    %641 = arith.addf %616, %640 : vector<16x128xf32>
    %642 = vector.broadcast %589 : vector<1x128xf32> to vector<16x128xf32>
    %643 = arith.addf %641, %642 : vector<16x128xf32>
    %644 = vector.shape_cast %643 : vector<16x128xf32> to vector<2x8x128xf32>
    %645 = vector.extract_strided_slice %644 {offsets = [0, 0, 0], sizes = [2, 1, 128], strides = [1, 1, 1]} : vector<2x8x128xf32> to vector<2x1x128xf32>
    %646 = vector.shape_cast %645 : vector<2x1x128xf32> to vector<2x128xf32>
    %647 = vector.extract_strided_slice %372 {offsets = [0, 512], sizes = [128, 128], strides = [1, 1]} : vector<128x768xf32> to vector<128x128xf32>
    %cst_171 = arith.constant dense<0.000000e+00> : vector<2x128xf32>
    %648 = tpu.matmul %646, %647, %cst_171 {dimension_numbers = #tpu.dot_dimension_numbers<[1], [0], [0], [1], [0, 0, 1, 1], [], []>} : vector<2x128xf32>, vector<128x128xf32>, vector<2x128xf32> -> vector<2x128xf32>
    %649 = vector.extract_strided_slice %1 {offsets = [26, 0], sizes = [1, 128], strides = [1, 1]} : vector<28x384xf32> to vector<1x128xf32>
    %650 = vector.broadcast %649 : vector<1x128xf32> to vector<2x128xf32>
    %651 = arith.addf %648, %650 : vector<2x128xf32>
    %652 = math.tanh %651 : vector<2x128xf32>
    %653 = vector.extract_strided_slice %372 {offsets = [0, 640], sizes = [128, 128], strides = [1, 1]} : vector<128x768xf32> to vector<128x128xf32>
    %cst_172 = arith.constant dense<0.000000e+00> : vector<2x128xf32>
    %654 = tpu.matmul %652, %653, %cst_172 {dimension_numbers = #tpu.dot_dimension_numbers<[1], [0], [0], [1], [0, 0, 1, 1], [], []>} : vector<2x128xf32>, vector<128x128xf32>, vector<2x128xf32> -> vector<2x128xf32>
    %655 = vector.extract_strided_slice %1 {offsets = [27, 0], sizes = [1, 128], strides = [1, 1]} : vector<28x384xf32> to vector<1x128xf32>
    %656 = vector.broadcast %655 : vector<1x128xf32> to vector<2x128xf32>
    %657 = arith.addf %654, %656 : vector<2x128xf32>
    %658 = vector.shape_cast %366 : vector<2x1xi1> to vector<2x1xi1>
    %659 = vector.broadcast %658 : vector<2x1xi1> to vector<2x128xi1>
    %660 = arith.select %659, %345, %657 : vector<2x128xi1>, vector<2x128xf32>
    %c0_173 = arith.constant 0 : index
    %c0_174 = arith.constant 0 : index
    %661 = vector.load %arg7[%c0_173, %c0_174] : memref<2x128xf32, #tpu.memory_space<vmem>>, vector<2x128xf32>
    tpu.vector_store %arg7[%c0_173, %c0_174], %660 {strides = array<i32>} : memref<2x128xf32, #tpu.memory_space<vmem>>, vector<2x128xf32>,
    return
  }
}

</mosaic_0001>

<bundles_post_ra>
// kernel: fastbert_forward.1
= control target key start
LH: loop header
LB: loop body
LE: loop exit
PB: predicated region body
PF: predicated region fallthrough
CT: control target
= control target key end

     0   :  { %12 = vsyncpa [#allocation3], 0  ;;  %s10099_s0 = inlined_call_operand.vmem [shape: s32[16,3], index: 0, kind: input, shape index: {}]   ;;  %s10100_s1 = inlined_call_operand.vmem [shape: s32[2,8], index: 1, kind: input, shape index: {}]   ;;  %s10101_s2 = inlined_call_operand.hbm [shape: f32[615,32], index: 2, kind: input, shape index: {}]   ;;  %s10102_s3 = inlined_call_operand.hbm [shape: f32[2,32,320], index: 3, kind: input, shape index: {}]   ;;  %s10103_s4 = inlined_call_operand.hbm [shape: f32[2,64,32], index: 4, kind: input, shape index: {}]   ;;  %s10104_s5 = inlined_call_operand.hbm [shape: f32[2,128,768], index: 5, kind: input, shape index: {}]   ;;  %s10105_s6 = inlined_call_operand.hbm [shape: f32[28,384], index: 6, kind: input, shape index: {}]   ;;  %s10106_s7 = inlined_call_operand.hbm [shape: f32[2,128], index: 7, kind: output, shape index: {}]  }
   0x1   :  { %13 = vsyncpa [#allocation6], 0 }
   0x2   :  { %14 = vsyncpa [#allocation9], 0 }
   0x3   :  { %15 = vsyncpa [#allocation4], 0  ;;  %s9086_s24 = smov [#allocation5]  }
   0x4   :  { %s37_s25 = sshll.u32 %s9086_s24, 4  ;;  %s38_s25 = int_to_ptr.vmem [resolvable:$true] %s37_s25 }
   0x5   :  { %s8966_s26 = scalar_lea.vmem %s38_s25, 3072  ;;  %p8971_p1 = scmp.lt.s32.totalorder %s38_s25, %s38_s25 }
   0x6   :  { %p8967_p0 = scmp.ne.s32.totalorder %s38_s25, %s8966_s26  ;;  %p8972_p2 = scmp.lt.s32.totalorder %s8966_s26, %s8966_s26 }
   0x8   :  { %p8973_p3 = por %p8972_p2, %p8971_p1 }
   0xa   :  { %p8974_p4 = pnand %p8973_p3, %p8967_p0 }
   0xc   :  { %8977 = shalt.err (!%p8974_p4)
}
   0xd   :  { %s9087_s27 = smov 384   ;;  %s9088_s28 = smov 24  }
   0xe   :  { %43 = dma.hbm_to_vmem [thread:$0]  %s10102_s3, 3072, %s38_s25, [#allocation6], %s9087_s27, %s9087_s27, %s9088_s28  }
   0xf   :  { %s9089_s8 = smov [#allocation8]  }
  0x10   :  { %s61_s9 = sshll.u32 %s9089_s8, 4  ;;  %s62_s9 = int_to_ptr.vmem [resolvable:$true] %s61_s9 }
  0x11   :  { %s8986_s10 = scalar_lea.vmem %s62_s9, 24576  ;;  %p8991_p6 = scmp.lt.s32.totalorder %s62_s9, %s62_s9 }
  0x12   :  { %p8987_p5 = scmp.ne.s32.totalorder %s62_s9, %s8986_s10  ;;  %p8992_p7 = scmp.lt.s32.totalorder %s8986_s10, %s8986_s10 }
  0x14   :  { %p8993_p8 = por %p8992_p7, %p8991_p6 }
  0x16   :  { %p8994_p9 = pnand %p8993_p8, %p8987_p5 }
  0x18   :  { %8997 = shalt.err (!%p8994_p9)
}
  0x19   :  { %s9090_s11 = smov 768   ;;  %s9091_s12 = smov 48  }
  0x1a   :  { %67 = dma.hbm_to_vmem [thread:$0]  %s10104_s5, 24576, %s62_s9, [#allocation9], %s9090_s11, %s9090_s11, %s9091_s12  }
  0x1b   :  { %s9092_s15 = smov [#allocation2]  }
  0x1c   :  { %s25_s16 = sshll.u32 %s9092_s15, 4  ;;  %s26_s16 = int_to_ptr.vmem [resolvable:$true] %s25_s16 }
  0x1d   :  { %s9006_s3 = scalar_lea.vmem %s26_s16, 9856  ;;  %p9011_p11 = scmp.lt.s32.totalorder %s26_s16, %s26_s16 }
  0x1e   :  { %p9007_p10 = scmp.ne.s32.totalorder %s26_s16, %s9006_s3  ;;  %p9012_p12 = scmp.lt.s32.totalorder %s9006_s3, %s9006_s3 }
  0x20   :  { %p9013_p13 = por %p9012_p12, %p9011_p11 }
  0x22   :  { %p9014_p0 = pnand %p9013_p13, %p9007_p10 }
  0x24   :  { %9017 = shalt.err (!%p9014_p0)
}
  0x25   :  { %s9093_s17 = smov 128   ;;  %s9094_s18 = smov 8  }
  0x26   :  { %31 = dma.hbm_to_vmem [thread:$0]  %s10101_s2, 9856, %s26_s16, [#allocation3], %s9093_s17, %s9093_s17, %s9094_s18  }
  0x27   :  { %s9095_s21 = smov [#allocation7]   ;;  %s9096_s5 = smov [#allocation10]  }
  0x28   :  { %s49_s22 = sshll.u32 %s9095_s21, 4  ;;  %s73_s23 = sshll.u32 %s9096_s5, 4  ;;  %s50_s22 = int_to_ptr.vmem [resolvable:$true] %s49_s22  ;;  %s74_s23 = int_to_ptr.vmem [resolvable:$true] %s73_s23 }
  0x29   :  { %s9026_s24 = scalar_lea.vmem %s50_s22, 2048  ;;  %p9031_p2 = scmp.lt.s32.totalorder %s50_s22, %s50_s22 }
  0x2a   :  { %p9027_p1 = scmp.ne.s32.totalorder %s50_s22, %s9026_s24  ;;  %p9032_p3 = scmp.lt.s32.totalorder %s9026_s24, %s9026_s24 }
  0x2c   :  { %p9033_p4 = por %p9032_p3, %p9031_p2 }
  0x2e   :  { %p9034_p5 = pnand %p9033_p4, %p9027_p1 }
  0x30   :  { %9037 = shalt.err (!%p9034_p5)
}
  0x31   :  { %55 = dma.hbm_to_vmem [thread:$0]  %s10103_s4, 2048, %s50_s22, [#allocation6], %s9093_s17, %s9093_s17, %s9094_s18  }
  0x32   :  { %s9046_s29 = scalar_lea.vmem %s74_s23, 1536  ;;  %p9051_p7 = scmp.lt.s32.totalorder %s74_s23, %s74_s23 }
  0x33   :  { %p9047_p6 = scmp.ne.s32.totalorder %s74_s23, %s9046_s29  ;;  %p9052_p8 = scmp.lt.s32.totalorder %s9046_s29, %s9046_s29 }
  0x35   :  { %p9053_p9 = por %p9052_p8, %p9051_p7 }
  0x37   :  { %p9054_p10 = pnand %p9053_p9, %p9047_p6 }
  0x39   :  { %9057 = shalt.err (!%p9054_p10)
}
  0x3a   :  { %79 = dma.hbm_to_vmem [thread:$0]  %s10105_s6, 1536, %s74_s23, [#allocation9], %s9087_s27, %s9087_s27, %s9088_s28  }
  0x3b   :  { %9078 = dma.done.wait [#allocation3], 9856  }
  0x3c   :  { %9079 = vsyncadd [#allocation3], 4294957440 }
  0x3d   :  { %9080 = dma.done.wait [#allocation6], 5120  }
  0x3e   :  { %9081 = vsyncadd [#allocation6], 4294962176 }
  0x3f   :  { %9082 = dma.done.wait [#allocation9], 26112  }
  0x40   :  { %9083 = vsyncadd [#allocation9], 4294941184  ;;  %v9097_v0 = vmov 2   ;;  %v9098_v1 = vmov 0   ;;  %v180_v2 = vld [vmem:[%s10099_s0] sm:$0xff]  ;;  %v126_v3 = vld [vmem:[#allocation2 + $0xf8] sm:$0xff] }
  0x41   :  { %8802 = vset.pattern.permute.xlu1 %v9097_v0  ;;  %8800 = vset.pattern.permute.xlu0 %v9098_v1  ;;  %v110_v4 = vld [vmem:[#allocation2 + $0x78] sm:$0xff]  ;;  %v125_v6 = vld [vmem:[#allocation2 + $0xf0] sm:$0xff]  ;;  %v181_v9 = vld [vmem:[%s10099_s0 + $0x8] sm:$0xff]  ;;  %v9099_v12 = vmov 1   ;;  %vm323_vm0 = vcmask 1046528   ;;  %s9102_s0 = smov 96  }
  0x42   :  { %271 = vperm.xlu1 %8802, %v180_v2   ;;  %189 = vperm.xlu0 %8800, %v180_v2   ;;  %v158_v5 = vld [vmem:[#allocation2 + $0x1f8] sm:$0xff]  ;;  %v157_v8 = vld [vmem:[#allocation2 + $0x1f0] sm:$0xff]  ;;  %v124_v13 = vld [vmem:[#allocation2 + $0xe8] sm:$0xff]  ;;  %s9106_s10 = smov 88   ;;  %s9107_s11 = smov 120  }
  0x43   :  { %7660 = vmatprep.subr.mxu0 %v126_v3  ;;  %7698 = vmatprep.subr.mxu1 %v158_v5  ;;  %v142_v7 = vld [vmem:[#allocation2 + $0x178] sm:$0xff]  ;;  %v109_v10 = vld [vmem:[#allocation2 + $0x70] sm:$0xff]  ;;  %v156_v14 = vld [vmem:[#allocation2 + $0x1e8] sm:$0xff]  ;;  %s9108_s13 = smov 56   ;;  %s9109_s14 = smov 32  }
  0x44   :  { %7661 = vmatpush3.msra.mxu0 %v110_v4  ;;  %7699 = vmatpush3.msra.mxu1 %v142_v7  ;;  %v141_v11 = vld [vmem:[#allocation2 + $0x170] sm:$0xff]  ;;  %v108_v15 = vld [vmem:[#allocation2 + $0x68] sm:$0xff]  ;;  %v123_v17 = vld [vmem:[#allocation2 + $0xe0] sm:$0xff]  ;;  %s9110_s15 = smov 80   ;;  %s9111_s16 = smov 112  }
  0x45   :  { %7662 = vmatprep.subr.mxu0 %v125_v6  ;;  %7700 = vmatprep.subr.mxu1 %v157_v8  ;;  %v140_v16 = vld [vmem:[#allocation2 + $0x168] sm:$0xff]  ;;  %v155_v18 = vld [vmem:[#allocation2 + $0x1e0] sm:$0xff]  ;;  %v122_v21 = vld [vmem:[#allocation2 + $0xd8] sm:$0xff]  ;;  %v182_v6 = vlaneseq  ;;  %s9112_s3 = smov 72   ;;  %s9113_s17 = smov 104  }
  0x46   :  { %8803 = vset.pattern.permute.xlu1 %v9098_v1  ;;  %8801 = vset.pattern.permute.xlu0 %v9099_v12  ;;  %v107_v19 = vld [vmem:[#allocation2 + $0x60] sm:$0xff]  ;;  %v154_v22 = vld [vmem:[#allocation2 + $0x1d8] sm:$0xff]  ;;  %v121_v25 = vld [vmem:[#allocation2 + $0xd0] sm:$0xff]  ;;  %s9114_s18 = smov 40  }
  0x47   :  { %192 = vperm.xlu1 %8803, %v181_v9   ;;  %225 = vperm.xlu0 %8801, %v180_v2   ;;  %v139_v20 = vld [vmem:[#allocation2 + $0x160] sm:$0xff]  ;;  %v106_v23 = vld [vmem:[#allocation2 + $0x58] sm:$0xff]  ;;  %v153_v26 = vld [vmem:[#allocation2 + $0x1d0] sm:$0xff]  ;;  %v9189_v7 = vand.u32 127, %v182_v6 }
  0x48   :  { %7663 = vmatpush3.msra.mxu0 %v109_v10  ;;  %7701 = vmatpush3.msra.mxu1 %v141_v11  ;;  %v138_v24 = vld [vmem:[#allocation2 + $0x158] sm:$0xff]  ;;  %v105_v27 = vld [vmem:[#allocation2 + $0x50] sm:$0xff]  ;;  %v120_v29 = vld [vmem:[#allocation2 + $0xc8] sm:$0xff] }
  0x49   :  { %7664 = vmatprep.subr.mxu0 %v124_v13  ;;  %7702 = vmatprep.subr.mxu1 %v156_v14  ;;  %v137_v28 = vld [vmem:[#allocation2 + $0x150] sm:$0xff]  ;;  %v152_v30 = vld [vmem:[#allocation2 + $0x1c8] sm:$0xff]  ;;  %v119_v33 = vld [vmem:[#allocation2 + $0xc0] sm:$0xff]  ;;  %v184_v8 = vadd.s32 128, %v9189_v7  ;;  %v9213_v13 = vadd.s32 512, %v9189_v7  ;;  %v9100_v14 = vmov 0.0  }
  0x4a   :  { %7665 = vmatpush3.msra.mxu0 %v108_v15  ;;  %7703 = vmatpush3.msra.mxu1 %v140_v16  ;;  %v104_v31 = vld [vmem:[#allocation2 + $0x48] sm:$0xff]  ;;  %v151_v34 = vld [vmem:[#allocation2 + $0x1c0] sm:$0xff]  ;;  %v118_v37 = vld [vmem:[#allocation2 + $0xb8] sm:$0xff] }
  0x4b   :  { %8804 = vset.pattern.permute.xlu1 %v9099_v12  ;;  %8805 = vset.pattern.permute.xlu0 %v9097_v0  ;;  %v136_v32 = vld [vmem:[#allocation2 + $0x148] sm:$0xff]  ;;  %v103_v35 = vld [vmem:[#allocation2 + $0x40] sm:$0xff]  ;;  %v150_v38 = vld [vmem:[#allocation2 + $0x1b8] sm:$0xff]  ;;  %v9200_v12 = vadd.s32 256, %v9189_v7 }
  0x4c   :  { %228 = vperm.xlu1 %8804, %v181_v9   ;;  %274 = vperm.xlu0 %8805, %v181_v9   ;;  %v135_v36 = vld [vmem:[#allocation2 + $0x140] sm:$0xff]  ;;  %v102_v39 = vld [vmem:[#allocation2 + $0x38] sm:$0xff]  ;;  %v117_v41 = vld [vmem:[#allocation2 + $0xb0] sm:$0xff]  ;;  %v9193_v9 = vadd.s32 384, %v9189_v7 }
  0x4d   :  { %7666 = vmatprep.subr.mxu0 %v123_v17  ;;  %7704 = vmatprep.subr.mxu1 %v155_v18  ;;  %v134_v40 = vld [vmem:[#allocation2 + $0x138] sm:$0xff]  ;;  %v149_v42 = vld [vmem:[#allocation2 + $0x1b0] sm:$0xff]  ;;  %v116_v45 = vld [vmem:[#allocation2 + $0xa8] sm:$0xff] }
  0x4e   :  { %7667 = vmatpush3.msra.mxu0 %v107_v19  ;;  %7705 = vmatpush3.msra.mxu1 %v139_v20  ;;  %v101_v43 = vld [vmem:[#allocation2 + $0x30] sm:$0xff]  ;;  %v148_v46 = vld [vmem:[#allocation2 + $0x1a8] sm:$0xff]  ;;  %v115_v49 = vld [vmem:[#allocation2 + $0xa0] sm:$0xff] }
  0x4f   :  { %7668 = vmatprep.subr.mxu0 %v122_v21  ;;  %7706 = vmatprep.subr.mxu1 %v154_v22  ;;  %v133_v44 = vld [vmem:[#allocation2 + $0x130] sm:$0xff]  ;;  %v100_v47 = vld [vmem:[#allocation2 + $0x28] sm:$0xff]  ;;  %v147_v50 = vld [vmem:[#allocation2 + $0x1a0] sm:$0xff] }
  0x50   :  { %7669 = vmatpush3.msra.mxu0 %v106_v23  ;;  %7707 = vmatpush3.msra.mxu1 %v138_v24  ;;  %v132_v48 = vld [vmem:[#allocation2 + $0x128] sm:$0xff]  ;;  %v99_v51 = vld [vmem:[#allocation2 + $0x20] sm:$0xff]  ;;  %v114_v53 = vld [vmem:[#allocation2 + $0x98] sm:$0xff] }
  0x51   :  { %7670 = vmatprep.subr.mxu0 %v121_v25  ;;  %7708 = vmatprep.subr.mxu1 %v153_v26  ;;  %v131_v52 = vld [vmem:[#allocation2 + $0x120] sm:$0xff]  ;;  %v146_v54 = vld [vmem:[#allocation2 + $0x198] sm:$0xff]  ;;  %v113_v57 = vld [vmem:[#allocation2 + $0x90] sm:$0xff] }
  0x52   :  { %7671 = vmatpush3.msra.mxu0 %v105_v27  ;;  %7709 = vmatpush3.msra.mxu1 %v137_v28  ;;  %v98_v55 = vld [vmem:[#allocation2 + $0x18] sm:$0xff]  ;;  %v145_v58 = vld [vmem:[#allocation2 + $0x190] sm:$0xff]  ;;  %v112_v61 = vld [vmem:[#allocation2 + $0x88] sm:$0xff] }
  0x53   :  { %7672 = vmatprep.subr.mxu0 %v120_v29  ;;  %7710 = vmatprep.subr.mxu1 %v152_v30  ;;  %v130_v56 = vld [vmem:[#allocation2 + $0x118] sm:$0xff]  ;;  %v97_v59 = vld [vmem:[#allocation2 + $0x10] sm:$0xff]  ;;  %v144_v62 = vld [vmem:[#allocation2 + $0x188] sm:$0xff] }
  0x54   :  { %7673 = vmatpush3.msra.mxu0 %v104_v31  ;;  %7711 = vmatpush3.msra.mxu1 %v136_v32  ;;  %v129_v60 = vld [vmem:[#allocation2 + $0x110] sm:$0xff]  ;;  %v96_v63 = vld [vmem:[#allocation2 + $0x8] sm:$0xff]  ;;  %v111_v1 = vld [vmem:[#allocation2 + $0x80] sm:$0xff] }
  0x55   :  { %7674 = vmatprep.subr.mxu0 %v119_v33  ;;  %7712 = vmatprep.subr.mxu1 %v151_v34  ;;  %v128_v0 = vld [vmem:[#allocation2 + $0x108] sm:$0xff]  ;;  %v143_v2 = vld [vmem:[#allocation2 + $0x180] sm:$0xff] }
  0x56   :  { %7675 = vmatpush3.msra.mxu0 %v103_v35  ;;  %7713 = vmatpush3.msra.mxu1 %v135_v36  ;;  %v95_v3 = vld [vmem:[#allocation2] sm:$0xff] }
  0x57   :  { %7676 = vmatprep.subr.mxu0 %v118_v37  ;;  %7714 = vmatprep.subr.mxu1 %v150_v38  ;;  %v127_v4 = vld [vmem:[#allocation2 + $0x100] sm:$0xff] }
  0x58   :  { %7677 = vmatpush3.msra.mxu0 %v102_v39  ;;  %7715 = vmatpush3.msra.mxu1 %v134_v40  ;;  %v9184_v5 = vld [vmem:[#allocation2 + $0x260] sm:$0x7f]  ;;  %v170_v40 = vld [vmem:[#allocation2 + $0x258] sm:$0xff] }
  0x59   :  { %7678 = vmatprep.subr.mxu0 %v117_v41  ;;  %7716 = vmatprep.subr.mxu1 %v149_v42 }
  0x5a   :  { %7679 = vmatpush3.msra.mxu0 %v101_v43  ;;  %7717 = vmatpush3.msra.mxu1 %v133_v44  ;;  %v169_v44 = vld [vmem:[#allocation2 + $0x250] sm:$0xff] }
  0x5b   :  { %7680 = vmatprep.subr.mxu0 %v116_v45  ;;  %7718 = vmatprep.subr.mxu1 %v148_v46 }
  0x5c   :  { %7681 = vmatpush3.msra.mxu0 %v100_v47  ;;  %7719 = vmatpush3.msra.mxu1 %v132_v48 }
  0x5d   :  { %7682 = vmatprep.subr.mxu0 %v115_v49  ;;  %7720 = vmatprep.subr.mxu1 %v147_v50 }
  0x5e   :  { %7683 = vmatpush3.msra.mxu0 %v99_v51  ;;  %7721 = vmatpush3.msra.mxu1 %v131_v52  ;;  %v168_v51 = vld [vmem:[#allocation2 + $0x248] sm:$0xff] }
  0x5f   :  { %7684 = vmatprep.subr.mxu0 %v114_v53  ;;  %7722 = vmatprep.subr.mxu1 %v146_v54 }
  0x60   :  { %7685 = vmatpush3.msra.mxu0 %v98_v55  ;;  %7723 = vmatpush3.msra.mxu1 %v130_v56 }
  0x61   :  { %7686 = vmatprep.subr.mxu0 %v113_v57  ;;  %7724 = vmatprep.subr.mxu1 %v145_v58 }
  0x62   :  { %7687 = vmatpush3.msra.mxu0 %v97_v59  ;;  %7725 = vmatpush3.msra.mxu1 %v129_v60  ;;  %v167_v60 = vld [vmem:[#allocation2 + $0x240] sm:$0xff] }
  0x63   :  { %7688 = vmatprep.subr.mxu0 %v112_v61  ;;  %7726 = vmatprep.subr.mxu1 %v144_v62 }
  0x64   :  { %7689 = vmatpush3.msra.mxu0 %v96_v63  ;;  %7727 = vmatpush3.msra.mxu1 %v128_v0  ;;  %v166_v0 = vld [vmem:[#allocation2 + $0x238] sm:$0xff] }
  0x65   :  { %7690 = vmatprep.subr.mxu0 %v111_v1  ;;  %7728 = vmatprep.subr.mxu1 %v143_v2 }
  0x66   :  { %7691 = vmatpush3.msra.mxu0 %v95_v3  ;;  %7729 = vmatpush3.msra.mxu1 %v127_v4  ;;  %v165_v4 = vld [vmem:[#allocation2 + $0x230] sm:$0xff] }
  0x67   :  { %8071 = vmatprep.subr.msk.mxu0 %vm323_vm0, %v9184_v5 }
  0xbd   :  { %v9195_v10 = vpop.permute.xlu0 %189  ;;  %v9197_v11 = vpop.permute.xlu1 %271 }
  0xbe   :  { %vm195_vm1 = vcmp.eq.s32.totalorder %v184_v8, %v9195_v10  ;;  %vm277_vm2 = vcmp.eq.s32.totalorder %v184_v8, %v9197_v11  ;;  %vm197_vm3 = vcmp.eq.s32.totalorder %v9193_v9, %v9195_v10  ;;  %vm279_vm4 = vcmp.eq.s32.totalorder %v9193_v9, %v9197_v11 }
  0xbf   :  { %vm194_vm5 = vcmp.eq.s32.totalorder %v9189_v7, %v9195_v10  ;;  %vm276_vm6 = vcmp.eq.s32.totalorder %v9189_v7, %v9197_v11  ;;  %v7516_v15 = vsel %vm195_vm1, 1.0, %v9100_v14  ;;  %v7536_v16 = vsel %vm277_vm2, 1.0, %v9100_v14 }
  0xc0   :  { %vm196_vm7 = vcmp.eq.s32.totalorder %v9200_v12, %v9195_v10  ;;  %v7518_v19 = vsel %vm197_vm3, 1.0, %v9100_v14  ;;  %v7538_v20 = vsel %vm279_vm4, 1.0, %v9100_v14  ;;  %v7515_v21 = vsel %vm194_vm5, 1.0, %v9100_v14 }
  0xc1   :  { %vm278_vm8 = vcmp.eq.s32.totalorder %v9200_v12, %v9197_v11  ;;  %v7535_v22 = vsel %vm276_vm6, 1.0, %v9100_v14  ;;  %v7517_v26 = vsel %vm196_vm7, 1.0, %v9100_v14  ;;  %vm198_vm1 = vcmp.eq.s32.totalorder %v9213_v13, %v9195_v10 }
  0xc2   :  { %v226_v17 = vpop.permute.xlu0 %225  ;;  %v9219_v18 = vpop.permute.xlu1 %192  ;;  %v7537_v31 = vsel %vm278_vm8, 1.0, %v9100_v14  ;;  %vm316_vm2 = vcmask 842752   ;;  %vm280_vm4 = vcmp.eq.s32.totalorder %v9213_v13, %v9197_v11  ;;  %v7519_v49 = vsel %vm198_vm1, 1.0, %v9100_v14 }
  0xc3   :  { %vm231_vm9 = vcmp.eq.s32.totalorder %v184_v8, %v226_v17  ;;  %vm233_vm10 = vcmp.eq.s32.totalorder %v9193_v9, %v226_v17  ;;  %vm230_vm11 = vcmp.eq.s32.totalorder %v9189_v7, %v226_v17  ;;  %vm232_vm12 = vcmp.eq.s32.totalorder %v9200_v12, %v226_v17 }
  0xc4   :  { %v7526_v23 = vsel %vm231_vm9, 1.0, %v9100_v14  ;;  %v7528_v24 = vsel %vm233_vm10, 1.0, %v9100_v14  ;;  %v7525_v25 = vsel %vm230_vm11, 1.0, %v9100_v14  ;;  %v7527_v30 = vsel %vm232_vm12, 1.0, %v9100_v14 }
  0xc5   :  { %v261_v27 = vadd.f32 %v7526_v23, %v7516_v15  ;;  %v263_v28 = vadd.f32 %v7528_v24, %v7518_v19  ;;  %v260_v29 = vadd.f32 %v7525_v25, %v7515_v21  ;;  %vm200_vm13 = vcmp.eq.s32.totalorder %v184_v8, %v9219_v18  ;;  %v160_v15 = vld [vmem:[#allocation2 + $0x208] sm:$0xff] }
  0xc6   :  { %vm199_vm14 = vcmp.eq.s32.totalorder %v9189_v7, %v9219_v18  ;;  %v262_v37 = vadd.f32 %v7527_v30, %v7517_v26  ;;  %v7521_v38 = vsel %vm200_vm13, 1.0, %v9100_v14  ;;  %vm234_vm7 = vcmp.eq.s32.totalorder %v9213_v13, %v226_v17 }
  0xc7   :  { %v9239_v32 = vpop.permute.xlu1 %228  ;;  %v307_v33 = vadd.f32 %v7536_v16, %v261_v27  ;;  %v309_v34 = vadd.f32 %v7538_v20, %v263_v28  ;;  %v9241_v35 = vpop.permute.xlu0 %274  ;;  %v306_v36 = vadd.f32 %v7535_v22, %v260_v29  ;;  %v7520_v43 = vsel %vm199_vm14, 1.0, %v9100_v14 }
  0xc8   :  { %vm236_vm15 = vcmp.eq.s32.totalorder %v184_v8, %v9239_v32  ;;  %v308_v39 = vadd.f32 %v7537_v31, %v262_v37  ;;  %vm282_vm3 = vcmp.eq.s32.totalorder %v184_v8, %v9241_v35  ;;  %vm235_vm5 = vcmp.eq.s32.totalorder %v9189_v7, %v9239_v32  ;;  %v163_v8 = vld [vmem:[#allocation2 + $0x220] sm:$0xff] }
  0xc9   :  { %391 = vmatprep.mubr.f32.mxu0 %v307_v33  ;;  %466 = vmatprep.mubr.f32.mxu1 %v309_v34  ;;  %v7531_v41 = vsel %vm236_vm15, 1.0, %v9100_v14  ;;  %v7541_v45 = vsel %vm282_vm3, 1.0, %v9100_v14  ;;  %vm281_vm6 = vcmp.eq.s32.totalorder %v9189_v7, %v9241_v35  ;;  %v7530_v47 = vsel %vm235_vm5, 1.0, %v9100_v14  ;;  %v164_v7 = vld [vmem:[#allocation2 + $0x228] sm:$0xff] }
  0xca   :  { %392 = vmatmul.mubr.f32.vlgmr.msra.gmra.mxu0 %v306_v36  ;;  %v266_v42 = vadd.f32 %v7531_v41, %v7521_v38  ;;  %467 = vmatmul.mubr.f32.vlgmr.msra.gmra.mxu1 %v308_v39  ;;  %v7540_v48 = vsel %vm281_vm6, 1.0, %v9100_v14  ;;  %v265_v50 = vadd.f32 %v7530_v47, %v7520_v43  ;;  %v7529_v52 = vsel %vm234_vm7, 1.0, %v9100_v14 }
  0xcb   :  { %8072 = vmatpush3.msk.msra.mxu0 %vm323_vm0, %v9184_v5  ;;  %v7539_v53 = vsel %vm280_vm4, 1.0, %v9100_v14  ;;  %vm202_vm0 = vcmp.eq.s32.totalorder %v9193_v9, %v9219_v18  ;;  %v264_v54 = vadd.f32 %v7529_v52, %v7519_v49  ;;  %vm238_vm8 = vcmp.eq.s32.totalorder %v9193_v9, %v9239_v32  ;;  %v9308_v49 = vld [vmem:[#allocation5 + $0x48] sm:$0xff]  ;;  %v9318_v52 = vld [vmem:[#allocation5] sm:$0xff] }
  0xcc   :  { %8073 = vmatprep.subr.mxu0 %v170_v40  ;;  %v312_v46 = vadd.f32 %v7541_v45, %v266_v42  ;;  %v7523_v55 = vsel %vm202_vm0, 1.0, %v9100_v14  ;;  %vm284_vm9 = vcmp.eq.s32.totalorder %v9193_v9, %v9241_v35  ;;  %v311_v56 = vadd.f32 %v7540_v48, %v265_v50  ;;  %v162_v9 = vld [vmem:[#allocation2 + $0x218] sm:$0xff]  ;;  %8100 = vmatprep.subr.mxu1 %v9308_v49 }
  0xcd   :  { %8074 = vmatpush3.msra.mxu0 %v170_v40  ;;  %v7533_v57 = vsel %vm238_vm8, 1.0, %v9100_v14  ;;  %v7543_v58 = vsel %vm284_vm9, 1.0, %v9100_v14  ;;  %vm201_vm10 = vcmp.eq.s32.totalorder %v9200_v12, %v9219_v18  ;;  %v310_v59 = vadd.f32 %v7539_v53, %v264_v54  ;;  %v9310_v50 = vld [vmem:[#allocation5 + $0x30] sm:$0xff]  ;;  %8101 = vmatpush3.msra.mxu1 %v9308_v49 }
  0xce   :  { %8075 = vmatprep.subr.mxu0 %v169_v44  ;;  %396 = vmatprep.mubr.f32.mxu0 %v312_v46  ;;  %v268_v61 = vadd.f32 %v7533_v57, %v7523_v55  ;;  %v7522_v62 = vsel %vm201_vm10, 1.0, %v9100_v14  ;;  %vm237_vm11 = vcmp.eq.s32.totalorder %v9200_v12, %v9239_v32  ;;  %vm283_vm12 = vcmp.eq.s32.totalorder %v9200_v12, %v9241_v35  ;;  %v161_v12 = vld [vmem:[#allocation2 + $0x210] sm:$0xff] }
  0xcf   :  { %8076 = vmatpush3.msra.mxu0 %v169_v44  ;;  %v7532_v63 = vsel %vm237_vm11, 1.0, %v9100_v14  ;;  %v7542_v3 = vsel %vm283_vm12, 1.0, %v9100_v14  ;;  %vm203_vm13 = vcmp.eq.s32.totalorder %v9213_v13, %v9219_v18  ;;  %vm239_vm14 = vcmp.eq.s32.totalorder %v9213_v13, %v9239_v32  ;;  %v159_v18 = vld [vmem:[#allocation2 + $0x200] sm:$0xff]  ;;  %8102 = vmatprep.subr.mxu1 %v9310_v50 }
  0xd0   :  { %8077 = vmatprep.subr.mxu0 %v168_v51  ;;  %397 = vmatmul.mubr.f32.gmra.mxu0 %v311_v56  ;;  %v314_v1 = vadd.f32 %v7543_v58, %v268_v61  ;;  %v267_v2 = vadd.f32 %v7532_v63, %v7522_v62  ;;  %v7524_v10 = vsel %vm203_vm13, 1.0, %v9100_v14  ;;  %v7534_v11 = vsel %vm239_vm14, 1.0, %v9100_v14  ;;  %v9331_v61 = vld [vmem:[#allocation10] sm:$0xff] }
  0xd1   :  { %8078 = vmatpush3.msra.mxu0 %v168_v51  ;;  %8097 = vmatprep.mubr.msk.f32.mxu0 %vm316_vm2, %v310_v59  ;;  %vm285_vm15 = vcmp.eq.s32.totalorder %v9213_v13, %v9241_v35  ;;  %v269_v16 = vadd.f32 %v7534_v11, %v7524_v10  ;;  %vm552_vm1 = vcmask 261120   ;;  %v9314_v51 = vld [vmem:[#allocation5 + $0x18] sm:$0xff]  ;;  %v9326_v59 = vshrl.u32 %v182_v6, 7 }
  0xd2   :  { %8079 = vmatprep.subr.mxu0 %v167_v60  ;;  %471 = vmatprep.mubr.f32.mxu1 %v314_v1  ;;  %v313_v5 = vadd.f32 %v7542_v3, %v267_v2  ;;  %v7544_v17 = vsel %vm285_vm15, 1.0, %v9100_v14  ;;  %vm832_vm3 = vcmask 64512   ;;  %vm2697_vm7 = vcmask 523264  }
  0xd3   :  { %8080 = vmatpush3.msra.mxu0 %v167_v60  ;;  %v315_v19 = vadd.f32 %v7544_v17, %v269_v16  ;;  %8103 = vmatpush3.msra.mxu1 %v9310_v50  ;;  %v9329_v60 = vsub.s32 0, %v9326_v59  ;;  %vm3905_vm0 = vcmask 1041409   ;;  %vm4053_vm10 = vcmask 17408  }
  0xd4   :  { %8081 = vmatprep.subr.mxu0 %v166_v0  ;;  %472 = vmatmul.mubr.f32.gmra.mxu1 %v313_v5 }
  0xd5   :  { %8082 = vmatpush3.msra.mxu0 %v166_v0  ;;  %8104 = vmatprep.subr.mxu1 %v9314_v51  ;;  %v583_v63 = vrot.slane %v9331_v61, %v9329_v60  ;;  %v9336_v0 = vsub.s32 1, %v9326_v59 }
  0xd6   :  { %8083 = vmatprep.subr.mxu0 %v165_v4  ;;  %8105 = vmatpush3.msra.mxu1 %v9314_v51 }
  0xd7   :  { %8084 = vmatpush3.msra.mxu0 %v165_v4  ;;  %8106 = vmatprep.subr.mxu1 %v9318_v52  ;;  %v589_v6 = vrot.slane %v9331_v61, %v9336_v0 }
  0xd8   :  { %8085 = vmatprep.subr.mxu0 %v164_v7  ;;  %8107 = vmatpush3.msra.mxu1 %v9318_v52 }
  0xd9   :  { %8086 = vmatpush3.msra.mxu0 %v164_v7  ;;  %8111 = vmatprep.subr.mxu1 %v9100_v14 }
  0xda   :  { %8087 = vmatprep.subr.mxu0 %v163_v8 }
  0xdb   :  { %8088 = vmatpush3.msra.mxu0 %v163_v8 }
  0xdc   :  { %8089 = vmatprep.subr.mxu0 %v162_v9 }
  0xdd   :  { %8090 = vmatpush3.msra.mxu0 %v162_v9  ;;  %v9349_v9 = vsub.s32 2, %v9326_v59 }
  0xde   :  { %8091 = vmatprep.subr.mxu0 %v161_v12 }
  0xdf   :  { %8092 = vmatpush3.msra.mxu0 %v161_v12  ;;  %v747_v10 = vrot.slane %v9331_v61, %v9349_v9 }
  0xe0   :  { %8093 = vmatprep.subr.mxu0 %v160_v15 }
  0xe1   :  { %8094 = vmatpush3.msra.mxu0 %v160_v15 }
  0xe2   :  { %8095 = vmatprep.subr.mxu0 %v159_v18 }
  0xe3   :  { %8096 = vmatpush3.msra.mxu0 %v159_v18 }
  0xe4   :  { %8098 = vmatmul.mubr.msk.f32.vlgmr.msra.gmra.mxu0 %vm316_vm2, %v315_v19  ;;  %8136 = vmatprep.subr.mxu0 %v9100_v14  ;;  %vm9101_vm2 = vmmov 0   ;;  %v9103_v19 = vmov 1966171168  }
  0xe5   :  { %8138 = vmatprep.mubr.msk.f32.mxu0 %vm9101_vm2, %v9100_v14 }
 0x18a   :  { %v7692_v20 = vpop.f32.mrf.mxu0  ;;  %v7730_v13 = vpop.f32.mrf.mxu1 }
 0x18c   :  { %v7693_v21 = vpop.f32.mrf.mxu0  ;;  %v7731_v22 = vpop.f32.mrf.mxu1 }
 0x18d   :  { %v7694_v29 = vadd.f32 %v7693_v21, %v7692_v20  ;;  %v7732_v30 = vadd.f32 %v7731_v22, %v7730_v13  ;;  %v597_v20 = vunpack.c.l.s4 %v9103_v19  ;;  %v592_v13 = vld [vmem:[%s10100_s1] sm:$0x3]  ;;  %s9105_s1 = smov 64  }
 0x18e   :  { %vm593_vm4 = vcmp.gt.s32.totalorder %v592_v13, 0 }
 0x18f   :  { %v469_v34 = vadd.f32 %v7732_v30, %v7694_v29  ;;  %v598_v21 = vunpack.c.0.s8 %v597_v20 }
 0x190   :  { %v7695_v23 = vpop.f32.mrf.mxu0 }
 0x191   :  { %v601_v22 = vsub.s32 %v598_v21, %v9326_v59 }
 0x192   :  { %v7696_v25 = vpop.f32.mrf.mxu0 }
 0x193   :  { %v7697_v27 = vadd.f32 %v7696_v25, %v7695_v23  ;;  %v9104_v23 = vmov -10000.0  }
 0x194   :  { %v7733_v24 = vpop.f32.mrf.mxu1 }
 0x196   :  { %v7734_v26 = vpop.f32.mrf.mxu1 }
 0x197   :  { %v7735_v28 = vadd.f32 %v7734_v26, %v7733_v24  ;;  %v594_v24 = vsel %vm593_vm4, 0.0, %v9104_v23 }
 0x198   :  { %v602_v25 = vrot.slane %v594_v24, %v601_v22 }
 0x199   :  { %v474_v31 = vadd.f32 %v7735_v28, %v7697_v27 }
 0x19a   :  { %v610_v26 = vrot.slane %v602_v25, %v601_v22  ;;  %v603_v27 = vcombine.high %v602_v25, %v602_v25 }
 0x19c   :  { %v9382_v28 = vrot.slane %v610_v26, %v9329_v60  ;;  %v617_v29 = vrot.slane %v603_v27, %v601_v22 }
 0x1a4   :  { %v8099_v32 = vpop.f32.mrf.mxu0 }
 0x1a5   :  { %v549_v33 = vadd.f32 %v8099_v32, %v474_v31 }
 0x1a6   :  { %v543_v35 = vpop.f32.mrf.mxu0 }
 0x1a7   :  { %v544_v36 = vadd.f32 %v543_v35, %v469_v34  ;;  %v556_v37 = vsel %vm552_vm1, %v549_v33, 0.0  ;;  %v9386_v34 = vrot.slane %v617_v29, %v9329_v60 }
 0x1a8   :  { %557 = vadd.xlane.f32.xlu0 %v556_v37 }
 0x1a9   :  { %v553_v38 = vsel %vm552_vm1, %v544_v36, 0.0 }
 0x1aa   :  { %554 = vadd.xlane.f32.xlu1 %v553_v38 }
 0x231   :  { %v558_v39 = vpop.xlane.xlu0 %557 }
 0x232   :  { %v561_v40 = vmul.f32 0.03125, %v558_v39 }
 0x233   :  { %v555_v41 = vpop.xlane.xlu1 %554 }
 0x234   :  { %v563_v42 = vsub.f32 %v549_v33, %v561_v40  ;;  %v560_v43 = vmul.f32 0.03125, %v555_v41 }
 0x236   :  { %v562_v44 = vsub.f32 %v544_v36, %v560_v43  ;;  %v565_v45 = vmul.f32 %v563_v42, %v563_v42 }
 0x238   :  { %v569_v46 = vsel %vm552_vm1, %v565_v45, 0.0  ;;  %v564_v47 = vmul.f32 %v562_v44, %v562_v44 }
 0x239   :  { %570 = vadd.xlane.f32.xlu0 %v569_v46 }
 0x23a   :  { %v566_v48 = vsel %vm552_vm1, %v564_v47, 0.0 }
 0x23b   :  { %567 = vadd.xlane.f32.xlu1 %v566_v48 }
 0x2c2   :  { %v571_v53 = vpop.xlane.xlu0 %570 }
 0x2c3   :  { %v573_v54 = vmul.f32 0.03125, %v571_v53 }
 0x2c4   :  { %v568_v55 = vpop.xlane.xlu1 %567 }
 0x2c5   :  { %v575_v56 = vadd.f32 1e-06, %v573_v54  ;;  %v572_v57 = vmul.f32 0.03125, %v568_v55 }
 0x2c7   :  { %8806 = vrsqrt.f32 %v575_v56  ;;  %v574_v58 = vadd.f32 1e-06, %v572_v57 }
 0x2c9   :  { %8808 = vrsqrt.f32 %v574_v58 }
 0x2d4   :  { %v8807_v62 = vpop.eup %8806 }
 0x2d5   :  { %v579_v1 = vmul.f32 %v8807_v62, %v563_v42 }
 0x2d6   :  { %v8809_v2 = vpop.eup %8808 }
 0x2d7   :  { %v578_v3 = vmul.f32 %v8809_v2, %v562_v44  ;;  %v585_v4 = vmul.f32 %v583_v63, %v579_v1 }
 0x2d9   :  { %v584_v5 = vmul.f32 %v583_v63, %v578_v3  ;;  %v9342_v8 = vadd.f32 %v589_v6, %v585_v4 }
 0x2db   :  { %v9340_v7 = vadd.f32 %v589_v6, %v584_v5 }
 0x2dd   :  { %8108 = vmatprep.mubr.msk.f32.mxu1 %vm552_vm1, %v9340_v7 }
 0x2de   :  { %8109 = vmatmul.mubr.msk.f32.vlgmr.msra.gmra.mxu1 %vm552_vm1, %v9342_v8 }
 0x2df   :  { %8113 = vmatprep.mubr.msk.f32.mxu1 %vm9101_vm2, %v9100_v14 }
 0x39e   :  { %v8110_v11 = vpop.f32.mrf.mxu1 }
 0x39f   :  { %v9357_v12 = vadd.f32 %v8110_v11, %v747_v10 }
 0x3a0   :  { %v820_v15 = vpop.f32.mrf.mxu1 }
 0x3a1   :  { %v9359_v16 = vadd.f32 %v820_v15, %v747_v10  ;;  %908 = vrot.lane.b32.xlu0 %v9357_v12, %s9102_s0 }
 0x3a3   :  { %830 = vrot.lane.b32.xlu1 %v9359_v16, %s9102_s0 }
 0x413   :  { %v909_v18 = vpop.permute.xlu0 %908 }
 0x415   :  { %v831_v17 = vpop.permute.xlu1 %830 }
 0x416   :  { %8112 = vmatpush3.xpose.msk.msra.mxu1 %vm832_vm3, %v831_v17 }
 0x417   :  { %8116 = vmatprep.subr.mxu1 %v9100_v14 }
 0x419   :  { %8114 = vmatmul.mubr.msk.f32.vlgmr.msra.gmra.mxu1 %vm832_vm3, %v9359_v16 }
 0x41a   :  { %8117 = vmatpush3.xpose.msk.msra.mxu1 %vm832_vm3, %v909_v18  ;;  %8118 = vmatprep.mubr.msk.f32.mxu1 %vm9101_vm2, %v9100_v14 }
 0x41b   :  { %8121 = vmatprep.subr.mxu1 %v9100_v14 }
 0x41d   :  { %8119 = vmatmul.mubr.msk.f32.vlgmr.msra.gmra.mxu1 %vm832_vm3, %v9357_v12 }
 0x41e   :  { %8123 = vmatprep.mubr.msk.f32.mxu1 %vm9101_vm2, %v9100_v14 }
 0x4d9   :  { %v903_v30 = vpop.f32.mrf.mxu1 }
 0x4da   :  { %v984_v31 = vmul.f32 0.35355338, %v903_v30 }
 0x4db   :  { %v8115_v32 = vpop.f32.mrf.mxu1 }
 0x4dc   :  { %v986_v33 = vadd.f32 %v984_v31, %v9382_v28 }
 0x4dd   :  { %v980_v35 = vpop.f32.mrf.mxu1 }
 0x4de   :  { %v985_v36 = vmul.f32 0.35355338, %v980_v35  ;;  %v988_v37 = vsel %vm832_vm3, %v986_v33, -inf }
 0x4df   :  { %989 = vmax.xlane.f32.xlu1 %v988_v37  ;;  %v8120_v38 = vpop.f32.mrf.mxu1 }
 0x4e0   :  { %v987_v39 = vadd.f32 %v985_v36, %v9386_v34 }
 0x4e2   :  { %v991_v40 = vsel %vm832_vm3, %v987_v39, -inf }
 0x4e3   :  { %992 = vmax.xlane.f32.xlu0 %v991_v40 }
 0x4f0   :  { %1010 = vrot.lane.b32.xlu1 %v9359_v16, %s9105_s1 }
 0x568   :  { %v990_v41 = vpop.xlane.xlu1 %989 }
 0x569   :  { %v994_v42 = vsub.f32 %v986_v33, %v990_v41 }
 0x56b   :  { %v996_v43 = vmul.f32 1.442695, %v994_v42 }
 0x56c   :  { %v1011_v44 = vpop.permute.xlu1 %1010  ;;  %v993_v45 = vpop.xlane.xlu0 %992 }
 0x56d   :  { %8810 = vpow2.f32 %v996_v43  ;;  %v995_v46 = vsub.f32 %v987_v39, %v993_v45  ;;  %8122 = vmatpush3.msra.mxu1 %v1011_v44 }
 0x56e   :  { %8126 = vmatprep.subr.mxu1 %v9100_v14 }
 0x56f   :  { %v998_v47 = vmul.f32 1.442695, %v995_v46 }
 0x571   :  { %8812 = vpow2.f32 %v998_v47 }
 0x57a   :  { %v8811_v48 = vpop.eup %8810 }
 0x57b   :  { %v1000_v53 = vsel %vm832_vm3, %v8811_v48, 0.0 }
 0x57c   :  { %1001 = vadd.xlane.f32.xlu1 %v1000_v53 }
 0x57e   :  { %v8813_v54 = vpop.eup %8812 }
 0x57f   :  { %v1003_v55 = vsel %vm832_vm3, %v8813_v54, 0.0 }
 0x580   :  { %1004 = vadd.xlane.f32.xlu0 %v1003_v55 }
 0x58d   :  { %1164 = vrot.lane.b32.xlu1 %v9359_v16, %s9106_s10 }
 0x591   :  { %1242 = vrot.lane.b32.xlu1 %v9357_v12, %s9106_s10 }
 0x595   :  { %1240 = vrot.lane.b32.xlu1 %v9357_v12, %s9107_s11 }
 0x596   :  { %1086 = vrot.lane.b32.xlu0 %v9357_v12, %s9105_s1 }
 0x59a   :  { %1162 = vrot.lane.b32.xlu0 %v9359_v16, %s9107_s11 }
 0x605   :  { %v1002_v56 = vpop.xlane.xlu1 %1001 }
 0x606   :  { %8814 = vrcp.f32 %v1002_v56 }
 0x609   :  { %v1165_v57 = vpop.permute.xlu1 %1164  ;;  %v1005_v58 = vpop.xlane.xlu0 %1004 }
 0x60a   :  { %8816 = vrcp.f32 %v1005_v58 }
 0x60d   :  { %v1243_v62 = vpop.permute.xlu1 %1242  ;;  %v1087_v3 = vpop.permute.xlu0 %1086 }
 0x60e   :  { %8137 = vmatpush3.xpose.msk.msra.mxu0 %vm832_vm3, %v1243_v62 }
 0x60f   :  { %8146 = vmatprep.subr.mxu0 %v9100_v14 }
 0x611   :  { %v1241_v63 = vpop.permute.xlu1 %1240  ;;  %v1163_v5 = vpop.permute.xlu0 %1162 }
 0x612   :  { %8139 = vmatmul.mubr.msk.f32.vlgmr.msra.gmra.mxu0 %vm832_vm3, %v1241_v63 }
 0x613   :  { %v8815_v1 = vpop.eup %8814  ;;  %8148 = vmatprep.mubr.msk.f32.mxu0 %vm9101_vm2, %v9100_v14 }
 0x614   :  { %v1008_v2 = vmul.f32 %v8815_v1, %v8811_v48 }
 0x616   :  { %8124 = vmatmul.mubr.msk.f32.vlgmr.msra.gmra.mxu1 %vm832_vm3, %v1008_v2 }
 0x617   :  { %v8817_v4 = vpop.eup %8816  ;;  %8127 = vmatpush3.msra.mxu1 %v1087_v3  ;;  %8128 = vmatprep.mubr.msk.f32.mxu1 %vm9101_vm2, %v9100_v14 }
 0x618   :  { %8131 = vmatprep.subr.mxu1 %v9100_v14  ;;  %v1009_v6 = vmul.f32 %v8817_v4, %v8813_v54 }
 0x61a   :  { %8129 = vmatmul.mubr.msk.f32.vlgmr.msra.gmra.mxu1 %vm832_vm3, %v1009_v6 }
 0x61b   :  { %8132 = vmatpush3.xpose.msk.msra.mxu1 %vm832_vm3, %v1165_v57  ;;  %8133 = vmatprep.mubr.msk.f32.mxu1 %vm9101_vm2, %v9100_v14 }
 0x61c   :  { %8141 = vmatprep.subr.mxu1 %v9100_v14 }
 0x61e   :  { %8134 = vmatmul.mubr.msk.f32.vlgmr.msra.gmra.mxu1 %vm832_vm3, %v1163_v5 }
 0x61f   :  { %8143 = vmatprep.mubr.msk.f32.mxu1 %vm9101_vm2, %v9100_v14 }
 0x6d2   :  { %v1314_v10 = vpop.f32.mrf.mxu0 }
 0x6d3   :  { %v1319_v11 = vmul.f32 0.35355338, %v1314_v10 }
 0x6d4   :  { %v8140_v15 = vpop.f32.mrf.mxu0 }
 0x6d5   :  { %v1321_v17 = vadd.f32 %v1319_v11, %v9386_v34 }
 0x6d6   :  { %v1082_v18 = vpop.f32.mrf.mxu1 }
 0x6d7   :  { %v1325_v19 = vsel %vm832_vm3, %v1321_v17, -inf }
 0x6d8   :  { %1326 = vmax.xlane.f32.xlu1 %v1325_v19  ;;  %v8125_v20 = vpop.f32.mrf.mxu1 }
 0x6da   :  { %v1158_v13 = vpop.f32.mrf.mxu1 }
 0x6dc   :  { %v8130_v21 = vpop.f32.mrf.mxu1 }
 0x6de   :  { %v1236_v22 = vpop.f32.mrf.mxu1 }
 0x6df   :  { %v1318_v23 = vmul.f32 0.35355338, %v1236_v22 }
 0x6e0   :  { %v8135_v24 = vpop.f32.mrf.mxu1 }
 0x6e1   :  { %v1320_v25 = vadd.f32 %v1318_v23, %v9382_v28 }
 0x6e3   :  { %v1322_v26 = vsel %vm832_vm3, %v1320_v25, -inf }
 0x6e4   :  { %1323 = vmax.xlane.f32.xlu0 %v1322_v26 }
 0x6e9   :  { %1344 = vrot.lane.b32.xlu1 %v9359_v16, %s9108_s13 }
 0x6ed   :  { %1497 = vrot.lane.b32.xlu1 %v9314_v51, %s9109_s14 }
 0x6f1   :  { %1582 = vrot.lane.b32.xlu1 %v9318_v52, %s9109_s14 }
 0x6f5   :  { %1746 = vrot.lane.b32.xlu1 %v9357_v12, %s9110_s15 }
 0x6f9   :  { %1744 = vrot.lane.b32.xlu1 %v9357_v12, %s9111_s16 }
 0x761   :  { %v1327_v27 = vpop.xlane.xlu1 %1326 }
 0x762   :  { %v1329_v29 = vsub.f32 %v1321_v17, %v1327_v27 }
 0x764   :  { %v1332_v30 = vmul.f32 1.442695, %v1329_v29 }
 0x765   :  { %v1345_v31 = vpop.permute.xlu1 %1344 }
 0x766   :  { %8818 = vpow2.f32 %v1332_v30  ;;  %8142 = vmatpush3.msra.mxu1 %v1345_v31 }
 0x769   :  { %v1498_v32 = vpop.permute.xlu1 %1497 }
 0x76a   :  { %8151 = vmatprep.subr.mxu1 %v1498_v32 }
 0x76d   :  { %v1324_v51 = vpop.xlane.xlu0 %1323  ;;  %v1583_v41 = vpop.permute.xlu1 %1582 }
 0x76e   :  { %v1328_v33 = vsub.f32 %v1320_v25, %v1324_v51 }
 0x770   :  { %v1330_v35 = vmul.f32 1.442695, %v1328_v33 }
 0x771   :  { %v1747_v45 = vpop.permute.xlu1 %1746 }
 0x772   :  { %8820 = vpow2.f32 %v1330_v35 }
 0x773   :  { %v8819_v52 = vpop.eup %8818 }
 0x774   :  { %v1337_v36 = vsel %vm832_vm3, %v8819_v52, 0.0 }
 0x775   :  { %1338 = vadd.xlane.f32.xlu0 %v1337_v36  ;;  %v1745_v46 = vpop.permute.xlu1 %1744 }
 0x77f   :  { %v8821_v37 = vpop.eup %8820 }
 0x780   :  { %v1334_v38 = vsel %vm832_vm3, %v8821_v37, 0.0 }
 0x781   :  { %1335 = vadd.xlane.f32.xlu0 %v1334_v38 }
 0x797   :  { %1420 = vrot.lane.b32.xlu0 %v9357_v12, %s9108_s13 }
 0x79b   :  { %1668 = vrot.lane.b32.xlu0 %v9359_v16, %s9110_s15 }
 0x79f   :  { %1666 = vrot.lane.b32.xlu0 %v9359_v16, %s9111_s16 }
 0x7fe   :  { %v1339_v39 = vpop.xlane.xlu0 %1338 }
 0x7ff   :  { %8822 = vrcp.f32 %v1339_v39 }
 0x80a   :  { %v1336_v40 = vpop.xlane.xlu0 %1335 }
 0x80b   :  { %8824 = vrcp.f32 %v1336_v40 }
 0x80c   :  { %v8823_v42 = vpop.eup %8822 }
 0x80d   :  { %v1343_v43 = vmul.f32 %v8823_v42, %v8819_v52 }
 0x80e   :  { %v1421_v44 = vpop.permute.xlu0 %1420 }
 0x80f   :  { %8147 = vmatpush3.msra.mxu0 %v1421_v44 }
 0x810   :  { %8149 = vmatmul.mubr.msk.f32.vlgmr.msra.gmra.mxu0 %vm832_vm3, %v1343_v43  ;;  %8156 = vmatprep.subr.mxu0 %v1583_v41 }
 0x811   :  { %8158 = vmatprep.mubr.msk.f32.mxu0 %vm832_vm3, %v1082_v18  ;;  %8157 = vmatpush3.msra.mxu0 %v1583_v41 }
 0x812   :  { %8166 = vmatprep.subr.mxu0 %v9100_v14  ;;  %v1669_v62 = vpop.permute.xlu0 %1668 }
 0x814   :  { %8159 = vmatmul.mubr.msk.f32.vlgmr.msra.gmra.mxu0 %vm832_vm3, %v1158_v13 }
 0x815   :  { %8167 = vmatpush3.xpose.msk.msra.mxu0 %vm832_vm3, %v1747_v45  ;;  %8168 = vmatprep.mubr.msk.f32.mxu0 %vm9101_vm2, %v9100_v14 }
 0x816   :  { %8176 = vmatprep.subr.mxu0 %v9100_v14  ;;  %v1667_v6 = vpop.permute.xlu0 %1666 }
 0x818   :  { %v8825_v47 = vpop.eup %8824  ;;  %8169 = vmatmul.mubr.msk.f32.vlgmr.msra.gmra.mxu0 %vm832_vm3, %v1745_v46 }
 0x819   :  { %v1342_v48 = vmul.f32 %v8825_v47, %v8821_v37  ;;  %8178 = vmatprep.mubr.msk.f32.mxu0 %vm9101_vm2, %v9100_v14 }
 0x81b   :  { %8144 = vmatmul.mubr.msk.f32.vlgmr.msra.gmra.mxu1 %vm832_vm3, %v1342_v48 }
 0x81c   :  { %8152 = vmatpush3.msra.mxu1 %v1498_v32 }
 0x81d   :  { %8161 = vmatprep.subr.mxu1 %v9100_v14 }
 0x8d0   :  { %v1492_v53 = vpop.f32.mrf.mxu0 }
 0x8d2   :  { %v8150_v54 = vpop.f32.mrf.mxu0 }
 0x8d4   :  { %v9458_v55 = vpop.f32.mrf.mxu0 }
 0x8d6   :  { %v9460_v56 = vpop.f32.mrf.mxu0 }
 0x8d8   :  { %v1818_v57 = vpop.f32.mrf.mxu0 }
 0x8d9   :  { %v1823_v58 = vmul.f32 0.35355338, %v1818_v57 }
 0x8da   :  { %v8170_v63 = vpop.f32.mrf.mxu0 }
 0x8db   :  { %v1416_v1 = vpop.f32.mrf.mxu1  ;;  %v1825_v2 = vadd.f32 %v1823_v58, %v9386_v34 }
 0x8dc   :  { %8153 = vmatprep.mubr.msk.f32.mxu1 %vm832_vm3, %v1416_v1 }
 0x8dd   :  { %v8145_v3 = vpop.f32.mrf.mxu1  ;;  %8154 = vmatmul.mubr.msk.f32.vlgmr.msra.gmra.mxu1 %vm832_vm3, %v1492_v53  ;;  %v1829_v4 = vsel %vm832_vm3, %v1825_v2, -inf }
 0x8de   :  { %8162 = vmatpush3.xpose.msk.msra.mxu1 %vm832_vm3, %v1669_v62  ;;  %1830 = vmax.xlane.f32.xlu1 %v1829_v4 }
 0x8df   :  { %8163 = vmatprep.mubr.msk.f32.mxu1 %vm9101_vm2, %v9100_v14  ;;  %8171 = vmatprep.subr.mxu1 %v9100_v14 }
 0x8e1   :  { %8164 = vmatmul.mubr.msk.f32.vlgmr.msra.gmra.mxu1 %vm832_vm3, %v1667_v6 }
 0x8e2   :  { %8173 = vmatprep.mubr.msk.f32.mxu1 %vm9101_vm2, %v9100_v14 }
 0x8ef   :  { %1848 = vrot.lane.b32.xlu1 %v9359_v16, %s9091_s12 }
 0x8f3   :  { %2001 = vrot.lane.b32.xlu1 %v9310_v50, %s9109_s14 }
 0x8f7   :  { %2089 = vrot.lane.b32.xlu1 %v9359_v16, %s9112_s3 }
 0x8fb   :  { %2087 = vrot.lane.b32.xlu1 %v9359_v16, %s9113_s17 }
 0x967   :  { %v1831_v5 = vpop.xlane.xlu1 %1830 }
 0x968   :  { %v1833_v15 = vsub.f32 %v1825_v2, %v1831_v5 }
 0x96a   :  { %v1836_v17 = vmul.f32 1.442695, %v1833_v15 }
 0x96b   :  { %v1849_v10 = vpop.permute.xlu1 %1848 }
 0x96c   :  { %8172 = vmatpush3.msra.mxu1 %v1849_v10  ;;  %8826 = vpow2.f32 %v1836_v17 }
 0x96f   :  { %v2002_v11 = vpop.permute.xlu1 %2001 }
 0x970   :  { %8181 = vmatprep.subr.mxu1 %v2002_v11 }
 0x973   :  { %v2090_v33 = vpop.permute.xlu1 %2089 }
 0x977   :  { %v2088_v36 = vpop.permute.xlu1 %2087 }
 0x979   :  { %v8827_v23 = vpop.eup %8826 }
 0x97a   :  { %v1841_v24 = vsel %vm832_vm3, %v8827_v23, 0.0 }
 0x99d   :  { %v9481_v18 = vpop.f32.mrf.mxu1 }
 0x99e   :  { %v1663_v62 = vadd.f32 %v9458_v55, %v9481_v18 }
 0x99f   :  { %v9483_v19 = vpop.f32.mrf.mxu1 }
 0x9a0   :  { %v1658_v1 = vadd.f32 %v9460_v56, %v9483_v19 }
 0x9a1   :  { %v1740_v50 = vpop.f32.mrf.mxu1 }
 0x9a2   :  { %v1822_v20 = vmul.f32 0.35355338, %v1740_v50 }
 0x9a3   :  { %v8165_v13 = vpop.f32.mrf.mxu1 }
 0x9a4   :  { %v1824_v21 = vadd.f32 %v1822_v20, %v9382_v28 }
 0x9a6   :  { %v1826_v22 = vsel %vm832_vm3, %v1824_v21, -inf }
 0x9a7   :  { %1827 = vmax.xlane.f32.xlu0 %v1826_v22 }
 0x9ab   :  { %1842 = vadd.xlane.f32.xlu0 %v1841_v24 }
 0xa30   :  { %v1828_v25 = vpop.xlane.xlu0 %1827 }
 0xa31   :  { %v1832_v26 = vsub.f32 %v1824_v21, %v1828_v25 }
 0xa33   :  { %v1834_v27 = vmul.f32 1.442695, %v1832_v26 }
 0xa34   :  { %v1843_v31 = vpop.xlane.xlu0 %1842 }
 0xa35   :  { %8828 = vpow2.f32 %v1834_v27 }
 0xa36   :  { %8830 = vrcp.f32 %v1843_v31 }
 0xa42   :  { %v8829_v29 = vpop.eup %8828 }
 0xa43   :  { %v1838_v30 = vsel %vm832_vm3, %v8829_v29, 0.0  ;;  %v8831_v51 = vpop.eup %8830 }
 0xa44   :  { %1839 = vadd.xlane.f32.xlu0 %v1838_v30  ;;  %v1847_v52 = vmul.f32 %v8831_v51, %v8827_v23 }
 0xa5a   :  { %1924 = vrot.lane.b32.xlu0 %v9357_v12, %s9091_s12 }
 0xa5e   :  { %2167 = vrot.lane.b32.xlu0 %v9357_v12, %s9112_s3 }
 0xa62   :  { %2165 = vrot.lane.b32.xlu0 %v9357_v12, %s9113_s17 }
 0xacd   :  { %v1840_v32 = vpop.xlane.xlu0 %1839 }
 0xace   :  { %8832 = vrcp.f32 %v1840_v32 }
 0xad1   :  { %v1925_v35 = vpop.permute.xlu0 %1924 }
 0xad2   :  { %8177 = vmatpush3.msra.mxu0 %v1925_v35 }
 0xad3   :  { %8179 = vmatmul.mubr.msk.f32.vlgmr.msra.gmra.mxu0 %vm832_vm3, %v1847_v52  ;;  %8186 = vmatprep.subr.mxu0 %v9100_v14 }
 0xad4   :  { %8187 = vmatpush3.xpose.msk.msra.mxu0 %vm832_vm3, %v2090_v33  ;;  %8188 = vmatprep.mubr.msk.f32.mxu0 %vm9101_vm2, %v9100_v14 }
 0xad5   :  { %8196 = vmatprep.subr.mxu0 %v9100_v14  ;;  %v2168_v46 = vpop.permute.xlu0 %2167 }
 0xad7   :  { %8189 = vmatmul.mubr.msk.f32.vlgmr.msra.gmra.mxu0 %vm832_vm3, %v2088_v36 }
 0xad8   :  { %8198 = vmatprep.mubr.msk.f32.mxu0 %vm9101_vm2, %v9100_v14 }
 0xad9   :  { %v2166_v53 = vpop.permute.xlu0 %2165 }
 0xadb   :  { %v8833_v37 = vpop.eup %8832 }
 0xadc   :  { %v1846_v38 = vmul.f32 %v8833_v37, %v8829_v29 }
 0xade   :  { %8174 = vmatmul.mubr.msk.f32.vlgmr.msra.gmra.mxu1 %vm832_vm3, %v1846_v38 }
 0xadf   :  { %8182 = vmatpush3.msra.mxu1 %v2002_v11 }
 0xae0   :  { %8191 = vmatprep.subr.mxu1 %v9100_v14 }
 0xb93   :  { %v1996_v39 = vpop.f32.mrf.mxu0 }
 0xb95   :  { %v8180_v40 = vpop.f32.mrf.mxu0 }
 0xb97   :  { %v2161_v41 = vpop.f32.mrf.mxu0 }
 0xb98   :  { %v2243_v42 = vmul.f32 0.35355338, %v2161_v41 }
 0xb99   :  { %v8190_v43 = vpop.f32.mrf.mxu0 }
 0xb9a   :  { %v2245_v44 = vadd.f32 %v2243_v42, %v9382_v28 }
 0xb9c   :  { %v2247_v45 = vsel %vm832_vm3, %v2245_v44, -inf }
 0xb9d   :  { %2248 = vmax.xlane.f32.xlu1 %v2247_v45 }
 0xb9e   :  { %v1920_v47 = vpop.f32.mrf.mxu1 }
 0xb9f   :  { %8183 = vmatprep.mubr.msk.f32.mxu1 %vm832_vm3, %v1920_v47 }
 0xba0   :  { %v8175_v48 = vpop.f32.mrf.mxu1  ;;  %8184 = vmatmul.mubr.msk.f32.vlgmr.msra.gmra.mxu1 %vm832_vm3, %v1996_v39 }
 0xba1   :  { %8192 = vmatpush3.xpose.msk.msra.mxu1 %vm832_vm3, %v2168_v46  ;;  %8193 = vmatprep.mubr.msk.f32.mxu1 %vm9101_vm2, %v9100_v14 }
 0xba2   :  { %8201 = vmatprep.subr.mxu1 %v9100_v14 }
 0xba4   :  { %8194 = vmatmul.mubr.msk.f32.vlgmr.msra.gmra.mxu1 %vm832_vm3, %v2166_v53 }
 0xba5   :  { %8203 = vmatprep.mubr.msk.f32.mxu1 %vm9101_vm2, %v9100_v14 }
 0xc26   :  { %v2249_v54 = vpop.xlane.xlu1 %2248 }
 0xc27   :  { %v2253_v57 = vsub.f32 %v2245_v44, %v2249_v54 }
 0xc29   :  { %v2255_v58 = vmul.f32 1.442695, %v2253_v57  ;;  %v639_v57 = vld [vmem:[#allocation5 + $0x58] sm:$0xff] }
 0xc2b   :  { %8834 = vpow2.f32 %v2255_v58  ;;  %v633_v58 = vld [vmem:[#allocation5 + $0x28] sm:$0xff] }
 0xc38   :  { %v8835_v17 = vpop.eup %8834 }
 0xc39   :  { %v2259_v50 = vsel %vm832_vm3, %v8835_v17, 0.0 }
 0xc60   :  { %v8185_v63 = vpop.f32.mrf.mxu1 }
 0xc61   :  { %v2086_v2 = vadd.f32 %v8185_v63, %v1663_v62  ;;  %v630_v62 = vld [vmem:[#allocation5 + $0x10] sm:$0xff] }
 0xc62   :  { %v2076_v3 = vpop.f32.mrf.mxu1 }
 0xc63   :  { %v2085_v4 = vadd.f32 %v2076_v3, %v1658_v1 }
 0xc64   :  { %v2239_v6 = vpop.f32.mrf.mxu1 }
 0xc65   :  { %v2244_v5 = vmul.f32 0.35355338, %v2239_v6 }
 0xc66   :  { %v8195_v10 = vpop.f32.mrf.mxu1 }
 0xc67   :  { %v2246_v11 = vadd.f32 %v2244_v5, %v9386_v34  ;;  %v9547_v5 = vsub.s32 4, %v9326_v59  ;;  %v9550_v10 = vsub.s32 5, %v9326_v59 }
 0xc69   :  { %v2250_v15 = vsel %vm832_vm3, %v2246_v11, -inf }
 0xc6a   :  { %2251 = vmax.xlane.f32.xlu0 %v2250_v15 }
 0xc6e   :  { %2260 = vadd.xlane.f32.xlu0 %v2259_v50  ;;  %v2551_v50 = vrot.slane %v9331_v61, %v9550_v10 }
 0xc84   :  { %2269 = vrot.lane.b32.xlu0 %v9359_v16, %s9114_s18 }
 0xcf3   :  { %v2252_v55 = vpop.xlane.xlu0 %2251 }
 0xcf4   :  { %v2254_v56 = vsub.f32 %v2246_v11, %v2252_v55  ;;  %v2545_v11 = vrot.slane %v9331_v61, %v9547_v5 }
 0xcf6   :  { %v2257_v18 = vmul.f32 1.442695, %v2254_v56 }
 0xcf7   :  { %v2261_v19 = vpop.xlane.xlu0 %2260 }
 0xcf8   :  { %8836 = vpow2.f32 %v2257_v18 }
 0xcf9   :  { %8838 = vrcp.f32 %v2261_v19 }
 0xcfb   :  { %v2270_v20 = vpop.permute.xlu0 %2269 }
 0xcfc   :  { %8197 = vmatpush3.msra.mxu0 %v2270_v20 }
 0xd05   :  { %v8837_v13 = vpop.eup %8836 }
 0xd06   :  { %v8839_v21 = vpop.eup %8838  ;;  %v2262_v22 = vsel %vm832_vm3, %v8837_v13, 0.0 }
 0xd07   :  { %2263 = vadd.xlane.f32.xlu1 %v2262_v22  ;;  %v2267_v23 = vmul.f32 %v8839_v21, %v8835_v17  ;;  %v647_v21 = vld [vmem:[#allocation7 + $0x38] sm:$0xff]  ;;  %v646_v22 = vld [vmem:[#allocation7 + $0x30] sm:$0xff] }
 0xd09   :  { %8199 = vmatmul.mubr.msk.f32.vlgmr.msra.gmra.mxu0 %vm832_vm3, %v2267_v23  ;;  %v645_v23 = vld [vmem:[#allocation7 + $0x28] sm:$0xff] }
 0xd18   :  { %2345 = vrot.lane.b32.xlu1 %v9357_v12, %s9114_s18 }
 0xd1c   :  { %2422 = vrot.lane.b32.xlu1 %v9308_v49, %s9109_s14  ;;  %v9536_v49 = vsub.s32 3, %v9326_v59 }
 0xd1e   :  { %v2511_v32 = vrot.slane %v9331_v61, %v9536_v49 }
 0xd90   :  { %v2264_v16 = vpop.xlane.xlu1 %2263 }
 0xd91   :  { %8840 = vrcp.f32 %v2264_v16  ;;  %v644_v16 = vld [vmem:[#allocation7 + $0x20] sm:$0xff] }
 0xd94   :  { %v2346_v24 = vpop.permute.xlu1 %2345 }
 0xd95   :  { %8202 = vmatpush3.msra.mxu1 %v2346_v24  ;;  %v643_v24 = vld [vmem:[#allocation7 + $0x18] sm:$0xff] }
 0xd96   :  { %8211 = vmatprep.subr.mxu1 %v639_v57 }
 0xd98   :  { %v2423_v25 = vpop.permute.xlu1 %2422 }
 0xd99   :  { %8206 = vmatprep.subr.mxu0 %v2423_v25 }
 0xd9a   :  { %8207 = vmatpush3.msra.mxu0 %v2423_v25  ;;  %v642_v25 = vld [vmem:[#allocation7 + $0x10] sm:$0xff] }
 0xd9b   :  { %8222 = vmatprep.subr.mxu0 %v647_v21 }
 0xd9e   :  { %v8841_v26 = vpop.eup %8840 }
 0xd9f   :  { %v2268_v27 = vmul.f32 %v8841_v26, %v8837_v13  ;;  %v641_v26 = vld [vmem:[#allocation7 + $0x8] sm:$0xff] }
 0xda1   :  { %8204 = vmatmul.mubr.msk.f32.vlgmr.msra.gmra.mxu1 %vm832_vm3, %v2268_v27  ;;  %v640_v27 = vld [vmem:[#allocation7] sm:$0xff] }
 0xda2   :  { %8212 = vmatpush3.msra.mxu1 %v639_v57 }
 0xdc9   :  { %v2341_v29 = vpop.f32.mrf.mxu0 }
 0xdca   :  { %8208 = vmatprep.mubr.msk.f32.mxu0 %vm832_vm3, %v2341_v29  ;;  %v9565_v29 = vsub.s32 6, %v9326_v59 }
 0xdcb   :  { %v8200_v30 = vpop.f32.mrf.mxu0 }
 0xdcc   :  { %v2557_v30 = vrot.slane %v9331_v61, %v9565_v29 }
 0xe61   :  { %v2417_v31 = vpop.f32.mrf.mxu1 }
 0xe62   :  { %8209 = vmatmul.mubr.msk.f32.vlgmr.msra.gmra.mxu0 %vm832_vm3, %v2417_v31 }
 0xe63   :  { %v8205_v12 = vpop.f32.mrf.mxu1  ;;  %8223 = vmatpush3.msra.mxu0 %v647_v21 }
 0xe64   :  { %8224 = vmatprep.subr.mxu0 %v646_v22 }
 0xe65   :  { %8225 = vmatpush3.msra.mxu0 %v646_v22 }
 0xe66   :  { %8226 = vmatprep.subr.mxu0 %v645_v23 }
 0xe67   :  { %8227 = vmatpush3.msra.mxu0 %v645_v23 }
 0xe68   :  { %8228 = vmatprep.subr.mxu0 %v644_v16 }
 0xe69   :  { %8229 = vmatpush3.msra.mxu0 %v644_v16 }
 0xe6a   :  { %8230 = vmatprep.subr.mxu0 %v643_v24 }
 0xe6b   :  { %8231 = vmatpush3.msra.mxu0 %v643_v24 }
 0xe6c   :  { %8232 = vmatprep.subr.mxu0 %v642_v25 }
 0xe6d   :  { %8233 = vmatpush3.msra.mxu0 %v642_v25 }
 0xe6e   :  { %8234 = vmatprep.subr.mxu0 %v641_v26 }
 0xe6f   :  { %8235 = vmatpush3.msra.mxu0 %v641_v26 }
 0xe70   :  { %8236 = vmatprep.subr.mxu0 %v640_v27 }
 0xe71   :  { %8237 = vmatpush3.msra.mxu0 %v640_v27 }
 0xf22   :  { %v8210_v51 = vpop.f32.mrf.mxu0 }
 0xf23   :  { %v2507_v33 = vadd.f32 %v8210_v51, %v2086_v2 }
 0xf24   :  { %v2497_v35 = vpop.f32.mrf.mxu0 }
 0xf25   :  { %v2513_v52 = vadd.f32 %v2511_v32, %v2507_v33  ;;  %v2506_v36 = vadd.f32 %v2497_v35, %v2085_v4 }
 0xf27   :  { %v2512_v37 = vadd.f32 %v2511_v32, %v2506_v36  ;;  %v2515_v38 = vadd.f32 %v2513_v52, %v9342_v8 }
 0xf29   :  { %v2519_v39 = vsel %vm552_vm1, %v2515_v38, 0.0  ;;  %v2514_v40 = vadd.f32 %v2512_v37, %v9340_v7  ;;  %v636_v7 = vld [vmem:[#allocation5 + $0x40] sm:$0xff] }
 0xf2a   :  { %2520 = vadd.xlane.f32.xlu1 %v2519_v39  ;;  %8213 = vmatprep.subr.mxu1 %v636_v7 }
 0xf2b   :  { %v2516_v41 = vsel %vm552_vm1, %v2514_v40, 0.0  ;;  %8214 = vmatpush3.msra.mxu1 %v636_v7 }
 0xf2c   :  { %2517 = vadd.xlane.f32.xlu0 %v2516_v41  ;;  %8215 = vmatprep.subr.mxu1 %v633_v58 }
 0xf2d   :  { %8216 = vmatpush3.msra.mxu1 %v633_v58 }
 0xf2e   :  { %8217 = vmatprep.subr.mxu1 %v630_v62 }
 0xf2f   :  { %8218 = vmatpush3.msra.mxu1 %v630_v62 }
 0xfb3   :  { %v2521_v42 = vpop.xlane.xlu1 %2520 }
 0xfb4   :  { %v2523_v43 = vmul.f32 0.03125, %v2521_v42 }
 0xfb5   :  { %v2518_v44 = vpop.xlane.xlu0 %2517 }
 0xfb6   :  { %v2522_v45 = vmul.f32 0.03125, %v2518_v44  ;;  %v2525_v46 = vsub.f32 %v2515_v38, %v2523_v43 }
 0xfb8   :  { %v2524_v47 = vsub.f32 %v2514_v40, %v2522_v45  ;;  %v2527_v54 = vmul.f32 %v2525_v46, %v2525_v46 }
 0xfba   :  { %v2526_v48 = vmul.f32 %v2524_v47, %v2524_v47  ;;  %v2531_v8 = vsel %vm552_vm1, %v2527_v54, 0.0 }
 0xfbc   :  { %v2528_v53 = vsel %vm552_vm1, %v2526_v48, 0.0 }
 0xfbd   :  { %2529 = vadd.xlane.f32.xlu0 %v2528_v53 }
 0xfc1   :  { %2532 = vadd.xlane.f32.xlu0 %v2531_v8 }
0x1046   :  { %v2530_v63 = vpop.xlane.xlu0 %2529 }
0x1047   :  { %v2534_v1 = vmul.f32 0.03125, %v2530_v63 }
0x1049   :  { %v2536_v2 = vadd.f32 1e-06, %v2534_v1 }
0x104a   :  { %v2533_v3 = vpop.xlane.xlu0 %2532 }
0x104b   :  { %8842 = vrsqrt.f32 %v2536_v2  ;;  %v2535_v4 = vmul.f32 0.03125, %v2533_v3 }
0x104d   :  { %v2537_v6 = vadd.f32 1e-06, %v2535_v4 }
0x104f   :  { %8844 = vrsqrt.f32 %v2537_v6 }
0x1058   :  { %v8843_v15 = vpop.eup %8842 }
0x1059   :  { %v2540_v17 = vmul.f32 %v8843_v15, %v2524_v47 }
0x105b   :  { %v2546_v55 = vmul.f32 %v2545_v11, %v2540_v17 }
0x105c   :  { %v8845_v56 = vpop.eup %8844 }
0x105d   :  { %v2541_v18 = vmul.f32 %v8845_v56, %v2525_v46  ;;  %v9556_v19 = vadd.f32 %v2551_v50, %v2546_v55 }
0x105f   :  { %v2547_v20 = vmul.f32 %v2545_v11, %v2541_v18  ;;  %8219 = vmatprep.mubr.msk.f32.mxu1 %vm552_vm1, %v9556_v19 }
0x1061   :  { %v9560_v13 = vadd.f32 %v2551_v50, %v2547_v20 }
0x1063   :  { %8220 = vmatmul.mubr.msk.f32.vlgmr.msra.gmra.mxu1 %vm552_vm1, %v9560_v13 }
0x1123   :  { %v8221_v31 = vpop.f32.mrf.mxu1 }
0x1124   :  { %v2636_v12 = vadd.f32 %v8221_v31, %v2557_v30 }
0x1125   :  { %v2630_v32 = vpop.f32.mrf.mxu1 }
0x1126   :  { %v2642_v51 = vmul.f32 0.70710677, %v2636_v12  ;;  %v2631_v33 = vadd.f32 %v2630_v32, %v2557_v30  ;;  %v2640_v32 = vmul.f32 0.5, %v2636_v12 }
0x1128   :  { %v2644_v35 = vand.u32 2147483647, %v2642_v51  ;;  %v2641_v52 = vmul.f32 0.70710677, %v2631_v33  ;;  %vm2684_vm5 = vcmp.ge.f32.partialorder %v2642_v51, 0.0  ;;  %v2639_v30 = vmul.f32 0.5, %v2631_v33 }
0x112a   :  { %v2646_v36 = vmul.f32 0.3275911, %v2644_v35  ;;  %v2643_v37 = vand.u32 2147483647, %v2641_v52  ;;  %v2672_v41 = vsub.f32 0.0, %v2644_v35  ;;  %vm2683_vm6 = vcmp.ge.f32.partialorder %v2641_v52, 0.0 }
0x112c   :  { %v2648_v38 = vadd.f32 1.0, %v2646_v36  ;;  %v2645_v39 = vmul.f32 0.3275911, %v2643_v37  ;;  %v2671_v42 = vsub.f32 0.0, %v2643_v37  ;;  %v2674_v43 = vmul.f32 %v2672_v41, %v2644_v35 }
0x112e   :  { %8846 = vrcp.f32 %v2648_v38  ;;  %v2647_v40 = vadd.f32 1.0, %v2645_v39  ;;  %v2673_v45 = vmul.f32 %v2671_v42, %v2643_v37  ;;  %v2677_v47 = vmul.f32 1.442695, %v2674_v43 }
0x112f   :  { %v9572_v37 = vsub.s32 7, %v9326_v59 }
0x1130   :  { %8848 = vrcp.f32 %v2647_v40  ;;  %v2675_v8 = vmul.f32 1.442695, %v2673_v45 }
0x1131   :  { %8850 = vpow2.f32 %v2677_v47  ;;  %v2696_v51 = vrot.slane %v9331_v61, %v9572_v37 }
0x1132   :  { %8852 = vpow2.f32 %v2675_v8  ;;  %v632_v8 = vld [vmem:[#allocation5 + $0x20] sm:$0xff] }
0x113b   :  { %v8847_v44 = vpop.eup %8846 }
0x113c   :  { %v2654_v46 = vmul.f32 1.0614054, %v8847_v44 }
0x113d   :  { %v8849_v48 = vpop.eup %8848 }
0x113e   :  { %v2656_v53 = vadd.f32 -1.4531521, %v2654_v46  ;;  %v2653_v54 = vmul.f32 1.0614054, %v8849_v48  ;;  %v8851_v50 = vpop.eup %8850 }
0x113f   :  { %v8853_v20 = vpop.eup %8852 }
0x1140   :  { %v2658_v57 = vmul.f32 %v8847_v44, %v2656_v53  ;;  %v2655_v7 = vadd.f32 -1.4531521, %v2653_v54  ;;  %v638_v54 = vld [vmem:[#allocation5 + $0x50] sm:$0xff] }
0x1141   :  { %8241 = vmatprep.subr.mxu1 %v638_v54 }
0x1142   :  { %v2660_v58 = vadd.f32 1.4214138, %v2658_v57  ;;  %v2657_v62 = vmul.f32 %v8849_v48, %v2655_v7  ;;  %8242 = vmatpush3.msra.mxu1 %v638_v54  ;;  %v629_v57 = vld [vmem:[#allocation5 + $0x8] sm:$0xff]  ;;  %v739_v7 = vld [vmem:[#allocation8 + $0x2d8] sm:$0xff]  ;;  %v680_v54 = vld [vmem:[#allocation8 + $0x100] sm:$0xff] }
0x1144   :  { %v2662_v63 = vmul.f32 %v8847_v44, %v2660_v58  ;;  %v2659_v1 = vadd.f32 1.4214138, %v2657_v62  ;;  %v740_v58 = vld [vmem:[#allocation8 + $0x2e0] sm:$0xff]  ;;  %v734_v62 = vld [vmem:[#allocation8 + $0x2b0] sm:$0xff] }
0x1145   :  { %8252 = vmatprep.subr.mxu0 %v740_v58 }
0x1146   :  { %v2664_v2 = vadd.f32 -0.28449672, %v2662_v63  ;;  %v2661_v3 = vmul.f32 %v8849_v48, %v2659_v1  ;;  %v728_v63 = vld [vmem:[#allocation8 + $0x280] sm:$0xff]  ;;  %v722_v1 = vld [vmem:[#allocation8 + $0x250] sm:$0xff] }
0x1148   :  { %v2666_v4 = vmul.f32 %v8847_v44, %v2664_v2  ;;  %v2663_v6 = vadd.f32 -0.28449672, %v2661_v3  ;;  %v716_v2 = vld [vmem:[#allocation8 + $0x220] sm:$0xff]  ;;  %v710_v3 = vld [vmem:[#allocation8 + $0x1f0] sm:$0xff] }
0x114a   :  { %v2668_v11 = vadd.f32 0.2548296, %v2666_v4  ;;  %v2665_v15 = vmul.f32 %v8849_v48, %v2663_v6 }
0x114c   :  { %v2670_v17 = vmul.f32 %v8847_v44, %v2668_v11  ;;  %v2667_v55 = vadd.f32 0.2548296, %v2665_v15 }
0x114e   :  { %v2680_v56 = vmul.f32 %v8851_v50, %v2670_v17  ;;  %v2669_v18 = vmul.f32 %v8849_v48, %v2667_v55  ;;  %v9582_v55 = vld [vmem:[#allocation10 + $0x18] sm:$0xff] }
0x1150   :  { %v2682_v21 = vsub.f32 1.0, %v2680_v56  ;;  %v2679_v22 = vmul.f32 %v8853_v20, %v2669_v18  ;;  %v2810_v18 = vrot.slane %v9582_v55, %v9329_v60 }
0x1152   :  { %v2686_v23 = vsub.f32 0.0, %v2682_v21  ;;  %v2681_v16 = vsub.f32 1.0, %v2679_v22 }
0x1154   :  { %v2688_v24 = vsel %vm2684_vm5, %v2682_v21, %v2686_v23  ;;  %v2685_v25 = vsub.f32 0.0, %v2681_v16 }
0x1155   :  { %v2690_v26 = vadd.f32 1.0, %v2688_v24 }
0x1156   :  { %v2687_v27 = vsel %vm2683_vm6, %v2681_v16, %v2685_v25  ;;  %v2816_v16 = vrot.slane %v9582_v55, %v9336_v0 }
0x1157   :  { %v2689_v31 = vadd.f32 1.0, %v2687_v27  ;;  %v2692_v36 = vmul.f32 %v2690_v26, %v2640_v32  ;;  %v738_v27 = vld [vmem:[#allocation8 + $0x2d0] sm:$0xff]  ;;  %v727_v32 = vld [vmem:[#allocation8 + $0x278] sm:$0xff] }
0x1159   :  { %v2691_v35 = vmul.f32 %v2689_v31, %v2639_v30  ;;  %v733_v30 = vld [vmem:[#allocation8 + $0x2a8] sm:$0xff]  ;;  %v732_v31 = vld [vmem:[#allocation8 + $0x2a0] sm:$0xff] }
0x115b   :  { %8238 = vmatprep.mubr.msk.f32.mxu0 %vm2697_vm7, %v2691_v35  ;;  %v726_v35 = vld [vmem:[#allocation8 + $0x270] sm:$0xff] }
0x115c   :  { %8239 = vmatmul.mubr.msk.f32.vlgmr.msra.gmra.mxu0 %vm2697_vm7, %v2692_v36  ;;  %v721_v36 = vld [vmem:[#allocation8 + $0x248] sm:$0xff] }
0x115d   :  { %8253 = vmatpush3.msra.mxu0 %v740_v58  ;;  %v666_v58 = vld [vmem:[#allocation8 + $0x90] sm:$0xff] }
0x115e   :  { %8254 = vmatprep.subr.mxu0 %v734_v62 }
0x115f   :  { %8255 = vmatpush3.msra.mxu0 %v734_v62  ;;  %v668_v62 = vld [vmem:[#allocation8 + $0xa0] sm:$0xff] }
0x1160   :  { %8256 = vmatprep.subr.mxu0 %v728_v63 }
0x1161   :  { %8257 = vmatpush3.msra.mxu0 %v728_v63  ;;  %v661_v63 = vld [vmem:[#allocation8 + $0x68] sm:$0xff] }
0x1162   :  { %8258 = vmatprep.subr.mxu0 %v722_v1 }
0x1163   :  { %8259 = vmatpush3.msra.mxu0 %v722_v1  ;;  %v660_v1 = vld [vmem:[#allocation8 + $0x60] sm:$0xff] }
0x1164   :  { %8260 = vmatprep.subr.mxu0 %v716_v2 }
0x1165   :  { %8261 = vmatpush3.msra.mxu0 %v716_v2  ;;  %v662_v2 = vld [vmem:[#allocation8 + $0x70] sm:$0xff] }
0x1166   :  { %8262 = vmatprep.subr.mxu0 %v710_v3 }
0x1167   :  { %8263 = vmatpush3.msra.mxu0 %v710_v3  ;;  %v655_v3 = vld [vmem:[#allocation8 + $0x38] sm:$0xff] }
0x121c   :  { %v8240_v38 = vpop.f32.mrf.mxu0 }
0x121d   :  { %v2776_v52 = vadd.f32 %v8240_v38, %v2696_v51  ;;  %v715_v38 = vld [vmem:[#allocation8 + $0x218] sm:$0xff] }
0x121e   :  { %v2770_v39 = vpop.f32.mrf.mxu0 }
0x121f   :  { %v2771_v40 = vadd.f32 %v2770_v39, %v2696_v51  ;;  %v2780_v33 = vadd.f32 %v2776_v52, %v9560_v13  ;;  %v720_v51 = vld [vmem:[#allocation8 + $0x240] sm:$0xff]  ;;  %v714_v52 = vld [vmem:[#allocation8 + $0x210] sm:$0xff]  ;;  %v709_v39 = vld [vmem:[#allocation8 + $0x1e8] sm:$0xff] }
0x1221   :  { %v2784_v12 = vsel %vm552_vm1, %v2780_v33, 0.0  ;;  %v2779_v41 = vadd.f32 %v2771_v40, %v9556_v19  ;;  %v635_v19 = vld [vmem:[#allocation5 + $0x38] sm:$0xff]  ;;  %v708_v40 = vld [vmem:[#allocation8 + $0x1e0] sm:$0xff] }
0x1222   :  { %2785 = vadd.xlane.f32.xlu0 %v2784_v12  ;;  %8243 = vmatprep.subr.mxu1 %v635_v19  ;;  %v702_v12 = vld [vmem:[#allocation8 + $0x1b0] sm:$0xff] }
0x1223   :  { %v2781_v42 = vsel %vm552_vm1, %v2779_v41, 0.0  ;;  %8244 = vmatpush3.msra.mxu1 %v635_v19  ;;  %v673_v19 = vld [vmem:[#allocation8 + $0xc8] sm:$0xff] }
0x1224   :  { %2782 = vadd.xlane.f32.xlu1 %v2781_v42  ;;  %8245 = vmatprep.subr.mxu1 %v632_v8  ;;  %v697_v42 = vld [vmem:[#allocation8 + $0x188] sm:$0xff] }
0x1225   :  { %8246 = vmatpush3.msra.mxu1 %v632_v8  ;;  %v672_v8 = vld [vmem:[#allocation8 + $0xc0] sm:$0xff] }
0x1226   :  { %8247 = vmatprep.subr.mxu1 %v629_v57 }
0x1227   :  { %8248 = vmatpush3.msra.mxu1 %v629_v57  ;;  %v674_v57 = vld [vmem:[#allocation8 + $0xd0] sm:$0xff] }
0x1228   :  { %2918 = vmatprep.subr.mxu1 %v739_v7  ;;  %v667_v7 = vld [vmem:[#allocation8 + $0x98] sm:$0xff] }
0x12ab   :  { %v2786_v43 = vpop.xlane.xlu0 %2785 }
0x12ac   :  { %v2788_v59 = vmul.f32 0.03125, %v2786_v43  ;;  %v696_v43 = vld [vmem:[#allocation8 + $0x180] sm:$0xff] }
0x12ad   :  { %v2783_v44 = vpop.xlane.xlu1 %2782 }
0x12ae   :  { %v2790_v45 = vsub.f32 %v2780_v33, %v2788_v59  ;;  %v2787_v46 = vmul.f32 0.03125, %v2783_v44  ;;  %v703_v33 = vld [vmem:[#allocation8 + $0x1b8] sm:$0xff]  ;;  %v698_v59 = vld [vmem:[#allocation8 + $0x190] sm:$0xff] }
0x12af   :  { %v691_v44 = vld [vmem:[#allocation8 + $0x158] sm:$0xff] }
0x12b0   :  { %v2789_v61 = vsub.f32 %v2779_v41, %v2787_v46  ;;  %v2792_v47 = vmul.f32 %v2790_v45, %v2790_v45  ;;  %v704_v41 = vld [vmem:[#allocation8 + $0x1c0] sm:$0xff] }
0x12b1   :  { %8264 = vmatprep.subr.mxu0 %v704_v41  ;;  %v692_v46 = vld [vmem:[#allocation8 + $0x160] sm:$0xff] }
0x12b2   :  { %v2796_v48 = vsel %vm552_vm1, %v2792_v47, 0.0  ;;  %v2791_v53 = vmul.f32 %v2789_v61, %v2789_v61  ;;  %8265 = vmatpush3.msra.mxu0 %v704_v41  ;;  %v684_v47 = vld [vmem:[#allocation8 + $0x120] sm:$0xff] }
0x12b3   :  { %2797 = vadd.xlane.f32.xlu0 %v2796_v48  ;;  %8266 = vmatprep.subr.mxu0 %v698_v59  ;;  %v686_v48 = vld [vmem:[#allocation8 + $0x130] sm:$0xff] }
0x12b4   :  { %v2793_v13 = vsel %vm552_vm1, %v2791_v53, 0.0  ;;  %8267 = vmatpush3.msra.mxu0 %v698_v59  ;;  %v679_v53 = vld [vmem:[#allocation8 + $0xf8] sm:$0xff] }
0x12b5   :  { %2794 = vadd.xlane.f32.xlu1 %v2793_v13  ;;  %8268 = vmatprep.subr.mxu0 %v692_v46  ;;  %v678_v13 = vld [vmem:[#allocation8 + $0xf0] sm:$0xff] }
0x12b6   :  { %8269 = vmatpush3.msra.mxu0 %v692_v46 }
0x12b7   :  { %8270 = vmatprep.subr.mxu0 %v686_v48 }
0x12b8   :  { %8271 = vmatpush3.msra.mxu0 %v686_v48 }
0x12b9   :  { %8272 = vmatprep.subr.mxu0 %v680_v54 }
0x12ba   :  { %8273 = vmatpush3.msra.mxu0 %v680_v54 }
0x12bb   :  { %8274 = vmatprep.subr.mxu0 %v674_v57 }
0x12bc   :  { %8275 = vmatpush3.msra.mxu0 %v674_v57 }
0x12bd   :  { %8276 = vmatprep.subr.mxu0 %v668_v62 }
0x12be   :  { %8277 = vmatpush3.msra.mxu0 %v668_v62 }
0x12bf   :  { %8278 = vmatprep.subr.mxu0 %v662_v2 }
0x12c0   :  { %8279 = vmatpush3.msra.mxu0 %v662_v2 }
0x133c   :  { %v2798_v4 = vpop.xlane.xlu0 %2797 }
0x133d   :  { %v2800_v6 = vmul.f32 0.03125, %v2798_v4  ;;  %v654_v4 = vld [vmem:[#allocation8 + $0x30] sm:$0xff] }
0x133e   :  { %v2795_v11 = vpop.xlane.xlu1 %2794 }
0x133f   :  { %v2802_v15 = vadd.f32 1e-06, %v2800_v6  ;;  %v2799_v17 = vmul.f32 0.03125, %v2795_v11  ;;  %v656_v6 = vld [vmem:[#allocation8 + $0x40] sm:$0xff]  ;;  %v649_v11 = vld [vmem:[#allocation8 + $0x8] sm:$0xff] }
0x1340   :  { %8280 = vmatprep.subr.mxu0 %v656_v6 }
0x1341   :  { %8854 = vrsqrt.f32 %v2802_v15  ;;  %v2801_v50 = vadd.f32 1e-06, %v2799_v17  ;;  %v648_v15 = vld [vmem:[#allocation8] sm:$0xff]  ;;  %v650_v17 = vld [vmem:[#allocation8 + $0x10] sm:$0xff]  ;;  %8281 = vmatpush3.msra.mxu0 %v656_v6 }
0x1342   :  { %8282 = vmatprep.subr.mxu0 %v650_v17 }
0x1343   :  { %8856 = vrsqrt.f32 %v2801_v50  ;;  %8283 = vmatpush3.msra.mxu0 %v650_v17  ;;  %v9599_v50 = vld [vmem:[#allocation10 + $0x30] sm:$0xff] }
0x1344   :  { %8287 = vmatprep.subr.mxu0 %v9100_v14 }
0x134e   :  { %v8855_v56 = vpop.eup %8854 }
0x134f   :  { %v2806_v20 = vmul.f32 %v8855_v56, %v2790_v45  ;;  %v690_v45 = vld [vmem:[#allocation8 + $0x150] sm:$0xff]  ;;  %v2822_v56 = vrot.slane %v9599_v50, %v9349_v9 }
0x1350   :  { %v8857_v21 = vpop.eup %8856 }
0x1351   :  { %v2805_v22 = vmul.f32 %v8857_v21, %v2789_v61  ;;  %v2812_v23 = vmul.f32 %v2810_v18, %v2806_v20  ;;  %v685_v61 = vld [vmem:[#allocation8 + $0x128] sm:$0xff] }
0x1353   :  { %v2811_v24 = vmul.f32 %v2810_v18, %v2805_v22  ;;  %v9590_v26 = vadd.f32 %v2816_v16, %v2812_v23 }
0x1355   :  { %v9588_v25 = vadd.f32 %v2816_v16, %v2811_v24  ;;  %v175_v24 = vld [vmem:[#allocation10 + $0x38] sm:$0xff] }
0x1357   :  { %8249 = vmatprep.mubr.msk.f32.mxu1 %vm552_vm1, %v9588_v25 }
0x1358   :  { %8250 = vmatmul.mubr.msk.f32.vlgmr.msra.gmra.mxu1 %vm552_vm1, %v9590_v26 }
0x1359   :  { %2919 = vmatpush1.msra.mxu1 %v738_v27  ;;  %2982 = vmatprep.mubr.f32.mxu1 %v9100_v14  ;;  %v2913_v27 = vrot.slane %v175_v24, %v9536_v49 }
0x135a   :  { %2920 = vmatprep.subr.mxu1 %v733_v30 }
0x135b   :  { %2921 = vmatpush1.msra.mxu1 %v732_v31 }
0x135c   :  { %2922 = vmatprep.subr.mxu1 %v727_v32  ;;  %v2909_v32 = vrot.slane %v9599_v50, %v9536_v49 }
0x135d   :  { %2923 = vmatpush1.msra.mxu1 %v726_v35  ;;  %v176_v35 = vld [vmem:[#allocation10 + $0x40] sm:$0xff] }
0x135e   :  { %2924 = vmatprep.subr.mxu1 %v721_v36 }
0x135f   :  { %2925 = vmatpush1.msra.mxu1 %v720_v51 }
0x1360   :  { %2926 = vmatprep.subr.mxu1 %v715_v38 }
0x1361   :  { %2927 = vmatpush1.msra.mxu1 %v714_v52 }
0x1362   :  { %2928 = vmatprep.subr.mxu1 %v709_v39  ;;  %v2917_v39 = vrot.slane %v176_v35, %v9536_v49 }
0x1363   :  { %2929 = vmatpush1.msra.mxu1 %v708_v40 }
0x1364   :  { %2930 = vmatprep.subr.mxu1 %v703_v33 }
0x1365   :  { %2931 = vmatpush1.msra.mxu1 %v702_v12 }
0x1366   :  { %2932 = vmatprep.subr.mxu1 %v697_v42 }
0x1367   :  { %2933 = vmatpush1.msra.mxu1 %v696_v43 }
0x1368   :  { %2934 = vmatprep.subr.mxu1 %v691_v44 }
0x1369   :  { %2935 = vmatpush1.msra.mxu1 %v690_v45 }
0x136a   :  { %2936 = vmatprep.subr.mxu1 %v685_v61 }
0x136b   :  { %2937 = vmatpush1.msra.mxu1 %v684_v47 }
0x136c   :  { %2938 = vmatprep.subr.mxu1 %v679_v53 }
0x136d   :  { %2939 = vmatpush1.msra.mxu1 %v678_v13 }
0x136e   :  { %2940 = vmatprep.subr.mxu1 %v673_v19 }
0x136f   :  { %2941 = vmatpush1.msra.mxu1 %v672_v8 }
0x1370   :  { %2942 = vmatprep.subr.mxu1 %v667_v7 }
0x1371   :  { %2943 = vmatpush1.msra.mxu1 %v666_v58 }
0x1372   :  { %2944 = vmatprep.subr.mxu1 %v661_v63 }
0x1373   :  { %2945 = vmatpush1.msra.mxu1 %v660_v1 }
0x1374   :  { %2946 = vmatprep.subr.mxu1 %v655_v3 }
0x1375   :  { %2947 = vmatpush1.msra.mxu1 %v654_v4 }
0x1376   :  { %2948 = vmatprep.subr.mxu1 %v649_v11 }
0x1377   :  { %2949 = vmatpush1.msra.mxu1 %v648_v15 }
0x1378   :  { %8292 = vmatprep.subr.mxu1 %v9100_v14 }
0x1418   :  { %v8251_v18 = vpop.f32.mrf.mxu1 }
0x1419   :  { %v2901_v20 = vadd.f32 %v8251_v18, %v2822_v56 }
0x141a   :  { %v2895_v21 = vpop.f32.mrf.mxu1 }
0x141b   :  { %v2896_v22 = vadd.f32 %v2895_v21, %v2822_v56 }
0x141d   :  { %8858 = vtanh.f32 %v2896_v22 }
0x141e   :  { %8860 = vtanh.f32 %v2901_v20 }
0x142a   :  { %v8859_v23 = vpop.eup %8858 }
0x142b   :  { %v8861_v16 = vpop.eup %8860  ;;  %2983 = vmatmul.mubr.f32.vlgmr.msra.gmra.mxu1 %v8859_v23  ;;  %8284 = vmatprep.mubr.f32.mxu0 %v8859_v23 }
0x142c   :  { %8285 = vmatmul.mubr.f32.vlgmr.msra.gmra.mxu0 %v8861_v16  ;;  %2988 = vmatprep.mubr.f32.mxu1 %v9100_v14 }
0x142d   :  { %8289 = vmatprep.mubr.msk.f32.mxu0 %vm9101_vm2, %v9100_v14 }
0x142f   :  { %2989 = vmatmul.mubr.f32.gmra.mxu1 %v8861_v16 }
0x1430   :  { %8294 = vmatprep.mubr.msk.f32.mxu1 %vm9101_vm2, %v9100_v14 }
0x14eb   :  { %v2984_v30 = vpop.f32.mrf.mxu1 }
0x14ec   :  { %v8286_v31 = vpop.f32.mrf.mxu0  ;;  %v2985_v40 = vadd.f32 %v2984_v30, %v2909_v32 }
0x14ed   :  { %v2986_v36 = vpop.f32.mrf.mxu1  ;;  %v9622_v43 = vadd.f32 %v8286_v31, %v2917_v39 }
0x14ee   :  { %v2987_v51 = vadd.f32 %v2986_v36, %v2913_v27  ;;  %v3061_v38 = vpop.f32.mrf.mxu0 }
0x14ef   :  { %v2990_v52 = vpop.f32.mrf.mxu1  ;;  %v9614_v12 = vadd.f32 %v3061_v38, %v2917_v39 }
0x14f0   :  { %8288 = vmatpush3.xpose.msk.msra.mxu0 %vm2697_vm7, %v2987_v51  ;;  %v2991_v42 = vadd.f32 %v2990_v52, %v2909_v32 }
0x14f1   :  { %v2992_v33 = vpop.f32.mrf.mxu1  ;;  %8297 = vmatprep.subr.mxu0 %v9100_v14 }
0x14f2   :  { %v2993_v41 = vadd.f32 %v2992_v33, %v2913_v27 }
0x14f3   :  { %8290 = vmatmul.mubr.msk.f32.vlgmr.msra.gmra.mxu0 %vm2697_vm7, %v2985_v40 }
0x14f4   :  { %8293 = vmatpush3.xpose.msk.msra.mxu1 %vm2697_vm7, %v2993_v41  ;;  %8298 = vmatpush3.msra.mxu0 %v9614_v12 }
0x14f5   :  { %8302 = vmatprep.subr.mxu1 %v9100_v14  ;;  %8299 = vmatprep.mubr.msk.f32.mxu0 %vm9101_vm2, %v9100_v14 }
0x14f6   :  { %8307 = vmatprep.subr.mxu0 %v9100_v14 }
0x14f7   :  { %8295 = vmatmul.mubr.msk.f32.vlgmr.msra.gmra.mxu1 %vm2697_vm7, %v2991_v42 }
0x14f8   :  { %8303 = vmatpush3.msra.mxu1 %v9622_v43  ;;  %8304 = vmatprep.mubr.msk.f32.mxu1 %vm9101_vm2, %v9100_v14 }
0x14f9   :  { %8312 = vmatprep.subr.mxu1 %v9100_v14 }
0x15b3   :  { %v3142_v59 = vpop.f32.mrf.mxu0 }
0x15b4   :  { %v3222_v44 = vmul.f32 0.125, %v3142_v59 }
0x15b5   :  { %v8291_v45 = vpop.f32.mrf.mxu0 }
0x15b6   :  { %v3224_v46 = vadd.f32 %v3222_v44, %v9382_v28 }
0x15b7   :  { %v3218_v61 = vpop.f32.mrf.mxu1 }
0x15b8   :  { %v3223_v47 = vmul.f32 0.125, %v3218_v61  ;;  %v3226_v48 = vsel %vm832_vm3, %v3224_v46, -inf }
0x15b9   :  { %v8296_v53 = vpop.f32.mrf.mxu1  ;;  %3227 = vmax.xlane.f32.xlu1 %v3226_v48 }
0x15ba   :  { %v3225_v13 = vadd.f32 %v3223_v47, %v9386_v34 }
0x15bc   :  { %v3229_v54 = vsel %vm832_vm3, %v3225_v13, -inf }
0x15bd   :  { %3230 = vmax.xlane.f32.xlu0 %v3229_v54 }
0x15ca   :  { %3396 = vrot.lane.b32.xlu1 %v2987_v51, %s9105_s1 }
0x1642   :  { %v3228_v19 = vpop.xlane.xlu1 %3227 }
0x1643   :  { %v3232_v8 = vsub.f32 %v3224_v46, %v3228_v19  ;;  %v693_v19 = vld [vmem:[#allocation8 + $0x168] sm:$0xff] }
0x1645   :  { %v3234_v57 = vmul.f32 1.442695, %v3232_v8 }
0x1646   :  { %v3231_v7 = vpop.xlane.xlu0 %3230  ;;  %v3397_v4 = vpop.permute.xlu1 %3396 }
0x1647   :  { %8862 = vpow2.f32 %v3234_v57  ;;  %v3233_v58 = vsub.f32 %v3225_v13, %v3231_v7 }
0x1649   :  { %v3236_v62 = vmul.f32 1.442695, %v3233_v58  ;;  %v735_v58 = vld [vmem:[#allocation8 + $0x2b8] sm:$0xff] }
0x164b   :  { %8864 = vpow2.f32 %v3236_v62 }
0x1654   :  { %v8863_v63 = vpop.eup %8862 }
0x1655   :  { %v3238_v1 = vsel %vm832_vm3, %v8863_v63, 0.0 }
0x1656   :  { %3239 = vadd.xlane.f32.xlu1 %v3238_v1 }
0x1658   :  { %v8865_v2 = vpop.eup %8864 }
0x1659   :  { %v3241_v3 = vsel %vm832_vm3, %v8865_v2, 0.0 }
0x165a   :  { %3242 = vadd.xlane.f32.xlu0 %v3241_v3  ;;  %v681_v3 = vld [vmem:[#allocation8 + $0x108] sm:$0xff] }
0x1667   :  { %3394 = vrot.lane.b32.xlu1 %v2985_v40, %s9105_s1 }
0x166b   :  { %3472 = vrot.lane.b32.xlu1 %v2991_v42, %s9105_s1 }
0x1670   :  { %3474 = vrot.lane.b32.xlu0 %v2993_v41, %s9105_s1 }
0x16df   :  { %v3240_v6 = vpop.xlane.xlu1 %3239 }
0x16e0   :  { %8866 = vrcp.f32 %v3240_v6  ;;  %v675_v6 = vld [vmem:[#allocation8 + $0xd8] sm:$0xff] }
0x16e3   :  { %v3243_v11 = vpop.xlane.xlu0 %3242  ;;  %v3395_v18 = vpop.permute.xlu1 %3394 }
0x16e4   :  { %8868 = vrcp.f32 %v3243_v11  ;;  %v711_v11 = vld [vmem:[#allocation8 + $0x1f8] sm:$0xff] }
0x16e7   :  { %v3475_v21 = vpop.permute.xlu0 %3474  ;;  %v3473_v22 = vpop.permute.xlu1 %3472 }
0x16ed   :  { %v8867_v15 = vpop.eup %8866 }
0x16ee   :  { %v3246_v17 = vmul.f32 %v8867_v15, %v8863_v63  ;;  %v729_v63 = vld [vmem:[#allocation8 + $0x288] sm:$0xff] }
0x16ef   :  { %v669_v15 = vld [vmem:[#allocation8 + $0xa8] sm:$0xff] }
0x16f0   :  { %8300 = vmatmul.mubr.msk.f32.vlgmr.msra.gmra.mxu0 %vm832_vm3, %v3246_v17  ;;  %v663_v17 = vld [vmem:[#allocation8 + $0x78] sm:$0xff] }
0x16f1   :  { %v8869_v56 = vpop.eup %8868  ;;  %8308 = vmatpush3.xpose.msk.msra.mxu0 %vm2697_vm7, %v3397_v4  ;;  %8309 = vmatprep.mubr.msk.f32.mxu0 %vm9101_vm2, %v9100_v14  ;;  %v717_v4 = vld [vmem:[#allocation8 + $0x228] sm:$0xff] }
0x16f2   :  { %v3247_v20 = vmul.f32 %v8869_v56, %v8865_v2  ;;  %8317 = vmatprep.subr.mxu0 %v9100_v14  ;;  %v723_v2 = vld [vmem:[#allocation8 + $0x258] sm:$0xff]  ;;  %v657_v56 = vld [vmem:[#allocation8 + $0x48] sm:$0xff] }
0x16f4   :  { %8305 = vmatmul.mubr.msk.f32.vlgmr.msra.gmra.mxu1 %vm832_vm3, %v3247_v20  ;;  %8310 = vmatmul.mubr.msk.f32.vlgmr.msra.gmra.mxu0 %vm2697_vm7, %v3395_v18  ;;  %v651_v18 = vld [vmem:[#allocation8 + $0x18] sm:$0xff]  ;;  %v705_v20 = vld [vmem:[#allocation8 + $0x1c8] sm:$0xff] }
0x16f5   :  { %8313 = vmatpush3.xpose.msk.msra.mxu1 %vm2697_vm7, %v3475_v21  ;;  %8314 = vmatprep.mubr.msk.f32.mxu1 %vm9101_vm2, %v9100_v14  ;;  %v699_v21 = vld [vmem:[#allocation8 + $0x198] sm:$0xff] }
0x16f6   :  { %8322 = vmatprep.subr.mxu1 %v9100_v14  ;;  %8319 = vmatprep.mubr.msk.f32.mxu0 %vm9101_vm2, %v9100_v14 }
0x16f8   :  { %8315 = vmatmul.mubr.msk.f32.vlgmr.msra.gmra.mxu1 %vm2697_vm7, %v3473_v22 }
0x16f9   :  { %8324 = vmatprep.mubr.msk.f32.mxu1 %vm9101_vm2, %v9100_v14 }
0x17b0   :  { %v3317_v23 = vpop.f32.mrf.mxu0 }
0x17b2   :  { %v8301_v16 = vpop.f32.mrf.mxu0 }
0x17b3   :  { %v742_v16 = vld [vmem:[#allocation8 + $0x2f0] sm:$0xff] }
0x17b4   :  { %v9656_v24 = vpop.f32.mrf.mxu1  ;;  %v3468_v27 = vpop.f32.mrf.mxu0 }
0x17b5   :  { %v3550_v30 = vmul.f32 0.125, %v3468_v27 }
0x17b6   :  { %v8306_v31 = vpop.f32.mrf.mxu1  ;;  %v8311_v32 = vpop.f32.mrf.mxu0 }
0x17b7   :  { %v3552_v35 = vadd.f32 %v3550_v30, %v9382_v28  ;;  %v730_v31 = vld [vmem:[#allocation8 + $0x290] sm:$0xff]  ;;  %v724_v32 = vld [vmem:[#allocation8 + $0x260] sm:$0xff] }
0x17b8   :  { %v3546_v36 = vpop.f32.mrf.mxu1 }
0x17b9   :  { %v3551_v51 = vmul.f32 0.125, %v3546_v36  ;;  %v3554_v38 = vsel %vm832_vm3, %v3552_v35, -inf  ;;  %v712_v36 = vld [vmem:[#allocation8 + $0x200] sm:$0xff] }
0x17ba   :  { %v8316_v52 = vpop.f32.mrf.mxu1  ;;  %3555 = vmax.xlane.f32.xlu0 %v3554_v38  ;;  %v700_v38 = vld [vmem:[#allocation8 + $0x1a0] sm:$0xff] }
0x17bb   :  { %v3553_v39 = vadd.f32 %v3551_v51, %v9386_v34  ;;  %v706_v51 = vld [vmem:[#allocation8 + $0x1d0] sm:$0xff] }
0x17bc   :  { %v694_v52 = vld [vmem:[#allocation8 + $0x170] sm:$0xff] }
0x17bd   :  { %v3557_v40 = vsel %vm832_vm3, %v3553_v39, -inf }
0x17be   :  { %3558 = vmax.xlane.f32.xlu1 %v3557_v40  ;;  %v682_v40 = vld [vmem:[#allocation8 + $0x110] sm:$0xff] }
0x17cf   :  { %3577 = vrot.lane.b32.xlu1 %v9614_v12, %s9105_s1  ;;  %v741_v12 = vld [vmem:[#allocation8 + $0x2e8] sm:$0xff] }
0x1843   :  { %v3556_v33 = vpop.xlane.xlu0 %3555 }
0x1844   :  { %v3560_v41 = vsub.f32 %v3552_v35, %v3556_v33  ;;  %v718_v35 = vld [vmem:[#allocation8 + $0x230] sm:$0xff]  ;;  %v676_v33 = vld [vmem:[#allocation8 + $0xe0] sm:$0xff] }
0x1846   :  { %v3562_v42 = vmul.f32 1.442695, %v3560_v41  ;;  %v670_v41 = vld [vmem:[#allocation8 + $0xb0] sm:$0xff] }
0x1847   :  { %v3559_v59 = vpop.xlane.xlu1 %3558 }
0x1848   :  { %8870 = vpow2.f32 %v3562_v42  ;;  %v3561_v44 = vsub.f32 %v3553_v39, %v3559_v59  ;;  %v688_v39 = vld [vmem:[#allocation8 + $0x140] sm:$0xff]  ;;  %v658_v59 = vld [vmem:[#allocation8 + $0x50] sm:$0xff] }
0x1849   :  { %v664_v42 = vld [vmem:[#allocation8 + $0x80] sm:$0xff] }
0x184a   :  { %v3564_v45 = vmul.f32 1.442695, %v3561_v44  ;;  %v652_v44 = vld [vmem:[#allocation8 + $0x20] sm:$0xff] }
0x184b   :  { %v3578_v46 = vpop.permute.xlu1 %3577 }
0x184c   :  { %8872 = vpow2.f32 %v3564_v45  ;;  %8318 = vmatpush3.msra.mxu0 %v3578_v46  ;;  %v9695_v45 = vld [vmem:[#allocation5 + $0xa8] sm:$0xff]  ;;  %v743_v46 = vld [vmem:[#allocation8 + $0x2f8] sm:$0xff] }
0x184d   :  { %8327 = vmatprep.subr.mxu0 %v741_v12 }
0x1855   :  { %v8871_v61 = vpop.eup %8870 }
0x1856   :  { %v3566_v47 = vsel %vm832_vm3, %v8871_v61, 0.0 }
0x1857   :  { %3567 = vadd.xlane.f32.xlu0 %v3566_v47  ;;  %v731_v47 = vld [vmem:[#allocation8 + $0x298] sm:$0xff] }
0x1859   :  { %v8873_v48 = vpop.eup %8872 }
0x185a   :  { %v3569_v53 = vsel %vm832_vm3, %v8873_v48, 0.0 }
0x185b   :  { %3570 = vadd.xlane.f32.xlu0 %v3569_v53  ;;  %v719_v53 = vld [vmem:[#allocation8 + $0x238] sm:$0xff] }
0x1871   :  { %3654 = vrot.lane.b32.xlu0 %v9622_v43, %s9105_s1  ;;  %v687_v43 = vld [vmem:[#allocation8 + $0x138] sm:$0xff] }
0x18e0   :  { %v3568_v13 = vpop.xlane.xlu0 %3567 }
0x18e1   :  { %8874 = vrcp.f32 %v3568_v13  ;;  %v707_v13 = vld [vmem:[#allocation8 + $0x1d8] sm:$0xff] }
0x18e4   :  { %v3571_v54 = vpop.xlane.xlu0 %3570 }
0x18e5   :  { %8876 = vrcp.f32 %v3571_v54 }
0x18e8   :  { %v3655_v8 = vpop.permute.xlu0 %3654 }
0x18e9   :  { %8323 = vmatpush3.msra.mxu1 %v3655_v8 }
0x18ea   :  { %8346 = vmatprep.subr.mxu1 %v693_v19 }
0x18ee   :  { %v8875_v57 = vpop.eup %8874 }
0x18ef   :  { %v3574_v7 = vmul.f32 %v8875_v57, %v8871_v61  ;;  %v737_v61 = vld [vmem:[#allocation8 + $0x2c8] sm:$0xff] }
0x18f1   :  { %8320 = vmatmul.mubr.msk.f32.vlgmr.msra.gmra.mxu0 %vm832_vm3, %v3574_v7 }
0x18f2   :  { %v8877_v62 = vpop.eup %8876  ;;  %8328 = vmatpush3.msra.mxu0 %v741_v12  ;;  %v713_v12 = vld [vmem:[#allocation8 + $0x208] sm:$0xff] }
0x18f3   :  { %v3575_v1 = vmul.f32 %v8877_v62, %v8873_v48  ;;  %8329 = vmatprep.subr.mxu0 %v735_v58  ;;  %v725_v48 = vld [vmem:[#allocation8 + $0x268] sm:$0xff] }
0x18f4   :  { %8330 = vmatpush3.msra.mxu0 %v735_v58 }
0x18f5   :  { %8325 = vmatmul.mubr.msk.f32.vlgmr.msra.gmra.mxu1 %vm832_vm3, %v3575_v1  ;;  %8331 = vmatprep.subr.mxu0 %v729_v63 }
0x18f6   :  { %8347 = vmatpush3.msra.mxu1 %v693_v19  ;;  %8362 = vmatprep.mubr.msk.f32.mxu1 %vm2697_vm7, %v3317_v23  ;;  %v3895_v19 = vrot.slane %v9599_v50, %v9547_v5 }
0x18f7   :  { %8348 = vmatprep.subr.mxu1 %v687_v43  ;;  %8332 = vmatpush3.msra.mxu0 %v729_v63 }
0x18f8   :  { %8349 = vmatpush3.msra.mxu1 %v687_v43  ;;  %8333 = vmatprep.subr.mxu0 %v723_v2 }
0x18f9   :  { %8350 = vmatprep.subr.mxu1 %v681_v3  ;;  %8334 = vmatpush3.msra.mxu0 %v723_v2 }
0x18fa   :  { %8351 = vmatpush3.msra.mxu1 %v681_v3  ;;  %8335 = vmatprep.subr.mxu0 %v717_v4  ;;  %v9709_v3 = vld [vmem:[#allocation5 + $0x90] sm:$0xff] }
0x18fb   :  { %8352 = vmatprep.subr.mxu1 %v675_v6  ;;  %8336 = vmatpush3.msra.mxu0 %v717_v4  ;;  %v9714_v4 = vld [vmem:[#allocation5 + $0x78] sm:$0xff] }
0x18fc   :  { %8353 = vmatpush3.msra.mxu1 %v675_v6  ;;  %8337 = vmatprep.subr.mxu0 %v711_v11  ;;  %v9718_v6 = vld [vmem:[#allocation5 + $0x60] sm:$0xff] }
0x18fd   :  { %8354 = vmatprep.subr.mxu1 %v669_v15  ;;  %8338 = vmatpush3.msra.mxu0 %v711_v11  ;;  %v701_v11 = vld [vmem:[#allocation8 + $0x1a8] sm:$0xff] }
0x18fe   :  { %8355 = vmatpush3.msra.mxu1 %v669_v15  ;;  %8339 = vmatprep.subr.mxu0 %v705_v20  ;;  %v695_v15 = vld [vmem:[#allocation8 + $0x178] sm:$0xff] }
0x18ff   :  { %8356 = vmatprep.subr.mxu1 %v663_v17  ;;  %8340 = vmatpush3.msra.mxu0 %v705_v20  ;;  %v671_v20 = vld [vmem:[#allocation8 + $0xb8] sm:$0xff] }
0x1900   :  { %8357 = vmatpush3.msra.mxu1 %v663_v17  ;;  %8341 = vmatprep.subr.mxu0 %v699_v21  ;;  %v689_v17 = vld [vmem:[#allocation8 + $0x148] sm:$0xff] }
0x1901   :  { %8358 = vmatprep.subr.mxu1 %v657_v56  ;;  %8342 = vmatpush3.msra.mxu0 %v699_v21  ;;  %v665_v21 = vld [vmem:[#allocation8 + $0x88] sm:$0xff] }
0x1902   :  { %8359 = vmatpush3.msra.mxu1 %v657_v56  ;;  %8365 = vmatprep.subr.mxu0 %v9100_v14  ;;  %v683_v56 = vld [vmem:[#allocation8 + $0x118] sm:$0xff] }
0x1903   :  { %8360 = vmatprep.subr.mxu1 %v651_v18 }
0x1904   :  { %8361 = vmatpush3.msra.mxu1 %v651_v18  ;;  %v677_v18 = vld [vmem:[#allocation8 + $0xe8] sm:$0xff] }
0x1905   :  { %8363 = vmatmul.mubr.msk.f32.vlgmr.msra.gmra.mxu1 %vm2697_vm7, %v9656_v24  ;;  %8400 = vmatprep.subr.mxu1 %v9100_v14  ;;  %v736_v24 = vld [vmem:[#allocation8 + $0x2c0] sm:$0xff] }
0x1906   :  { %8432 = vmatprep.mubr.msk.f32.mxu1 %vm9101_vm2, %v9100_v14  ;;  %8401 = vmatpush3.msra.mxu1 %v743_v46 }
0x1907   :  { %8402 = vmatprep.subr.mxu1 %v9100_v14 }
0x1908   :  { %8403 = vmatpush3.msra.mxu1 %v737_v61 }
0x1909   :  { %8404 = vmatprep.subr.mxu1 %v9100_v14 }
0x190a   :  { %8405 = vmatpush3.msra.mxu1 %v731_v47 }
0x190b   :  { %8406 = vmatprep.subr.mxu1 %v9100_v14 }
0x190c   :  { %8407 = vmatpush3.msra.mxu1 %v725_v48 }
0x190d   :  { %8408 = vmatprep.subr.mxu1 %v9100_v14 }
0x190e   :  { %8409 = vmatpush3.msra.mxu1 %v719_v53 }
0x190f   :  { %8410 = vmatprep.subr.mxu1 %v9100_v14 }
0x1910   :  { %8411 = vmatpush3.msra.mxu1 %v713_v12 }
0x1911   :  { %8412 = vmatprep.subr.mxu1 %v9100_v14 }
0x1912   :  { %8413 = vmatpush3.msra.mxu1 %v707_v13 }
0x1913   :  { %8414 = vmatprep.subr.mxu1 %v9100_v14 }
0x1914   :  { %8415 = vmatpush3.msra.mxu1 %v701_v11 }
0x1915   :  { %8416 = vmatprep.subr.mxu1 %v9100_v14 }
0x1916   :  { %8417 = vmatpush3.msra.mxu1 %v695_v15 }
0x1917   :  { %8418 = vmatprep.subr.mxu1 %v9100_v14 }
0x1918   :  { %8419 = vmatpush3.msra.mxu1 %v689_v17 }
0x1919   :  { %8420 = vmatprep.subr.mxu1 %v9100_v14 }
0x191a   :  { %8421 = vmatpush3.msra.mxu1 %v683_v56 }
0x191b   :  { %8422 = vmatprep.subr.mxu1 %v9100_v14 }
0x191c   :  { %8423 = vmatpush3.msra.mxu1 %v677_v18 }
0x191d   :  { %8424 = vmatprep.subr.mxu1 %v9100_v14 }
0x191e   :  { %8425 = vmatpush3.msra.mxu1 %v671_v20 }
0x191f   :  { %8426 = vmatprep.subr.mxu1 %v9100_v14 }
0x1920   :  { %8427 = vmatpush3.msra.mxu1 %v665_v21 }
0x1921   :  { %8428 = vmatprep.subr.mxu1 %v9100_v14 }
0x19b1   :  { %v3649_v22 = vpop.f32.mrf.mxu0 }
0x19b2   :  { %8343 = vmatprep.mubr.msk.f32.mxu0 %vm2697_vm7, %v3649_v22  ;;  %v659_v22 = vld [vmem:[#allocation8 + $0x58] sm:$0xff] }
0x19b3   :  { %v8321_v23 = vpop.f32.mrf.mxu0  ;;  %8429 = vmatpush3.msra.mxu1 %v659_v22 }
0x19b4   :  { %v653_v23 = vld [vmem:[#allocation8 + $0x28] sm:$0xff]  ;;  %8430 = vmatprep.subr.mxu1 %v9100_v14 }
0x19b5   :  { %v3726_v27 = vpop.f32.mrf.mxu1  ;;  %8431 = vmatpush3.msra.mxu1 %v653_v23 }
0x19b6   :  { %8344 = vmatmul.mubr.msk.f32.vlgmr.msra.gmra.mxu0 %vm2697_vm7, %v3726_v27  ;;  %8446 = vmatprep.subr.mxu1 %v9100_v14 }
0x19b7   :  { %v8326_v30 = vpop.f32.mrf.mxu1  ;;  %8366 = vmatpush3.msra.mxu0 %v742_v16  ;;  %8397 = vmatprep.mubr.msk.f32.mxu0 %vm9101_vm2, %v9100_v14  ;;  %v3901_v16 = vrot.slane %v9599_v50, %v9550_v10 }
0x19b8   :  { %8367 = vmatprep.subr.mxu0 %v9100_v14 }
0x19b9   :  { %8368 = vmatpush3.msra.mxu0 %v736_v24 }
0x19ba   :  { %8369 = vmatprep.subr.mxu0 %v9100_v14 }
0x19bb   :  { %8370 = vmatpush3.msra.mxu0 %v730_v31 }
0x19bc   :  { %8371 = vmatprep.subr.mxu0 %v9100_v14 }
0x19bd   :  { %8372 = vmatpush3.msra.mxu0 %v724_v32  ;;  %v4197_v32 = vrot.slane %v9582_v55, %v9349_v9 }
0x19be   :  { %8373 = vmatprep.subr.mxu0 %v9100_v14 }
0x19bf   :  { %8374 = vmatpush3.msra.mxu0 %v718_v35 }
0x19c0   :  { %8375 = vmatprep.subr.mxu0 %v9100_v14 }
0x19c1   :  { %8376 = vmatpush3.msra.mxu0 %v712_v36 }
0x19c2   :  { %8377 = vmatprep.subr.mxu0 %v9100_v14 }
0x19c3   :  { %8378 = vmatpush3.msra.mxu0 %v706_v51 }
0x19c4   :  { %8379 = vmatprep.subr.mxu0 %v9100_v14 }
0x19c5   :  { %8380 = vmatpush3.msra.mxu0 %v700_v38  ;;  %v8364_v54 = vpop.f32.mrf.mxu1 }
0x19c6   :  { %8381 = vmatprep.subr.mxu0 %v9100_v14 }
0x19c7   :  { %8382 = vmatpush3.msra.mxu0 %v694_v52  ;;  %v3883_v7 = vpop.f32.mrf.mxu1 }
0x19c8   :  { %8383 = vmatprep.subr.mxu0 %v9100_v14 }
0x19c9   :  { %8384 = vmatpush3.msra.mxu0 %v688_v39 }
0x19ca   :  { %8385 = vmatprep.subr.mxu0 %v9100_v14 }
0x19cb   :  { %8386 = vmatpush3.msra.mxu0 %v682_v40 }
0x19cc   :  { %8387 = vmatprep.subr.mxu0 %v9100_v14 }
0x19cd   :  { %8388 = vmatpush3.msra.mxu0 %v676_v33 }
0x19ce   :  { %8389 = vmatprep.subr.mxu0 %v9100_v14 }
0x19cf   :  { %8390 = vmatpush3.msra.mxu0 %v670_v41 }
0x19d0   :  { %8391 = vmatprep.subr.mxu0 %v9100_v14 }
0x19d1   :  { %8392 = vmatpush3.msra.mxu0 %v664_v42 }
0x19d2   :  { %8393 = vmatprep.subr.mxu0 %v9100_v14 }
0x19d3   :  { %8394 = vmatpush3.msra.mxu0 %v658_v59 }
0x19d4   :  { %8395 = vmatprep.subr.mxu0 %v9100_v14 }
0x19d5   :  { %8396 = vmatpush3.msra.mxu0 %v652_v44 }
0x19d6   :  { %8435 = vmatprep.subr.mxu0 %v9695_v45 }
0x1a76   :  { %v8345_v8 = vpop.f32.mrf.mxu0 }
0x1a77   :  { %v3889_v57 = vadd.f32 %v8364_v54, %v8345_v8 }
0x1a78   :  { %v3802_v58 = vpop.f32.mrf.mxu0 }
0x1a79   :  { %v3897_v62 = vadd.f32 %v3895_v19, %v3889_v57  ;;  %v3884_v63 = vadd.f32 %v3883_v7, %v3802_v58 }
0x1a7b   :  { %v3904_v1 = vrot.slane %v3897_v62, 7  ;;  %v3896_v43 = vadd.f32 %v3895_v19, %v3884_v63 }
0x1a7d   :  { %v3906_v2 = vsel %vm3905_vm0, %v3904_v1, %v3896_v43 }
0x1a7e   :  { %8398 = vmatmul.mubr.f32.vlgmr.msra.gmra.mxu0 %v3906_v2 }
0x1a7f   :  { %8436 = vmatpush3.msra.mxu0 %v9695_v45  ;;  %8443 = vmatprep.mubr.msk.f32.mxu0 %vm552_vm1, %v9588_v25 }
0x1a80   :  { %8437 = vmatprep.subr.mxu0 %v9709_v3 }
0x1a81   :  { %8438 = vmatpush3.msra.mxu0 %v9709_v3 }
0x1a82   :  { %8439 = vmatprep.subr.mxu0 %v9714_v4 }
0x1a83   :  { %8440 = vmatpush3.msra.mxu0 %v9714_v4 }
0x1a84   :  { %8441 = vmatprep.subr.mxu0 %v9718_v6 }
0x1a85   :  { %8442 = vmatpush3.msra.mxu0 %v9718_v6 }
0x1a86   :  { %8444 = vmatmul.mubr.msk.f32.vlgmr.msra.gmra.mxu0 %vm552_vm1, %v9590_v26  ;;  %8456 = vmatprep.subr.mxu0 %v9100_v14 }
0x1a87   :  { %8458 = vmatprep.mubr.msk.f32.mxu0 %vm9101_vm2, %v9100_v14 }
0x1b3e   :  { %v3974_v27 = vpop.f32.mrf.mxu0 }
0x1b3f   :  { %v3975_v24 = vadd.f32 %v3974_v27, %v3901_v16 }
0x1b40   :  { %v8399_v30 = vpop.f32.mrf.mxu0 }
0x1b41   :  { %8878 = vtanh.f32 %v3975_v24 }
0x1b46   :  { %v8445_v31 = vpop.f32.mrf.mxu0 }
0x1b47   :  { %v9746_v51 = vadd.f32 %v8445_v31, %v4197_v32 }
0x1b48   :  { %v4264_v35 = vpop.f32.mrf.mxu0 }
0x1b49   :  { %v9742_v36 = vadd.f32 %v4264_v35, %v4197_v32 }
0x1b4b   :  { %4274 = vrot.lane.b32.xlu1 %v9742_v36, %s9102_s0 }
0x1b4e   :  { %v8879_v38 = vpop.eup %8878 }
0x1b4f   :  { %4351 = vrot.lane.b32.xlu1 %v9746_v51, %s9102_s0  ;;  %8433 = vmatmul.mubr.f32.vlgmr.msra.gmra.mxu1 %v8879_v38 }
0x1b50   :  { %8448 = vmatprep.mubr.msk.f32.mxu1 %vm9101_vm2, %v9100_v14 }
0x1bbd   :  { %v4275_v50 = vpop.permute.xlu1 %4274 }
0x1bbe   :  { %8447 = vmatpush3.xpose.msk.msra.mxu1 %vm832_vm3, %v4275_v50 }
0x1bbf   :  { %8451 = vmatprep.subr.mxu1 %v9100_v14 }
0x1bc1   :  { %8449 = vmatmul.mubr.msk.f32.vlgmr.msra.gmra.mxu1 %vm832_vm3, %v9742_v36  ;;  %v4352_v55 = vpop.permute.xlu1 %4351 }
0x1bc2   :  { %8452 = vmatpush3.xpose.msk.msra.mxu1 %vm832_vm3, %v4352_v55  ;;  %8453 = vmatprep.mubr.msk.f32.mxu1 %vm9101_vm2, %v9100_v14 }
0x1bc3   :  { %8461 = vmatprep.subr.mxu1 %v9100_v14 }
0x1bc5   :  { %8454 = vmatmul.mubr.msk.f32.vlgmr.msra.gmra.mxu1 %vm832_vm3, %v9746_v51 }
0x1bc6   :  { %8463 = vmatprep.mubr.msk.f32.mxu1 %vm9101_vm2, %v9100_v14 }
0x1c0f   :  { %v9764_v52 = vpop.f32.mrf.mxu1 }
0x1c11   :  { %v8434_v39 = vpop.f32.mrf.mxu1 }
0x1c81   :  { %v4346_v40 = vpop.f32.mrf.mxu1 }
0x1c82   :  { %v4427_v33 = vmul.f32 0.35355338, %v4346_v40 }
0x1c83   :  { %v8450_v41 = vpop.f32.mrf.mxu1 }
0x1c84   :  { %v4429_v42 = vadd.f32 %v4427_v33, %v9382_v28 }
0x1c85   :  { %v4423_v59 = vpop.f32.mrf.mxu1 }
0x1c86   :  { %v4428_v44 = vmul.f32 0.35355338, %v4423_v59  ;;  %v4431_v46 = vsel %vm832_vm3, %v4429_v42, -inf }
0x1c87   :  { %4432 = vmax.xlane.f32.xlu0 %v4431_v46  ;;  %v8455_v61 = vpop.f32.mrf.mxu1 }
0x1c88   :  { %v4430_v47 = vadd.f32 %v4428_v44, %v9386_v34 }
0x1c8a   :  { %v4434_v48 = vsel %vm832_vm3, %v4430_v47, -inf }
0x1c8b   :  { %4435 = vmax.xlane.f32.xlu1 %v4434_v48 }
0x1c9c   :  { %4453 = vrot.lane.b32.xlu1 %v9742_v36, %s9105_s1 }
0x1c9d   :  { %4529 = vrot.lane.b32.xlu0 %v9746_v51, %s9105_s1 }
0x1ca0   :  { %4607 = vrot.lane.b32.xlu1 %v9742_v36, %s9106_s10 }
0x1ca4   :  { %4685 = vrot.lane.b32.xlu1 %v9746_v51, %s9106_s10 }
0x1ca8   :  { %4683 = vrot.lane.b32.xlu1 %v9746_v51, %s9107_s11 }
0x1d10   :  { %v4433_v53 = vpop.xlane.xlu0 %4432 }
0x1d11   :  { %v4437_v12 = vsub.f32 %v4429_v42, %v4433_v53 }
0x1d13   :  { %v4439_v13 = vmul.f32 1.442695, %v4437_v12 }
0x1d14   :  { %v4530_v54 = vpop.permute.xlu0 %4529  ;;  %v4436_v19 = vpop.xlane.xlu1 %4435 }
0x1d15   :  { %8880 = vpow2.f32 %v4439_v13  ;;  %v4438_v8 = vsub.f32 %v4430_v47, %v4436_v19  ;;  %8462 = vmatpush3.msra.mxu1 %v4530_v54 }
0x1d16   :  { %8471 = vmatprep.subr.mxu1 %v9100_v14 }
0x1d17   :  { %v4441_v57 = vmul.f32 1.442695, %v4438_v8 }
0x1d18   :  { %v4454_v7 = vpop.permute.xlu1 %4453 }
0x1d19   :  { %8882 = vpow2.f32 %v4441_v57  ;;  %8457 = vmatpush3.msra.mxu0 %v4454_v7 }
0x1d1a   :  { %8466 = vmatprep.subr.mxu0 %v9100_v14 }
0x1d1c   :  { %v4608_v11 = vpop.permute.xlu1 %4607 }
0x1d20   :  { %v4686_v18 = vpop.permute.xlu1 %4685 }
0x1d22   :  { %v8881_v58 = vpop.eup %8880 }
0x1d23   :  { %v4443_v62 = vsel %vm832_vm3, %v8881_v58, 0.0 }
0x1d24   :  { %4444 = vadd.xlane.f32.xlu0 %v4443_v62  ;;  %v4684_v22 = vpop.permute.xlu1 %4683 }
0x1d26   :  { %v8883_v63 = vpop.eup %8882 }
0x1d27   :  { %v4446_v1 = vsel %vm832_vm3, %v8883_v63, 0.0 }
0x1d28   :  { %4447 = vadd.xlane.f32.xlu0 %v4446_v1 }
0x1d3e   :  { %4605 = vrot.lane.b32.xlu0 %v9742_v36, %s9107_s11 }
0x1dad   :  { %v4445_v43 = vpop.xlane.xlu0 %4444 }
0x1dae   :  { %8884 = vrcp.f32 %v4445_v43 }
0x1db1   :  { %v4448_v2 = vpop.xlane.xlu0 %4447 }
0x1db2   :  { %8886 = vrcp.f32 %v4448_v2 }
0x1db5   :  { %v4606_v21 = vpop.permute.xlu0 %4605 }
0x1dbb   :  { %v8885_v15 = vpop.eup %8884 }
0x1dbc   :  { %v4451_v17 = vmul.f32 %v8885_v15, %v8881_v58 }
0x1dbe   :  { %8459 = vmatmul.mubr.msk.f32.vlgmr.msra.gmra.mxu0 %vm832_vm3, %v4451_v17 }
0x1dbf   :  { %v8887_v56 = vpop.eup %8886  ;;  %8467 = vmatpush3.xpose.msk.msra.mxu0 %vm832_vm3, %v4608_v11  ;;  %8468 = vmatprep.mubr.msk.f32.mxu0 %vm9101_vm2, %v9100_v14 }
0x1dc0   :  { %v4452_v20 = vmul.f32 %v8887_v56, %v8883_v63  ;;  %8476 = vmatprep.subr.mxu0 %v9100_v14 }
0x1dc2   :  { %8464 = vmatmul.mubr.msk.f32.vlgmr.msra.gmra.mxu1 %vm832_vm3, %v4452_v20  ;;  %8469 = vmatmul.mubr.msk.f32.vlgmr.msra.gmra.mxu0 %vm832_vm3, %v4606_v21 }
0x1dc3   :  { %8472 = vmatpush3.xpose.msk.msra.mxu1 %vm832_vm3, %v4686_v18  ;;  %8473 = vmatprep.mubr.msk.f32.mxu1 %vm9101_vm2, %v9100_v14 }
0x1dc4   :  { %8481 = vmatprep.subr.mxu1 %v9100_v14  ;;  %8478 = vmatprep.mubr.msk.f32.mxu0 %vm9101_vm2, %v9100_v14 }
0x1dc6   :  { %8474 = vmatmul.mubr.msk.f32.vlgmr.msra.gmra.mxu1 %vm832_vm3, %v4684_v22 }
0x1dc7   :  { %8483 = vmatprep.mubr.msk.f32.mxu1 %vm9101_vm2, %v9100_v14 }
0x1e7e   :  { %v4525_v23 = vpop.f32.mrf.mxu0 }
0x1e80   :  { %v8460_v16 = vpop.f32.mrf.mxu0 }
0x1e82   :  { %v4601_v27 = vpop.f32.mrf.mxu1  ;;  %v4679_v24 = vpop.f32.mrf.mxu0 }
0x1e83   :  { %v4761_v30 = vmul.f32 0.35355338, %v4679_v24 }
0x1e84   :  { %v8465_v31 = vpop.f32.mrf.mxu1  ;;  %v8470_v32 = vpop.f32.mrf.mxu0 }
0x1e85   :  { %v4763_v35 = vadd.f32 %v4761_v30, %v9382_v28 }
0x1e86   :  { %v4757_v38 = vpop.f32.mrf.mxu1 }
0x1e87   :  { %v4762_v50 = vmul.f32 0.35355338, %v4757_v38  ;;  %v4765_v55 = vsel %vm832_vm3, %v4763_v35, -inf }
0x1e88   :  { %4766 = vmax.xlane.f32.xlu0 %v4765_v55  ;;  %v8475_v39 = vpop.f32.mrf.mxu1 }
0x1e89   :  { %v4764_v40 = vadd.f32 %v4762_v50, %v9386_v34 }
0x1e8b   :  { %v4768_v33 = vsel %vm832_vm3, %v4764_v40, -inf }
0x1e8c   :  { %4769 = vmax.xlane.f32.xlu1 %v4768_v33 }
0x1e9d   :  { %4787 = vrot.lane.b32.xlu1 %v9742_v36, %s9108_s13 }
0x1ea1   :  { %4940 = vrot.lane.b32.xlu1 %v9714_v4, %s9109_s14 }
0x1ea5   :  { %5025 = vrot.lane.b32.xlu1 %v9718_v6, %s9109_s14 }
0x1ea9   :  { %5189 = vrot.lane.b32.xlu1 %v9746_v51, %s9110_s15 }
0x1ead   :  { %5187 = vrot.lane.b32.xlu1 %v9746_v51, %s9111_s16 }
0x1f11   :  { %v4767_v41 = vpop.xlane.xlu0 %4766 }
0x1f12   :  { %v4771_v42 = vsub.f32 %v4763_v35, %v4767_v41 }
0x1f14   :  { %v4773_v59 = vmul.f32 1.442695, %v4771_v42 }
0x1f15   :  { %v4770_v44 = vpop.xlane.xlu1 %4769 }
0x1f16   :  { %8888 = vpow2.f32 %v4773_v59  ;;  %v4772_v46 = vsub.f32 %v4764_v40, %v4770_v44 }
0x1f18   :  { %v4775_v61 = vmul.f32 1.442695, %v4772_v46 }
0x1f19   :  { %v4788_v47 = vpop.permute.xlu1 %4787 }
0x1f1a   :  { %8890 = vpow2.f32 %v4775_v61  ;;  %8477 = vmatpush3.msra.mxu0 %v4788_v47 }
0x1f1d   :  { %v4941_v4 = vpop.permute.xlu1 %4940 }
0x1f1e   :  { %8486 = vmatprep.subr.mxu0 %v4941_v4 }
0x1f21   :  { %v5026_v8 = vpop.permute.xlu1 %5025 }
0x1f23   :  { %v8889_v48 = vpop.eup %8888 }
0x1f24   :  { %v4777_v6 = vsel %vm832_vm3, %v8889_v48, 0.0 }
0x1f25   :  { %4778 = vadd.xlane.f32.xlu0 %v4777_v6  ;;  %v5190_v63 = vpop.permute.xlu1 %5189 }
0x1f27   :  { %v8891_v53 = vpop.eup %8890 }
0x1f28   :  { %v4780_v12 = vsel %vm832_vm3, %v8891_v53, 0.0 }
0x1f29   :  { %4781 = vadd.xlane.f32.xlu0 %v4780_v12  ;;  %v5188_v1 = vpop.permute.xlu1 %5187 }
0x1f3f   :  { %4863 = vrot.lane.b32.xlu0 %v9746_v51, %s9108_s13 }
0x1f43   :  { %5111 = vrot.lane.b32.xlu0 %v9742_v36, %s9110_s15 }
0x1f47   :  { %5109 = vrot.lane.b32.xlu0 %v9742_v36, %s9111_s16 }
0x1fae   :  { %v4779_v13 = vpop.xlane.xlu0 %4778 }
0x1faf   :  { %8892 = vrcp.f32 %v4779_v13 }
0x1fb2   :  { %v4782_v54 = vpop.xlane.xlu0 %4781 }
0x1fb3   :  { %8894 = vrcp.f32 %v4782_v54 }
0x1fb6   :  { %v4864_v19 = vpop.permute.xlu0 %4863 }
0x1fb7   :  { %8482 = vmatpush3.msra.mxu1 %v4864_v19 }
0x1fb8   :  { %8491 = vmatprep.subr.mxu1 %v5026_v8 }
0x1fba   :  { %v5112_v2 = vpop.permute.xlu0 %5111 }
0x1fbc   :  { %v8893_v57 = vpop.eup %8892 }
0x1fbd   :  { %v4785_v7 = vmul.f32 %v8893_v57, %v8889_v48 }
0x1fbe   :  { %v5110_v56 = vpop.permute.xlu0 %5109 }
0x1fbf   :  { %8479 = vmatmul.mubr.msk.f32.vlgmr.msra.gmra.mxu0 %vm832_vm3, %v4785_v7 }
0x1fc0   :  { %v8895_v58 = vpop.eup %8894  ;;  %8487 = vmatpush3.msra.mxu0 %v4941_v4 }
0x1fc1   :  { %v4786_v62 = vmul.f32 %v8895_v58, %v8891_v53  ;;  %8496 = vmatprep.subr.mxu0 %v9100_v14 }
0x1fc3   :  { %8484 = vmatmul.mubr.msk.f32.vlgmr.msra.gmra.mxu1 %vm832_vm3, %v4786_v62 }
0x1fc4   :  { %8493 = vmatprep.mubr.msk.f32.mxu1 %vm832_vm3, %v4525_v23  ;;  %8492 = vmatpush3.msra.mxu1 %v5026_v8 }
0x1fc5   :  { %8501 = vmatprep.subr.mxu1 %v9100_v14 }
0x1fc7   :  { %8494 = vmatmul.mubr.msk.f32.vlgmr.msra.gmra.mxu1 %vm832_vm3, %v4601_v27 }
0x1fc8   :  { %8502 = vmatpush3.xpose.msk.msra.mxu1 %vm832_vm3, %v5190_v63  ;;  %8503 = vmatprep.mubr.msk.f32.mxu1 %vm9101_vm2, %v9100_v14 }
0x1fc9   :  { %8511 = vmatprep.subr.mxu1 %v9100_v14 }
0x1fcb   :  { %8504 = vmatmul.mubr.msk.f32.vlgmr.msra.gmra.mxu1 %vm832_vm3, %v5188_v1 }
0x1fcc   :  { %8513 = vmatprep.mubr.msk.f32.mxu1 %vm9101_vm2, %v9100_v14 }
0x207f   :  { %v4859_v43 = vpop.f32.mrf.mxu0 }
0x2080   :  { %8488 = vmatprep.mubr.msk.f32.mxu0 %vm832_vm3, %v4859_v43 }
0x2081   :  { %v8480_v11 = vpop.f32.mrf.mxu0 }
0x2083   :  { %v4935_v15 = vpop.f32.mrf.mxu1 }
0x2084   :  { %8489 = vmatmul.mubr.msk.f32.vlgmr.msra.gmra.mxu0 %vm832_vm3, %v4935_v15 }
0x2085   :  { %8497 = vmatpush3.xpose.msk.msra.mxu0 %vm832_vm3, %v5112_v2  ;;  %v8485_v17 = vpop.f32.mrf.mxu1  ;;  %8498 = vmatprep.mubr.msk.f32.mxu0 %vm9101_vm2, %v9100_v14 }
0x2086   :  { %8506 = vmatprep.subr.mxu0 %v9100_v14 }
0x2087   :  { %v9843_v18 = vpop.f32.mrf.mxu1 }
0x2088   :  { %8499 = vmatmul.mubr.msk.f32.vlgmr.msra.gmra.mxu0 %vm832_vm3, %v5110_v56 }
0x2089   :  { %v9846_v20 = vpop.f32.mrf.mxu1  ;;  %8508 = vmatprep.mubr.msk.f32.mxu0 %vm9101_vm2, %v9100_v14 }
0x208b   :  { %v5261_v21 = vpop.f32.mrf.mxu1 }
0x208c   :  { %v5266_v22 = vmul.f32 0.35355338, %v5261_v21 }
0x208d   :  { %v8505_v23 = vpop.f32.mrf.mxu1 }
0x208e   :  { %v5268_v16 = vadd.f32 %v5266_v22, %v9386_v34 }
0x2090   :  { %v5272_v27 = vsel %vm832_vm3, %v5268_v16, -inf }
0x2091   :  { %5273 = vmax.xlane.f32.xlu1 %v5272_v27 }
0x20a2   :  { %5291 = vrot.lane.b32.xlu1 %v9742_v36, %s9091_s12 }
0x20a6   :  { %5444 = vrot.lane.b32.xlu1 %v9709_v3, %s9109_s14 }
0x20aa   :  { %5532 = vrot.lane.b32.xlu1 %v9742_v36, %s9112_s3 }
0x20ae   :  { %5530 = vrot.lane.b32.xlu1 %v9742_v36, %s9113_s17 }
0x211a   :  { %v5274_v24 = vpop.xlane.xlu1 %5273 }
0x211b   :  { %v5276_v32 = vsub.f32 %v5268_v16, %v5274_v24 }
0x211d   :  { %v5279_v35 = vmul.f32 1.442695, %v5276_v32 }
0x211e   :  { %v5292_v30 = vpop.permute.xlu1 %5291 }
0x211f   :  { %8507 = vmatpush3.msra.mxu0 %v5292_v30  ;;  %8896 = vpow2.f32 %v5279_v35 }
0x2122   :  { %v5445_v31 = vpop.permute.xlu1 %5444 }
0x2123   :  { %8516 = vmatprep.subr.mxu0 %v5445_v31 }
0x2126   :  { %v5533_v53 = vpop.permute.xlu1 %5532 }
0x212a   :  { %v5531_v54 = vpop.permute.xlu1 %5530 }
0x212c   :  { %v8897_v41 = vpop.eup %8896 }
0x212d   :  { %v5284_v42 = vsel %vm832_vm3, %v8897_v41, 0.0 }
0x2144   :  { %v9860_v38 = vpop.f32.mrf.mxu0 }
0x2145   :  { %v5106_v23 = vadd.f32 %v9843_v18, %v9860_v38 }
0x2146   :  { %v9862_v50 = vpop.f32.mrf.mxu0 }
0x2147   :  { %v5101_v27 = vadd.f32 %v9846_v20, %v9862_v50 }
0x2148   :  { %v5183_v55 = vpop.f32.mrf.mxu0 }
0x2149   :  { %v5265_v3 = vmul.f32 0.35355338, %v5183_v55 }
0x214a   :  { %v8500_v39 = vpop.f32.mrf.mxu0 }
0x214b   :  { %v5267_v40 = vadd.f32 %v5265_v3, %v9382_v28 }
0x214d   :  { %v5269_v33 = vsel %vm832_vm3, %v5267_v40, -inf }
0x214e   :  { %5270 = vmax.xlane.f32.xlu0 %v5269_v33 }
0x2152   :  { %5285 = vadd.xlane.f32.xlu0 %v5284_v42 }
0x21d7   :  { %v5271_v59 = vpop.xlane.xlu0 %5270 }
0x21d8   :  { %v5275_v44 = vsub.f32 %v5267_v40, %v5271_v59 }
0x21da   :  { %v5277_v46 = vmul.f32 1.442695, %v5275_v44 }
0x21db   :  { %v5286_v4 = vpop.xlane.xlu0 %5285 }
0x21dc   :  { %8898 = vpow2.f32 %v5277_v46 }
0x21dd   :  { %8900 = vrcp.f32 %v5286_v4 }
0x21e9   :  { %v8899_v61 = vpop.eup %8898 }
0x21ea   :  { %v5281_v47 = vsel %vm832_vm3, %v8899_v61, 0.0  ;;  %v8901_v6 = vpop.eup %8900 }
0x21eb   :  { %5282 = vadd.xlane.f32.xlu0 %v5281_v47  ;;  %v5290_v13 = vmul.f32 %v8901_v6, %v8897_v41 }
0x2201   :  { %5367 = vrot.lane.b32.xlu0 %v9746_v51, %s9091_s12  ;;  %s9115_s12 = smov [#allocation11]  }
0x2202   :  { %s7504_s19 = sshll.u32 %s9115_s12, 4  ;;  %s7505_s19 = int_to_ptr.vmem [resolvable:$true] %s7504_s19 }
0x2203   :  { %s9058_s20 = scalar_lea.vmem %s7505_s19, 32  ;;  %p9063_p12 = scmp.lt.s32.totalorder %s7505_s19, %s7505_s19 }
0x2204   :  { %p9059_p11 = scmp.ne.s32.totalorder %s7505_s19, %s9058_s20  ;;  %p9064_p13 = scmp.lt.s32.totalorder %s9058_s20, %s9058_s20 }
0x2205   :  { %5610 = vrot.lane.b32.xlu0 %v9746_v51, %s9112_s3 }
0x2206   :  { %p9065_p0 = por %p9064_p13, %p9063_p12 }
0x2208   :  { %p9066_p1 = pnand %p9065_p0, %p9059_p11 }
0x2209   :  { %5608 = vrot.lane.b32.xlu0 %v9746_v51, %s9113_s17 }
0x2274   :  { %v5283_v48 = vpop.xlane.xlu0 %5282 }
0x2275   :  { %8902 = vrcp.f32 %v5283_v48 }
0x2278   :  { %v5368_v12 = vpop.permute.xlu0 %5367 }
0x2279   :  { %8512 = vmatpush3.msra.mxu1 %v5368_v12 }
0x227a   :  { %8514 = vmatmul.mubr.msk.f32.vlgmr.msra.gmra.mxu1 %vm832_vm3, %v5290_v13  ;;  %8521 = vmatprep.subr.mxu1 %v9100_v14 }
0x227b   :  { %8522 = vmatpush3.xpose.msk.msra.mxu1 %vm832_vm3, %v5533_v53  ;;  %8523 = vmatprep.mubr.msk.f32.mxu1 %vm9101_vm2, %v9100_v14 }
0x227c   :  { %8531 = vmatprep.subr.mxu1 %v9100_v14  ;;  %v5611_v2 = vpop.permute.xlu0 %5610 }
0x227e   :  { %8524 = vmatmul.mubr.msk.f32.vlgmr.msra.gmra.mxu1 %vm832_vm3, %v5531_v54 }
0x227f   :  { %8533 = vmatprep.mubr.msk.f32.mxu1 %vm9101_vm2, %v9100_v14 }
0x2280   :  { %v5609_v17 = vpop.permute.xlu0 %5608 }
0x2282   :  { %v8903_v19 = vpop.eup %8902 }
0x2283   :  { %v5289_v8 = vmul.f32 %v8903_v19, %v8899_v61 }
0x2285   :  { %8509 = vmatmul.mubr.msk.f32.vlgmr.msra.gmra.mxu0 %vm832_vm3, %v5289_v8 }
0x2286   :  { %8517 = vmatpush3.msra.mxu0 %v5445_v31 }
0x2287   :  { %8526 = vmatprep.subr.mxu0 %v9100_v14 }
0x233a   :  { %v5439_v57 = vpop.f32.mrf.mxu1 }
0x233c   :  { %v8515_v7 = vpop.f32.mrf.mxu1 }
0x233e   :  { %v5604_v58 = vpop.f32.mrf.mxu1 }
0x233f   :  { %v5686_v62 = vmul.f32 0.35355338, %v5604_v58 }
0x2340   :  { %v8525_v63 = vpop.f32.mrf.mxu1 }
0x2341   :  { %v5688_v1 = vadd.f32 %v5686_v62, %v9382_v28 }
0x2343   :  { %v5690_v43 = vsel %vm832_vm3, %v5688_v1, -inf }
0x2344   :  { %5691 = vmax.xlane.f32.xlu1 %v5690_v43 }
0x2345   :  { %v5363_v11 = vpop.f32.mrf.mxu0 }
0x2346   :  { %8518 = vmatprep.mubr.msk.f32.mxu0 %vm832_vm3, %v5363_v11 }
0x2347   :  { %v8510_v15 = vpop.f32.mrf.mxu0  ;;  %8519 = vmatmul.mubr.msk.f32.vlgmr.msra.gmra.mxu0 %vm832_vm3, %v5439_v57 }
0x2348   :  { %8527 = vmatpush3.xpose.msk.msra.mxu0 %vm832_vm3, %v5611_v2  ;;  %8528 = vmatprep.mubr.msk.f32.mxu0 %vm9101_vm2, %v9100_v14 }
0x2349   :  { %8536 = vmatprep.subr.mxu0 %v9100_v14 }
0x234b   :  { %8529 = vmatmul.mubr.msk.f32.vlgmr.msra.gmra.mxu0 %vm832_vm3, %v5609_v17 }
0x234c   :  { %8538 = vmatprep.mubr.msk.f32.mxu0 %vm9101_vm2, %v9100_v14 }
0x23cd   :  { %v5692_v56 = vpop.xlane.xlu1 %5691 }
0x23ce   :  { %v5696_v21 = vsub.f32 %v5688_v1, %v5692_v56 }
0x23d0   :  { %v5698_v22 = vmul.f32 1.442695, %v5696_v21 }
0x23d2   :  { %8904 = vpow2.f32 %v5698_v22 }
0x23df   :  { %v8905_v40 = vpop.eup %8904 }
0x23e0   :  { %v5702_v33 = vsel %vm832_vm3, %v8905_v40, 0.0 }
0x2407   :  { %v8520_v16 = vpop.f32.mrf.mxu0 }
0x2408   :  { %v5529_v24 = vadd.f32 %v8520_v16, %v5106_v23 }
0x2409   :  { %v5519_v30 = vpop.f32.mrf.mxu0 }
0x240a   :  { %v5528_v31 = vadd.f32 %v5519_v30, %v5101_v27  ;;  %v4087_v27 = vld [vmem:[#allocation5 + $0xb8] sm:$0xff]  ;;  %v4078_v30 = vld [vmem:[#allocation5 + $0x70] sm:$0xff] }
0x240b   :  { %v5682_v32 = vpop.f32.mrf.mxu0 }
0x240c   :  { %v5687_v35 = vmul.f32 0.35355338, %v5682_v32 }
0x240d   :  { %v8530_v55 = vpop.f32.mrf.mxu0 }
0x240e   :  { %v5689_v3 = vadd.f32 %v5687_v35, %v9386_v34 }
0x2410   :  { %v5693_v39 = vsel %vm832_vm3, %v5689_v3, -inf }
0x2411   :  { %5694 = vmax.xlane.f32.xlu0 %v5693_v39 }
0x2415   :  { %5703 = vadd.xlane.f32.xlu0 %v5702_v33 }
0x242b   :  { %5712 = vrot.lane.b32.xlu0 %v9742_v36, %s9114_s18 }
0x249a   :  { %v5695_v18 = vpop.xlane.xlu0 %5694 }
0x249b   :  { %v5697_v20 = vsub.f32 %v5689_v3, %v5695_v18 }
0x249d   :  { %v5700_v38 = vmul.f32 1.442695, %v5697_v20 }
0x249e   :  { %v5704_v50 = vpop.xlane.xlu0 %5703 }
0x249f   :  { %8906 = vpow2.f32 %v5700_v38 }
0x24a0   :  { %8908 = vrcp.f32 %v5704_v50 }
0x24a2   :  { %v5713_v41 = vpop.permute.xlu0 %5712 }
0x24a3   :  { %8532 = vmatpush3.msra.mxu1 %v5713_v41 }
0x24ac   :  { %v8907_v42 = vpop.eup %8906 }
0x24ad   :  { %v8909_v59 = vpop.eup %8908  ;;  %v5705_v44 = vsel %vm832_vm3, %v8907_v42, 0.0 }
0x24ae   :  { %5706 = vadd.xlane.f32.xlu1 %v5705_v44  ;;  %v5710_v46 = vmul.f32 %v8909_v59, %v8905_v40 }
0x24b0   :  { %8534 = vmatmul.mubr.msk.f32.vlgmr.msra.gmra.mxu1 %vm832_vm3, %v5710_v46  ;;  %v4095_v46 = vld [vmem:[#allocation7 + $0x70] sm:$0xff] }
0x24bf   :  { %5788 = vrot.lane.b32.xlu1 %v9746_v51, %s9114_s18 }
0x24c3   :  { %5865 = vrot.lane.b32.xlu1 %v9695_v45, %s9109_s14  ;;  %v9914_v45 = vld [vmem:[#allocation10 + $0x18] sm:$0xff] }
0x24c4   :  { %v5954_v13 = vrot.slane %v9914_v45, %v9536_v49  ;;  %v5988_v40 = vrot.slane %v9914_v45, %v9547_v5  ;;  %v5994_v20 = vrot.slane %v9914_v45, %v9550_v10  ;;  %v4096_v5 = vld [vmem:[#allocation7 + $0x78] sm:$0xff]  ;;  %v4094_v10 = vld [vmem:[#allocation7 + $0x68] sm:$0xff] }
0x2537   :  { %v5707_v36 = vpop.xlane.xlu1 %5706 }
0x2538   :  { %8910 = vrcp.f32 %v5707_v36  ;;  %v4093_v36 = vld [vmem:[#allocation7 + $0x60] sm:$0xff] }
0x253b   :  { %v5789_v61 = vpop.permute.xlu1 %5788 }
0x253c   :  { %8537 = vmatpush3.msra.mxu0 %v5789_v61  ;;  %v4092_v61 = vld [vmem:[#allocation7 + $0x58] sm:$0xff] }
0x253d   :  { %8546 = vmatprep.subr.mxu0 %v4087_v27 }
0x253f   :  { %v5866_v47 = vpop.permute.xlu1 %5865 }
0x2540   :  { %8541 = vmatprep.subr.mxu1 %v5866_v47 }
0x2541   :  { %8542 = vmatpush3.msra.mxu1 %v5866_v47  ;;  %v4091_v47 = vld [vmem:[#allocation7 + $0x50] sm:$0xff] }
0x2542   :  { %8557 = vmatprep.subr.mxu1 %v4096_v5 }
0x2545   :  { %v8911_v4 = vpop.eup %8910 }
0x2546   :  { %v5711_v48 = vmul.f32 %v8911_v4, %v8907_v42  ;;  %v4090_v4 = vld [vmem:[#allocation7 + $0x48] sm:$0xff] }
0x2548   :  { %8539 = vmatmul.mubr.msk.f32.vlgmr.msra.gmra.mxu0 %vm832_vm3, %v5711_v48  ;;  %v4089_v48 = vld [vmem:[#allocation7 + $0x40] sm:$0xff] }
0x2549   :  { %8547 = vmatpush3.msra.mxu0 %v4087_v27 }
0x2570   :  { %v5784_v6 = vpop.f32.mrf.mxu1 }
0x2571   :  { %8543 = vmatprep.mubr.msk.f32.mxu1 %vm832_vm3, %v5784_v6  ;;  %v6000_v6 = vrot.slane %v9914_v45, %v9565_v29 }
0x2572   :  { %v8535_v53 = vpop.f32.mrf.mxu1 }
0x2608   :  { %v5860_v12 = vpop.f32.mrf.mxu0 }
0x2609   :  { %8544 = vmatmul.mubr.msk.f32.vlgmr.msra.gmra.mxu1 %vm832_vm3, %v5860_v12 }
0x260a   :  { %v8540_v51 = vpop.f32.mrf.mxu0  ;;  %8558 = vmatpush3.msra.mxu1 %v4096_v5 }
0x260b   :  { %8559 = vmatprep.subr.mxu1 %v4095_v46 }
0x260c   :  { %8560 = vmatpush3.msra.mxu1 %v4095_v46 }
0x260d   :  { %8561 = vmatprep.subr.mxu1 %v4094_v10 }
0x260e   :  { %8562 = vmatpush3.msra.mxu1 %v4094_v10 }
0x260f   :  { %8563 = vmatprep.subr.mxu1 %v4093_v36 }
0x2610   :  { %8564 = vmatpush3.msra.mxu1 %v4093_v36 }
0x2611   :  { %8565 = vmatprep.subr.mxu1 %v4092_v61 }
0x2612   :  { %8566 = vmatpush3.msra.mxu1 %v4092_v61 }
0x2613   :  { %8567 = vmatprep.subr.mxu1 %v4091_v47 }
0x2614   :  { %8568 = vmatpush3.msra.mxu1 %v4091_v47 }
0x2615   :  { %8569 = vmatprep.subr.mxu1 %v4090_v4 }
0x2616   :  { %8570 = vmatpush3.msra.mxu1 %v4090_v4 }
0x2617   :  { %8571 = vmatprep.subr.mxu1 %v4089_v48 }
0x2618   :  { %8572 = vmatpush3.msra.mxu1 %v4089_v48 }
0x26c9   :  { %v8545_v54 = vpop.f32.mrf.mxu1 }
0x26ca   :  { %v5950_v19 = vadd.f32 %v8545_v54, %v5529_v24  ;;  %v4081_v24 = vld [vmem:[#allocation5 + $0x88] sm:$0xff] }
0x26cb   :  { %v5940_v8 = vpop.f32.mrf.mxu1 }
0x26cc   :  { %v5956_v57 = vadd.f32 %v5954_v13, %v5950_v19  ;;  %v5949_v7 = vadd.f32 %v5940_v8, %v5528_v31 }
0x26ce   :  { %v5955_v58 = vadd.f32 %v5954_v13, %v5949_v7  ;;  %v5958_v62 = vadd.f32 %v5956_v57, %v9590_v26 }
0x26d0   :  { %v5962_v63 = vsel %vm552_vm1, %v5958_v62, 0.0  ;;  %v5957_v1 = vadd.f32 %v5955_v58, %v9588_v25  ;;  %v4084_v25 = vld [vmem:[#allocation5 + $0xa0] sm:$0xff] }
0x26d1   :  { %5963 = vadd.xlane.f32.xlu1 %v5962_v63  ;;  %8548 = vmatprep.subr.mxu0 %v4084_v25 }
0x26d2   :  { %v5959_v43 = vsel %vm552_vm1, %v5957_v1, 0.0  ;;  %8549 = vmatpush3.msra.mxu0 %v4084_v25 }
0x26d3   :  { %5960 = vadd.xlane.f32.xlu0 %v5959_v43  ;;  %8550 = vmatprep.subr.mxu0 %v4081_v24 }
0x26d4   :  { %8551 = vmatpush3.msra.mxu0 %v4081_v24 }
0x26d5   :  { %8552 = vmatprep.subr.mxu0 %v4078_v30 }
0x26d6   :  { %8553 = vmatpush3.msra.mxu0 %v4078_v30 }
0x275a   :  { %v5964_v2 = vpop.xlane.xlu1 %5963 }
0x275b   :  { %v5966_v11 = vmul.f32 0.03125, %v5964_v2 }
0x275c   :  { %v5961_v15 = vpop.xlane.xlu0 %5960 }
0x275d   :  { %v5965_v17 = vmul.f32 0.03125, %v5961_v15  ;;  %v5968_v56 = vsub.f32 %v5958_v62, %v5966_v11 }
0x275f   :  { %v5967_v21 = vsub.f32 %v5957_v1, %v5965_v17  ;;  %v5970_v16 = vmul.f32 %v5968_v56, %v5968_v56 }
0x2761   :  { %v5969_v22 = vmul.f32 %v5967_v21, %v5967_v21  ;;  %v5974_v26 = vsel %vm552_vm1, %v5970_v16, 0.0 }
0x2763   :  { %v5971_v23 = vsel %vm552_vm1, %v5969_v22, 0.0 }
0x2764   :  { %5972 = vadd.xlane.f32.xlu0 %v5971_v23 }
0x2768   :  { %5975 = vadd.xlane.f32.xlu0 %v5974_v26 }
0x27ed   :  { %v5973_v31 = vpop.xlane.xlu0 %5972 }
0x27ee   :  { %v5977_v32 = vmul.f32 0.03125, %v5973_v31 }
0x27f0   :  { %v5979_v35 = vadd.f32 1e-06, %v5977_v32 }
0x27f1   :  { %v5976_v55 = vpop.xlane.xlu0 %5975 }
0x27f2   :  { %8912 = vrsqrt.f32 %v5979_v35  ;;  %v5978_v3 = vmul.f32 0.03125, %v5976_v55 }
0x27f4   :  { %v5980_v39 = vadd.f32 1e-06, %v5978_v3 }
0x27f6   :  { %8914 = vrsqrt.f32 %v5980_v39 }
0x27ff   :  { %v8913_v33 = vpop.eup %8912 }
0x2800   :  { %v5983_v18 = vmul.f32 %v8913_v33, %v5967_v21 }
0x2802   :  { %v5989_v38 = vmul.f32 %v5988_v40, %v5983_v18 }
0x2803   :  { %v8915_v50 = vpop.eup %8914 }
0x2804   :  { %v5984_v41 = vmul.f32 %v8915_v50, %v5968_v56  ;;  %v9928_v42 = vadd.f32 %v5994_v20, %v5989_v38 }
0x2806   :  { %v5990_v59 = vmul.f32 %v5988_v40, %v5984_v41  ;;  %8554 = vmatprep.mubr.msk.f32.mxu0 %vm552_vm1, %v9928_v42 }
0x2808   :  { %v9932_v44 = vadd.f32 %v5994_v20, %v5990_v59 }
0x280a   :  { %8555 = vmatmul.mubr.msk.f32.vlgmr.msra.gmra.mxu0 %vm552_vm1, %v9932_v44 }
0x28ca   :  { %v8556_v53 = vpop.f32.mrf.mxu0 }
0x28cb   :  { %v6079_v12 = vadd.f32 %v8556_v53, %v6000_v6 }
0x28cc   :  { %v6073_v51 = vpop.f32.mrf.mxu0 }
0x28cd   :  { %v6085_v13 = vmul.f32 0.70710677, %v6079_v12  ;;  %v6074_v54 = vadd.f32 %v6073_v51, %v6000_v6  ;;  %v6083_v53 = vmul.f32 0.5, %v6079_v12 }
0x28cf   :  { %v6087_v19 = vand.u32 2147483647, %v6085_v13  ;;  %v6084_v8 = vmul.f32 0.70710677, %v6074_v54  ;;  %vm6127_vm8 = vcmp.ge.f32.partialorder %v6085_v13, 0.0  ;;  %v6082_v48 = vmul.f32 0.5, %v6074_v54 }
0x28d1   :  { %v6089_v57 = vmul.f32 0.3275911, %v6087_v19  ;;  %v6086_v7 = vand.u32 2147483647, %v6084_v8  ;;  %v6115_v1 = vsub.f32 0.0, %v6087_v19  ;;  %vm6126_vm9 = vcmp.ge.f32.partialorder %v6084_v8, 0.0 }
0x28d3   :  { %v6091_v58 = vadd.f32 1.0, %v6089_v57  ;;  %v6088_v62 = vmul.f32 0.3275911, %v6086_v7  ;;  %v6114_v43 = vsub.f32 0.0, %v6086_v7  ;;  %v6117_v2 = vmul.f32 %v6115_v1, %v6087_v19 }
0x28d4   :  { %v6139_v57 = vrot.slane %v9914_v45, %v9572_v37 }
0x28d5   :  { %8916 = vrcp.f32 %v6091_v58  ;;  %v6090_v63 = vadd.f32 1.0, %v6088_v62  ;;  %v6116_v15 = vmul.f32 %v6114_v43, %v6086_v7  ;;  %v6120_v56 = vmul.f32 1.442695, %v6117_v2 }
0x28d7   :  { %8918 = vrcp.f32 %v6090_v63  ;;  %v6118_v16 = vmul.f32 1.442695, %v6116_v15 }
0x28d8   :  { %8920 = vpow2.f32 %v6120_v56 }
0x28d9   :  { %8922 = vpow2.f32 %v6118_v16  ;;  %v4077_v16 = vld [vmem:[#allocation5 + $0x68] sm:$0xff] }
0x28e2   :  { %v8917_v11 = vpop.eup %8916 }
0x28e3   :  { %v6097_v17 = vmul.f32 1.0614054, %v8917_v11 }
0x28e4   :  { %v8919_v21 = vpop.eup %8918 }
0x28e5   :  { %v6099_v22 = vadd.f32 -1.4531521, %v6097_v17  ;;  %v6096_v23 = vmul.f32 1.0614054, %v8919_v21  ;;  %v8921_v18 = vpop.eup %8920 }
0x28e6   :  { %v8923_v41 = vpop.eup %8922 }
0x28e7   :  { %v6101_v26 = vmul.f32 %v8917_v11, %v6099_v22  ;;  %v6098_v27 = vadd.f32 -1.4531521, %v6096_v23  ;;  %v4083_v22 = vld [vmem:[#allocation5 + $0x98] sm:$0xff]  ;;  %v4080_v23 = vld [vmem:[#allocation5 + $0x80] sm:$0xff] }
0x28e9   :  { %v6103_v25 = vadd.f32 1.4214138, %v6101_v26  ;;  %v6100_v24 = vmul.f32 %v8919_v21, %v6098_v27  ;;  %v4189_v26 = vld [vmem:[#allocation8 + $0x5d8] sm:$0xff]  ;;  %v4190_v27 = vld [vmem:[#allocation8 + $0x5e0] sm:$0xff] }
0x28ea   :  { %8587 = vmatprep.subr.mxu1 %v4190_v27 }
0x28eb   :  { %v6105_v30 = vmul.f32 %v8917_v11, %v6103_v25  ;;  %v6102_v31 = vadd.f32 1.4214138, %v6100_v24  ;;  %v4184_v25 = vld [vmem:[#allocation8 + $0x5b0] sm:$0xff]  ;;  %v4178_v24 = vld [vmem:[#allocation8 + $0x580] sm:$0xff] }
0x28ed   :  { %v6107_v32 = vadd.f32 -0.28449672, %v6105_v30  ;;  %v6104_v35 = vmul.f32 %v8919_v21, %v6102_v31  ;;  %v4172_v30 = vld [vmem:[#allocation8 + $0x550] sm:$0xff]  ;;  %v4166_v31 = vld [vmem:[#allocation8 + $0x520] sm:$0xff] }
0x28ef   :  { %v6109_v55 = vmul.f32 %v8917_v11, %v6107_v32  ;;  %v6106_v3 = vadd.f32 -0.28449672, %v6104_v35  ;;  %v4160_v32 = vld [vmem:[#allocation8 + $0x4f0] sm:$0xff] }
0x28f1   :  { %v6111_v39 = vadd.f32 0.2548296, %v6109_v55  ;;  %v6108_v40 = vmul.f32 %v8919_v21, %v6106_v3 }
0x28f3   :  { %v6113_v33 = vmul.f32 %v8917_v11, %v6111_v39  ;;  %v6110_v20 = vadd.f32 0.2548296, %v6108_v40 }
0x28f5   :  { %v6123_v38 = vmul.f32 %v8921_v18, %v6113_v33  ;;  %v6112_v50 = vmul.f32 %v8919_v21, %v6110_v20  ;;  %v9948_v20 = vld [vmem:[#allocation10 + $0x30] sm:$0xff] }
0x28f7   :  { %v6125_v59 = vsub.f32 1.0, %v6123_v38  ;;  %v6122_v5 = vmul.f32 %v8923_v41, %v6112_v50  ;;  %v6252_v38 = vrot.slane %v9948_v20, %v9329_v60 }
0x28f9   :  { %v6129_v46 = vsub.f32 0.0, %v6125_v59  ;;  %v6124_v10 = vsub.f32 1.0, %v6122_v5 }
0x28fb   :  { %v6131_v36 = vsel %vm6127_vm8, %v6125_v59, %v6129_v46  ;;  %v6128_v61 = vsub.f32 0.0, %v6124_v10  ;;  %v6258_v46 = vrot.slane %v9948_v20, %v9336_v0 }
0x28fc   :  { %v6133_v47 = vadd.f32 1.0, %v6131_v36 }
0x28fd   :  { %v6130_v4 = vsel %vm6126_vm9, %v6124_v10, %v6128_v61 }
0x28fe   :  { %v6132_v6 = vadd.f32 1.0, %v6130_v4  ;;  %v6135_v19 = vmul.f32 %v6133_v47, %v6083_v53  ;;  %v4188_v47 = vld [vmem:[#allocation8 + $0x5d0] sm:$0xff]  ;;  %v4183_v4 = vld [vmem:[#allocation8 + $0x5a8] sm:$0xff] }
0x28ff   :  { %v4176_v53 = vld [vmem:[#allocation8 + $0x570] sm:$0xff] }
0x2900   :  { %v6134_v51 = vmul.f32 %v6132_v6, %v6082_v48  ;;  %v4182_v48 = vld [vmem:[#allocation8 + $0x5a0] sm:$0xff]  ;;  %v4177_v6 = vld [vmem:[#allocation8 + $0x578] sm:$0xff] }
0x2902   :  { %8573 = vmatprep.mubr.msk.f32.mxu1 %vm2697_vm7, %v6134_v51  ;;  %v4171_v51 = vld [vmem:[#allocation8 + $0x548] sm:$0xff] }
0x2903   :  { %8574 = vmatmul.mubr.msk.f32.vlgmr.msra.gmra.mxu1 %vm2697_vm7, %v6135_v19  ;;  %v4170_v19 = vld [vmem:[#allocation8 + $0x540] sm:$0xff] }
0x2904   :  { %8588 = vmatpush3.msra.mxu1 %v4190_v27  ;;  %v4118_v27 = vld [vmem:[#allocation8 + $0x3a0] sm:$0xff] }
0x2905   :  { %8589 = vmatprep.subr.mxu1 %v4184_v25 }
0x2906   :  { %8590 = vmatpush3.msra.mxu1 %v4184_v25  ;;  %v4111_v25 = vld [vmem:[#allocation8 + $0x368] sm:$0xff] }
0x2907   :  { %8591 = vmatprep.subr.mxu1 %v4178_v24 }
0x2908   :  { %8592 = vmatpush3.msra.mxu1 %v4178_v24  ;;  %v4110_v24 = vld [vmem:[#allocation8 + $0x360] sm:$0xff] }
0x2909   :  { %8593 = vmatprep.subr.mxu1 %v4172_v30 }
0x290a   :  { %8594 = vmatpush3.msra.mxu1 %v4172_v30  ;;  %v4112_v30 = vld [vmem:[#allocation8 + $0x370] sm:$0xff] }
0x290b   :  { %8595 = vmatprep.subr.mxu1 %v4166_v31 }
0x290c   :  { %8596 = vmatpush3.msra.mxu1 %v4166_v31  ;;  %v4105_v31 = vld [vmem:[#allocation8 + $0x338] sm:$0xff] }
0x290d   :  { %8597 = vmatprep.subr.mxu1 %v4160_v32 }
0x290e   :  { %8598 = vmatpush3.msra.mxu1 %v4160_v32  ;;  %v4104_v32 = vld [vmem:[#allocation8 + $0x330] sm:$0xff] }
0x29c3   :  { %v8575_v7 = vpop.f32.mrf.mxu1 }
0x29c4   :  { %v6218_v13 = vadd.f32 %v8575_v7, %v6139_v57  ;;  %v4164_v7 = vld [vmem:[#allocation8 + $0x510] sm:$0xff] }
0x29c5   :  { %v6212_v58 = vpop.f32.mrf.mxu1 }
0x29c6   :  { %v6222_v62 = vadd.f32 %v6218_v13, %v9932_v44  ;;  %v6213_v8 = vadd.f32 %v6212_v58, %v6139_v57  ;;  %v4165_v57 = vld [vmem:[#allocation8 + $0x518] sm:$0xff]  ;;  %v4159_v13 = vld [vmem:[#allocation8 + $0x4e8] sm:$0xff]  ;;  %v4158_v58 = vld [vmem:[#allocation8 + $0x4e0] sm:$0xff] }
0x29c8   :  { %v6221_v63 = vadd.f32 %v6213_v8, %v9928_v42  ;;  %v6226_v54 = vsel %vm552_vm1, %v6222_v62, 0.0  ;;  %v4086_v42 = vld [vmem:[#allocation5 + $0xb0] sm:$0xff] }
0x29c9   :  { %6227 = vadd.xlane.f32.xlu0 %v6226_v54  ;;  %8576 = vmatprep.subr.mxu0 %v4086_v42  ;;  %v4152_v8 = vld [vmem:[#allocation8 + $0x4b0] sm:$0xff]  ;;  %v4147_v54 = vld [vmem:[#allocation8 + $0x488] sm:$0xff] }
0x29ca   :  { %v6223_v12 = vsel %vm552_vm1, %v6221_v63, 0.0  ;;  %8577 = vmatpush3.msra.mxu0 %v4086_v42  ;;  %v4123_v42 = vld [vmem:[#allocation8 + $0x3c8] sm:$0xff] }
0x29cb   :  { %6224 = vadd.xlane.f32.xlu1 %v6223_v12  ;;  %8578 = vmatprep.subr.mxu0 %v4083_v22  ;;  %v4146_v12 = vld [vmem:[#allocation8 + $0x480] sm:$0xff] }
0x29cc   :  { %8579 = vmatpush3.msra.mxu0 %v4083_v22  ;;  %v4122_v22 = vld [vmem:[#allocation8 + $0x3c0] sm:$0xff] }
0x29cd   :  { %8580 = vmatprep.subr.mxu0 %v4080_v23 }
0x29ce   :  { %8581 = vmatpush3.msra.mxu0 %v4080_v23  ;;  %v4124_v23 = vld [vmem:[#allocation8 + $0x3d0] sm:$0xff] }
0x29cf   :  { %8582 = vmatprep.subr.mxu0 %v4077_v16 }
0x29d0   :  { %8583 = vmatpush3.msra.mxu0 %v4077_v16  ;;  %v4117_v16 = vld [vmem:[#allocation8 + $0x398] sm:$0xff] }
0x29d1   :  { %6360 = vmatprep.subr.mxu0 %v4189_v26  ;;  %v4116_v26 = vld [vmem:[#allocation8 + $0x390] sm:$0xff] }
0x2a52   :  { %v6228_v1 = vpop.xlane.xlu0 %6227 }
0x2a53   :  { %v6230_v43 = vmul.f32 0.03125, %v6228_v1  ;;  %v4148_v1 = vld [vmem:[#allocation8 + $0x490] sm:$0xff] }
0x2a54   :  { %v6225_v2 = vpop.xlane.xlu1 %6224 }
0x2a55   :  { %v6232_v11 = vsub.f32 %v6222_v62, %v6230_v43  ;;  %v6229_v15 = vmul.f32 0.03125, %v6225_v2  ;;  %v4153_v62 = vld [vmem:[#allocation8 + $0x4b8] sm:$0xff]  ;;  %v4140_v2 = vld [vmem:[#allocation8 + $0x450] sm:$0xff] }
0x2a56   :  { %v4141_v43 = vld [vmem:[#allocation8 + $0x458] sm:$0xff] }
0x2a57   :  { %v6231_v45 = vsub.f32 %v6221_v63, %v6229_v15  ;;  %v6234_v17 = vmul.f32 %v6232_v11, %v6232_v11  ;;  %v4154_v63 = vld [vmem:[#allocation8 + $0x4c0] sm:$0xff]  ;;  %v4135_v15 = vld [vmem:[#allocation8 + $0x428] sm:$0xff] }
0x2a58   :  { %8599 = vmatprep.subr.mxu1 %v4154_v63 }
0x2a59   :  { %v6238_v56 = vsel %vm552_vm1, %v6234_v17, 0.0  ;;  %v6233_v21 = vmul.f32 %v6231_v45, %v6231_v45  ;;  %8600 = vmatpush3.msra.mxu1 %v4154_v63  ;;  %v4136_v17 = vld [vmem:[#allocation8 + $0x430] sm:$0xff] }
0x2a5a   :  { %6239 = vadd.xlane.f32.xlu0 %v6238_v56  ;;  %8601 = vmatprep.subr.mxu1 %v4148_v1  ;;  %v4129_v56 = vld [vmem:[#allocation8 + $0x3f8] sm:$0xff] }
0x2a5b   :  { %v6235_v44 = vsel %vm552_vm1, %v6233_v21, 0.0  ;;  %8602 = vmatpush3.msra.mxu1 %v4148_v1  ;;  %v4128_v21 = vld [vmem:[#allocation8 + $0x3f0] sm:$0xff] }
0x2a5c   :  { %6236 = vadd.xlane.f32.xlu1 %v6235_v44  ;;  %v4130_v44 = vld [vmem:[#allocation8 + $0x400] sm:$0xff] }
0x2ae3   :  { %v6240_v35 = vpop.xlane.xlu0 %6239 }
0x2ae4   :  { %v6242_v55 = vmul.f32 0.03125, %v6240_v35  ;;  %v4106_v35 = vld [vmem:[#allocation8 + $0x340] sm:$0xff] }
0x2ae5   :  { %v6237_v3 = vpop.xlane.xlu1 %6236 }
0x2ae6   :  { %v6244_v39 = vadd.f32 1e-06, %v6242_v55  ;;  %v6241_v40 = vmul.f32 0.03125, %v6237_v3  ;;  %v4099_v55 = vld [vmem:[#allocation8 + $0x308] sm:$0xff]  ;;  %v4098_v3 = vld [vmem:[#allocation8 + $0x300] sm:$0xff] }
0x2ae8   :  { %8924 = vrsqrt.f32 %v6244_v39  ;;  %v6243_v33 = vadd.f32 1e-06, %v6241_v40  ;;  %v4100_v39 = vld [vmem:[#allocation8 + $0x310] sm:$0xff]  ;;  %v6264_v40 = vrot.slane %v9948_v20, %v9572_v37 }
0x2ae9   :  { %v178_v37 = vld [vmem:[#allocation10 + $0x50] sm:$0xf] }
0x2aea   :  { %8926 = vrsqrt.f32 %v6243_v33 }
0x2af5   :  { %v8925_v18 = vpop.eup %8924 }
0x2af6   :  { %v6248_v50 = vmul.f32 %v8925_v18, %v6232_v11  ;;  %v4142_v11 = vld [vmem:[#allocation8 + $0x460] sm:$0xff] }
0x2af7   :  { %v8927_v41 = vpop.eup %8926  ;;  %8603 = vmatprep.subr.mxu1 %v4142_v11 }
0x2af8   :  { %v6247_v59 = vmul.f32 %v8927_v41, %v6231_v45  ;;  %v6254_v5 = vmul.f32 %v6252_v38, %v6248_v50  ;;  %v4134_v45 = vld [vmem:[#allocation8 + $0x420] sm:$0xff]  ;;  %8604 = vmatpush3.msra.mxu1 %v4142_v11 }
0x2af9   :  { %8605 = vmatprep.subr.mxu1 %v4136_v17 }
0x2afa   :  { %v6253_v10 = vmul.f32 %v6252_v38, %v6247_v59  ;;  %v6260_v61 = vadd.f32 %v6258_v46, %v6254_v5  ;;  %8606 = vmatpush3.msra.mxu1 %v4136_v17  ;;  %v9966_v5 = vld [vmem:[#allocation10 + $0x48] sm:$0xf] }
0x2afb   :  { %8607 = vmatprep.subr.mxu1 %v4130_v44 }
0x2afc   :  { %v6259_v36 = vadd.f32 %v6258_v46, %v6253_v10  ;;  %8608 = vmatpush3.msra.mxu1 %v4130_v44  ;;  %v6355_v46 = vrot.slane %v178_v37, %v9329_v60 }
0x2afd   :  { %8609 = vmatprep.subr.mxu1 %v4124_v23 }
0x2afe   :  { %8584 = vmatprep.mubr.msk.f32.mxu0 %vm552_vm1, %v6259_v36  ;;  %8610 = vmatpush3.msra.mxu1 %v4124_v23 }
0x2aff   :  { %8585 = vmatmul.mubr.msk.f32.vlgmr.msra.gmra.mxu0 %vm552_vm1, %v6260_v61  ;;  %8611 = vmatprep.subr.mxu1 %v4118_v27  ;;  %v6351_v61 = vrot.slane %v9966_v5, %v9329_v60 }
0x2b00   :  { %6361 = vmatpush1.msra.mxu0 %v4188_v47  ;;  %6424 = vmatprep.mubr.f32.mxu0 %v9100_v14  ;;  %v179_v47 = vld [vmem:[#allocation10 + $0x58] sm:$0xf] }
0x2b01   :  { %6362 = vmatprep.subr.mxu0 %v4183_v4  ;;  %8612 = vmatpush3.msra.mxu1 %v4118_v27 }
0x2b02   :  { %6363 = vmatpush1.msra.mxu0 %v4182_v48  ;;  %8613 = vmatprep.subr.mxu1 %v4112_v30 }
0x2b03   :  { %6364 = vmatprep.subr.mxu0 %v4177_v6  ;;  %8614 = vmatpush3.msra.mxu1 %v4112_v30 }
0x2b04   :  { %6365 = vmatpush1.msra.mxu0 %v4176_v53  ;;  %8615 = vmatprep.subr.mxu1 %v4106_v35 }
0x2b05   :  { %6366 = vmatprep.subr.mxu0 %v4171_v51  ;;  %8616 = vmatpush3.msra.mxu1 %v4106_v35  ;;  %v6359_v51 = vrot.slane %v179_v47, %v9329_v60 }
0x2b06   :  { %6367 = vmatpush1.msra.mxu0 %v4170_v19  ;;  %8617 = vmatprep.subr.mxu1 %v4100_v39 }
0x2b07   :  { %6368 = vmatprep.subr.mxu0 %v4165_v57  ;;  %8618 = vmatpush3.msra.mxu1 %v4100_v39 }
0x2b08   :  { %6369 = vmatpush1.msra.mxu0 %v4164_v7  ;;  %8622 = vmatprep.subr.mxu1 %v9100_v14 }
0x2b09   :  { %6370 = vmatprep.subr.mxu0 %v4159_v13 }
0x2b0a   :  { %6371 = vmatpush1.msra.mxu0 %v4158_v58 }
0x2b0b   :  { %6372 = vmatprep.subr.mxu0 %v4153_v62 }
0x2b0c   :  { %6373 = vmatpush1.msra.mxu0 %v4152_v8 }
0x2b0d   :  { %6374 = vmatprep.subr.mxu0 %v4147_v54 }
0x2b0e   :  { %6375 = vmatpush1.msra.mxu0 %v4146_v12 }
0x2b0f   :  { %6376 = vmatprep.subr.mxu0 %v4141_v43 }
0x2b10   :  { %6377 = vmatpush1.msra.mxu0 %v4140_v2 }
0x2b11   :  { %6378 = vmatprep.subr.mxu0 %v4135_v15 }
0x2b12   :  { %6379 = vmatpush1.msra.mxu0 %v4134_v45 }
0x2b13   :  { %6380 = vmatprep.subr.mxu0 %v4129_v56 }
0x2b14   :  { %6381 = vmatpush1.msra.mxu0 %v4128_v21 }
0x2b15   :  { %6382 = vmatprep.subr.mxu0 %v4123_v42 }
0x2b16   :  { %6383 = vmatpush1.msra.mxu0 %v4122_v22 }
0x2b17   :  { %6384 = vmatprep.subr.mxu0 %v4117_v16 }
0x2b18   :  { %6385 = vmatpush1.msra.mxu0 %v4116_v26 }
0x2b19   :  { %6386 = vmatprep.subr.mxu0 %v4111_v25 }
0x2b1a   :  { %6387 = vmatpush1.msra.mxu0 %v4110_v24 }
0x2b1b   :  { %6388 = vmatprep.subr.mxu0 %v4105_v31 }
0x2b1c   :  { %6389 = vmatpush1.msra.mxu0 %v4104_v32 }
0x2b1d   :  { %6390 = vmatprep.subr.mxu0 %v4099_v55 }
0x2b1e   :  { %6391 = vmatpush1.msra.mxu0 %v4098_v3 }
0x2b1f   :  { %8627 = vmatprep.subr.mxu0 %v9100_v14 }
0x2bbf   :  { %v8586_v33 = vpop.f32.mrf.mxu0 }
0x2bc0   :  { %v6343_v18 = vadd.f32 %v8586_v33, %v6264_v40 }
0x2bc1   :  { %v6337_v38 = vpop.f32.mrf.mxu0 }
0x2bc2   :  { %v6338_v50 = vadd.f32 %v6337_v38, %v6264_v40 }
0x2bc4   :  { %8928 = vtanh.f32 %v6338_v50 }
0x2bc5   :  { %8930 = vtanh.f32 %v6343_v18 }
0x2bd1   :  { %v8929_v41 = vpop.eup %8928 }
0x2bd2   :  { %v8931_v59 = vpop.eup %8930  ;;  %6425 = vmatmul.mubr.f32.vlgmr.msra.gmra.mxu0 %v8929_v41  ;;  %8619 = vmatprep.mubr.f32.mxu1 %v8929_v41 }
0x2bd3   :  { %8620 = vmatmul.mubr.f32.vlgmr.msra.gmra.mxu1 %v8931_v59  ;;  %6430 = vmatprep.mubr.f32.mxu0 %v9100_v14 }
0x2bd4   :  { %8624 = vmatprep.mubr.msk.f32.mxu1 %vm9101_vm2, %v9100_v14 }
0x2bd6   :  { %6431 = vmatmul.mubr.f32.gmra.mxu0 %v8931_v59 }
0x2bd7   :  { %8629 = vmatprep.mubr.msk.f32.mxu0 %vm9101_vm2, %v9100_v14 }
0x2c92   :  { %v6426_v10 = vpop.f32.mrf.mxu0 }
0x2c93   :  { %v8621_v36 = vpop.f32.mrf.mxu1  ;;  %v6427_v19 = vadd.f32 %v6426_v10, %v6351_v61 }
0x2c94   :  { %v6428_v4 = vpop.f32.mrf.mxu0  ;;  %v9982_v60 = vadd.f32 %v8621_v36, %v6359_v51 }
0x2c95   :  { %v6429_v48 = vadd.f32 %v6428_v4, %v6355_v46  ;;  %v6503_v6 = vpop.f32.mrf.mxu1 }
0x2c96   :  { %v6432_v53 = vpop.f32.mrf.mxu0  ;;  %v9974_v7 = vadd.f32 %v6503_v6, %v6359_v51 }
0x2c97   :  { %8623 = vmatpush3.xpose.msk.msra.mxu1 %vm2697_vm7, %v6429_v48  ;;  %v6433_v58 = vadd.f32 %v6432_v53, %v6351_v61 }
0x2c98   :  { %v6434_v57 = vpop.f32.mrf.mxu0  ;;  %8632 = vmatprep.subr.mxu1 %v9100_v14 }
0x2c99   :  { %v6435_v13 = vadd.f32 %v6434_v57, %v6355_v46 }
0x2c9a   :  { %8625 = vmatmul.mubr.msk.f32.vlgmr.msra.gmra.mxu1 %vm2697_vm7, %v6427_v19 }
0x2c9b   :  { %8628 = vmatpush3.xpose.msk.msra.mxu0 %vm2697_vm7, %v6435_v13  ;;  %8633 = vmatpush3.msra.mxu1 %v9974_v7 }
0x2c9c   :  { %8637 = vmatprep.subr.mxu0 %v9100_v14  ;;  %8634 = vmatprep.mubr.msk.f32.mxu1 %vm9101_vm2, %v9100_v14 }
0x2c9d   :  { %8642 = vmatprep.subr.mxu1 %v9100_v14 }
0x2c9e   :  { %8630 = vmatmul.mubr.msk.f32.vlgmr.msra.gmra.mxu0 %vm2697_vm7, %v6433_v58 }
0x2c9f   :  { %8638 = vmatpush3.msra.mxu0 %v9982_v60  ;;  %8639 = vmatprep.mubr.msk.f32.mxu0 %vm9101_vm2, %v9100_v14 }
0x2ca0   :  { %8647 = vmatprep.subr.mxu0 %v9100_v14 }
0x2d5a   :  { %v6584_v62 = vpop.f32.mrf.mxu1 }
0x2d5b   :  { %v6664_v8 = vmul.f32 0.125, %v6584_v62 }
0x2d5c   :  { %v8626_v63 = vpop.f32.mrf.mxu1 }
0x2d5d   :  { %v6666_v54 = vadd.f32 %v6664_v8, %v9382_v28 }
0x2d5e   :  { %v6660_v12 = vpop.f32.mrf.mxu0 }
0x2d5f   :  { %v6665_v1 = vmul.f32 0.125, %v6660_v12  ;;  %v6668_v43 = vsel %vm832_vm3, %v6666_v54, -inf }
0x2d60   :  { %v8631_v2 = vpop.f32.mrf.mxu0  ;;  %6669 = vmax.xlane.f32.xlu1 %v6668_v43 }
0x2d61   :  { %v6667_v11 = vadd.f32 %v6665_v1, %v9386_v34  ;;  %v4191_v1 = vld [vmem:[#allocation8 + $0x5e8] sm:$0xff] }
0x2d63   :  { %v6671_v15 = vsel %vm832_vm3, %v6667_v11, -inf }
0x2d64   :  { %6672 = vmax.xlane.f32.xlu0 %v6671_v15 }
0x2d71   :  { %6838 = vrot.lane.b32.xlu1 %v6429_v48, %s9105_s1  ;;  %v3982_v48 = vrot.slane %v9948_v20, %v9565_v29 }
0x2d73   :  { %v10029_v6 = vadd.f32 %v9764_v52, %v3982_v48  ;;  %v4162_v48 = vld [vmem:[#allocation8 + $0x500] sm:$0xff] }
0x2de9   :  { %v6670_v45 = vpop.xlane.xlu1 %6669 }
0x2dea   :  { %v6674_v17 = vsub.f32 %v6666_v54, %v6670_v45 }
0x2dec   :  { %v6676_v56 = vmul.f32 1.442695, %v6674_v17  ;;  %v4185_v17 = vld [vmem:[#allocation8 + $0x5b8] sm:$0xff] }
0x2ded   :  { %v6673_v21 = vpop.xlane.xlu0 %6672  ;;  %v6839_v27 = vpop.permute.xlu1 %6838 }
0x2dee   :  { %8932 = vpow2.f32 %v6676_v56  ;;  %v6675_v44 = vsub.f32 %v6667_v11, %v6673_v21  ;;  %v4143_v11 = vld [vmem:[#allocation8 + $0x468] sm:$0xff] }
0x2def   :  { %v4179_v21 = vld [vmem:[#allocation8 + $0x588] sm:$0xff] }
0x2df0   :  { %v6678_v42 = vmul.f32 1.442695, %v6675_v44 }
0x2df2   :  { %8934 = vpow2.f32 %v6678_v42  ;;  %v4137_v42 = vld [vmem:[#allocation8 + $0x438] sm:$0xff] }
0x2dfb   :  { %v8933_v22 = vpop.eup %8932 }
0x2dfc   :  { %v6680_v23 = vsel %vm832_vm3, %v8933_v22, 0.0 }
0x2dfd   :  { %6681 = vadd.xlane.f32.xlu1 %v6680_v23  ;;  %v4131_v23 = vld [vmem:[#allocation8 + $0x408] sm:$0xff] }
0x2dff   :  { %v8935_v16 = vpop.eup %8934 }
0x2e00   :  { %v6683_v26 = vsel %vm832_vm3, %v8935_v16, 0.0 }
0x2e01   :  { %6684 = vadd.xlane.f32.xlu0 %v6683_v26  ;;  %v4125_v26 = vld [vmem:[#allocation8 + $0x3d8] sm:$0xff] }
0x2e0e   :  { %6836 = vrot.lane.b32.xlu1 %v6427_v19, %s9105_s1 }
0x2e12   :  { %6914 = vrot.lane.b32.xlu1 %v6433_v58, %s9105_s1 }
0x2e17   :  { %6916 = vrot.lane.b32.xlu0 %v6435_v13, %s9105_s1 }
0x2e86   :  { %v6682_v25 = vpop.xlane.xlu1 %6681 }
0x2e87   :  { %8936 = vrcp.f32 %v6682_v25  ;;  %v4119_v25 = vld [vmem:[#allocation8 + $0x3a8] sm:$0xff] }
0x2e8a   :  { %v6685_v24 = vpop.xlane.xlu0 %6684  ;;  %v6837_v35 = vpop.permute.xlu1 %6836 }
0x2e8b   :  { %8938 = vrcp.f32 %v6685_v24  ;;  %v4113_v24 = vld [vmem:[#allocation8 + $0x378] sm:$0xff] }
0x2e8e   :  { %v6917_v3 = vpop.permute.xlu0 %6916  ;;  %v6915_v39 = vpop.permute.xlu1 %6914 }
0x2e94   :  { %v8937_v30 = vpop.eup %8936 }
0x2e95   :  { %v6688_v31 = vmul.f32 %v8937_v30, %v8933_v22  ;;  %v4173_v22 = vld [vmem:[#allocation8 + $0x558] sm:$0xff]  ;;  %v4107_v30 = vld [vmem:[#allocation8 + $0x348] sm:$0xff] }
0x2e97   :  { %8635 = vmatmul.mubr.msk.f32.vlgmr.msra.gmra.mxu1 %vm832_vm3, %v6688_v31  ;;  %v4101_v31 = vld [vmem:[#allocation8 + $0x318] sm:$0xff] }
0x2e98   :  { %v8939_v32 = vpop.eup %8938  ;;  %8643 = vmatpush3.xpose.msk.msra.mxu1 %vm2697_vm7, %v6839_v27  ;;  %8644 = vmatprep.mubr.msk.f32.mxu1 %vm9101_vm2, %v9100_v14  ;;  %v4161_v27 = vld [vmem:[#allocation8 + $0x4f8] sm:$0xff] }
0x2e99   :  { %v6689_v55 = vmul.f32 %v8939_v32, %v8935_v16  ;;  %8652 = vmatprep.subr.mxu1 %v9100_v14  ;;  %v4167_v16 = vld [vmem:[#allocation8 + $0x528] sm:$0xff] }
0x2e9b   :  { %8640 = vmatmul.mubr.msk.f32.vlgmr.msra.gmra.mxu0 %vm832_vm3, %v6689_v55  ;;  %8645 = vmatmul.mubr.msk.f32.vlgmr.msra.gmra.mxu1 %vm2697_vm7, %v6837_v35 }
0x2e9c   :  { %8648 = vmatpush3.xpose.msk.msra.mxu0 %vm2697_vm7, %v6917_v3  ;;  %8649 = vmatprep.mubr.msk.f32.mxu0 %vm9101_vm2, %v9100_v14 }
0x2e9d   :  { %8657 = vmatprep.subr.mxu0 %v9100_v14  ;;  %8654 = vmatprep.mubr.msk.f32.mxu1 %vm9101_vm2, %v9100_v14 }
0x2e9f   :  { %8650 = vmatmul.mubr.msk.f32.vlgmr.msra.gmra.mxu0 %vm2697_vm7, %v6915_v39 }
0x2ea0   :  { %8659 = vmatprep.mubr.msk.f32.mxu0 %vm9101_vm2, %v9100_v14 }
0x2f57   :  { %v10016_v40 = vpop.f32.mrf.mxu1 }
0x2f59   :  { %v8636_v33 = vpop.f32.mrf.mxu1 }
0x2f5a   :  { %v4149_v33 = vld [vmem:[#allocation8 + $0x498] sm:$0xff] }
0x2f5b   :  { %v10018_v18 = vpop.f32.mrf.mxu0  ;;  %v6910_v38 = vpop.f32.mrf.mxu1 }
0x2f5c   :  { %v6992_v50 = vmul.f32 0.125, %v6910_v38 }
0x2f5d   :  { %v8641_v41 = vpop.f32.mrf.mxu0  ;;  %v8646_v59 = vpop.f32.mrf.mxu1 }
0x2f5e   :  { %v6994_v37 = vadd.f32 %v6992_v50, %v9382_v28  ;;  %v4054_v28 = vsel %vm4053_vm10, %v10029_v6, -inf }
0x2f5f   :  { %v6988_v46 = vpop.f32.mrf.mxu0 }
0x2f60   :  { %v6993_v10 = vmul.f32 0.125, %v6988_v46  ;;  %v6996_v36 = vsel %vm832_vm3, %v6994_v37, -inf }
0x2f61   :  { %v8651_v61 = vpop.f32.mrf.mxu0  ;;  %6997 = vmax.xlane.f32.xlu0 %v6996_v36 }
0x2f62   :  { %v6995_v47 = vadd.f32 %v6993_v10, %v9386_v34  ;;  %v4186_v10 = vld [vmem:[#allocation8 + $0x5c0] sm:$0xff]  ;;  %v4180_v61 = vld [vmem:[#allocation8 + $0x590] sm:$0xff] }
0x2f64   :  { %v6999_v4 = vsel %vm832_vm3, %v6995_v47, -inf }
0x2f65   :  { %7000 = vmax.xlane.f32.xlu1 %v6999_v4  ;;  %v4168_v4 = vld [vmem:[#allocation8 + $0x530] sm:$0xff] }
0x2f76   :  { %7019 = vrot.lane.b32.xlu1 %v9974_v7, %s9105_s1 }
0x2f9a   :  { %4055 = vmax.xlane.f32.xlu1 %v4054_v28  ;;  %v4156_v28 = vld [vmem:[#allocation8 + $0x4d0] sm:$0xff] }
0x2fea   :  { %v6998_v53 = vpop.xlane.xlu0 %6997 }
0x2feb   :  { %v7002_v51 = vsub.f32 %v6994_v37, %v6998_v53  ;;  %v4192_v37 = vld [vmem:[#allocation8 + $0x5f0] sm:$0xff]  ;;  %v4150_v53 = vld [vmem:[#allocation8 + $0x4a0] sm:$0xff] }
0x2fed   :  { %v7004_v34 = vmul.f32 1.442695, %v7002_v51  ;;  %v4144_v51 = vld [vmem:[#allocation8 + $0x470] sm:$0xff] }
0x2fee   :  { %v7001_v19 = vpop.xlane.xlu1 %7000 }
0x2fef   :  { %8940 = vpow2.f32 %v7004_v34  ;;  %v7003_v57 = vsub.f32 %v6995_v47, %v7001_v19  ;;  %v4174_v47 = vld [vmem:[#allocation8 + $0x560] sm:$0xff]  ;;  %v4132_v19 = vld [vmem:[#allocation8 + $0x410] sm:$0xff] }
0x2ff0   :  { %v4138_v34 = vld [vmem:[#allocation8 + $0x440] sm:$0xff] }
0x2ff1   :  { %v7006_v13 = vmul.f32 1.442695, %v7003_v57  ;;  %v4126_v57 = vld [vmem:[#allocation8 + $0x3e0] sm:$0xff] }
0x2ff2   :  { %v7020_v58 = vpop.permute.xlu1 %7019 }
0x2ff3   :  { %8942 = vpow2.f32 %v7006_v13  ;;  %8653 = vmatpush3.msra.mxu1 %v7020_v58  ;;  %v4120_v13 = vld [vmem:[#allocation8 + $0x3b0] sm:$0xff]  ;;  %v4114_v58 = vld [vmem:[#allocation8 + $0x380] sm:$0xff] }
0x2ff4   :  { %8662 = vmatprep.subr.mxu1 %v4191_v1 }
0x2ffc   :  { %v8941_v7 = vpop.eup %8940 }
0x2ffd   :  { %v7008_v29 = vsel %vm832_vm3, %v8941_v7, 0.0 }
0x2ffe   :  { %7009 = vadd.xlane.f32.xlu0 %v7008_v29  ;;  %v4102_v29 = vld [vmem:[#allocation8 + $0x320] sm:$0xff] }
0x3000   :  { %v8943_v52 = vpop.eup %8942 }
0x3001   :  { %v7011_v20 = vsel %vm832_vm3, %v8943_v52, 0.0 }
0x3002   :  { %7012 = vadd.xlane.f32.xlu0 %v7011_v20  ;;  %v4187_v20 = vld [vmem:[#allocation8 + $0x5c8] sm:$0xff] }
0x3018   :  { %7096 = vrot.lane.b32.xlu0 %v9982_v60, %s9105_s1 }
0x3023   :  { %v4056_v62 = vpop.xlane.xlu1 %4055 }
0x3024   :  { %v10038_v8 = vsub.f32 %v10029_v6, %v4056_v62  ;;  %v4181_v62 = vld [vmem:[#allocation8 + $0x598] sm:$0xff] }
0x3026   :  { %v4058_v63 = vmul.f32 1.442695, %v10038_v8 }
0x3028   :  { %8944 = vpow2.f32 %v4058_v63  ;;  %v4169_v63 = vld [vmem:[#allocation8 + $0x538] sm:$0xff] }
0x3035   :  { %v8945_v54 = vpop.eup %8944 }
0x3036   :  { %v4060_v12 = vsel %vm4053_vm10, %v8945_v54, 0.0  ;;  %v4163_v54 = vld [vmem:[#allocation8 + $0x508] sm:$0xff] }
0x3037   :  { %4061 = vadd.xlane.f32.xlu0 %v4060_v12  ;;  %v4157_v12 = vld [vmem:[#allocation8 + $0x4d8] sm:$0xff] }
0x3087   :  { %v7010_v43 = vpop.xlane.xlu0 %7009 }
0x3088   :  { %8946 = vrcp.f32 %v7010_v43  ;;  %v7337_v43 = vrot.slane %v9966_v5, %v9336_v0  ;;  %v4133_v0 = vld [vmem:[#allocation8 + $0x418] sm:$0xff] }
0x308b   :  { %v7013_v2 = vpop.xlane.xlu0 %7012 }
0x308c   :  { %8948 = vrcp.f32 %v7013_v2 }
0x308f   :  { %v7097_v15 = vpop.permute.xlu0 %7096 }
0x3090   :  { %8658 = vmatpush3.msra.mxu0 %v7097_v15 }
0x3091   :  { %8681 = vmatprep.subr.mxu0 %v4143_v11 }
0x3095   :  { %v8947_v60 = vpop.eup %8946 }
0x3096   :  { %v7016_v45 = vmul.f32 %v8947_v60, %v8941_v7  ;;  %v4108_v7 = vld [vmem:[#allocation8 + $0x350] sm:$0xff] }
0x3098   :  { %8655 = vmatmul.mubr.msk.f32.vlgmr.msra.gmra.mxu1 %vm832_vm3, %v7016_v45 }
0x3099   :  { %v8949_v56 = vpop.eup %8948  ;;  %8663 = vmatpush3.msra.mxu1 %v4191_v1 }
0x309a   :  { %v7017_v44 = vmul.f32 %v8949_v56, %v8943_v52  ;;  %8664 = vmatprep.subr.mxu1 %v4185_v17  ;;  %v4193_v52 = vld [vmem:[#allocation8 + $0x5f8] sm:$0xff] }
0x309b   :  { %8665 = vmatpush3.msra.mxu1 %v4185_v17 }
0x309c   :  { %8660 = vmatmul.mubr.msk.f32.vlgmr.msra.gmra.mxu0 %vm832_vm3, %v7017_v44  ;;  %8666 = vmatprep.subr.mxu1 %v4179_v21 }
0x309d   :  { %8682 = vmatpush3.msra.mxu0 %v4143_v11  ;;  %8697 = vmatprep.mubr.msk.f32.mxu0 %vm2697_vm7, %v10016_v40  ;;  %v4155_v40 = vld [vmem:[#allocation8 + $0x4c8] sm:$0xff] }
0x309e   :  { %8683 = vmatprep.subr.mxu0 %v4137_v42  ;;  %8667 = vmatpush3.msra.mxu1 %v4179_v21 }
0x309f   :  { %8684 = vmatpush3.msra.mxu0 %v4137_v42  ;;  %8668 = vmatprep.subr.mxu1 %v4173_v22  ;;  %v4151_v42 = vld [vmem:[#allocation8 + $0x4a8] sm:$0xff] }
0x30a0   :  { %8685 = vmatprep.subr.mxu0 %v4131_v23  ;;  %8669 = vmatpush3.msra.mxu1 %v4173_v22  ;;  %v4145_v22 = vld [vmem:[#allocation8 + $0x478] sm:$0xff] }
0x30a1   :  { %8686 = vmatpush3.msra.mxu0 %v4131_v23  ;;  %8670 = vmatprep.subr.mxu1 %v4167_v16  ;;  %v4139_v23 = vld [vmem:[#allocation8 + $0x448] sm:$0xff] }
0x30a2   :  { %8687 = vmatprep.subr.mxu0 %v4125_v26  ;;  %8671 = vmatpush3.msra.mxu1 %v4167_v16  ;;  %v4127_v16 = vld [vmem:[#allocation8 + $0x3e8] sm:$0xff] }
0x30a3   :  { %8688 = vmatpush3.msra.mxu0 %v4125_v26  ;;  %8672 = vmatprep.subr.mxu1 %v4161_v27  ;;  %v4121_v26 = vld [vmem:[#allocation8 + $0x3b8] sm:$0xff] }
0x30a4   :  { %8689 = vmatprep.subr.mxu0 %v4119_v25  ;;  %8673 = vmatpush3.msra.mxu1 %v4161_v27  ;;  %v4115_v27 = vld [vmem:[#allocation8 + $0x388] sm:$0xff] }
0x30a5   :  { %8690 = vmatpush3.msra.mxu0 %v4119_v25  ;;  %8674 = vmatprep.subr.mxu1 %v4155_v40  ;;  %v4109_v25 = vld [vmem:[#allocation8 + $0x358] sm:$0xff] }
0x30a6   :  { %8691 = vmatprep.subr.mxu0 %v4113_v24  ;;  %8675 = vmatpush3.msra.mxu1 %v4155_v40  ;;  %v7423_v40 = vrot.slane %v9966_v5, %v9536_v49 }
0x30a7   :  { %8692 = vmatpush3.msra.mxu0 %v4113_v24  ;;  %8676 = vmatprep.subr.mxu1 %v4149_v33  ;;  %v4103_v24 = vld [vmem:[#allocation8 + $0x328] sm:$0xff] }
0x30a8   :  { %8693 = vmatprep.subr.mxu0 %v4107_v30  ;;  %8677 = vmatpush3.msra.mxu1 %v4149_v33 }
0x30a9   :  { %8694 = vmatpush3.msra.mxu0 %v4107_v30  ;;  %8700 = vmatprep.subr.mxu1 %v9100_v14  ;;  %v7343_v30 = vrot.slane %v9966_v5, %v9349_v9 }
0x30aa   :  { %8695 = vmatprep.subr.mxu0 %v4101_v31 }
0x30ab   :  { %8696 = vmatpush3.msra.mxu0 %v4101_v31 }
0x30ac   :  { %8698 = vmatmul.mubr.msk.f32.vlgmr.msra.gmra.mxu0 %vm2697_vm7, %v10018_v18  ;;  %8735 = vmatprep.subr.mxu0 %v9100_v14 }
0x30ad   :  { %8767 = vmatprep.mubr.msk.f32.mxu0 %vm9101_vm2, %v9100_v14  ;;  %8736 = vmatpush3.msra.mxu0 %v4193_v52 }
0x30ae   :  { %8737 = vmatprep.subr.mxu0 %v9100_v14 }
0x30af   :  { %8738 = vmatpush3.msra.mxu0 %v4187_v20 }
0x30b0   :  { %8739 = vmatprep.subr.mxu0 %v9100_v14 }
0x30b1   :  { %8740 = vmatpush3.msra.mxu0 %v4181_v62 }
0x30b2   :  { %8741 = vmatprep.subr.mxu0 %v9100_v14 }
0x30c0   :  { %v4062_v32 = vpop.xlane.xlu0 %4061 }
0x30c1   :  { %8950 = vlog2.f32 %v4062_v32 }
0x30ce   :  { %v8951_v35 = vpop.eup %8950 }
0x30cf   :  { %v4064_v55 = vmul.f32 0.6931472, %v8951_v35 }
0x30d1   :  { %v4065_v3 = vsub.f32 %v10038_v8, %v4064_v55  ;;  %v4175_v8 = vld [vmem:[#allocation8 + $0x568] sm:$0xff] }
0x30d2   :  { %8742 = vmatpush3.msra.mxu0 %v4175_v8 }
0x30d3   :  { %v4066_v39 = vmul.f32 1.442695, %v4065_v3  ;;  %8743 = vmatprep.subr.mxu0 %v9100_v14 }
0x30d4   :  { %8744 = vmatpush3.msra.mxu0 %v4169_v63 }
0x30d5   :  { %8952 = vpow2.f32 %v4066_v39  ;;  %8745 = vmatprep.subr.mxu0 %v9100_v14 }
0x30d6   :  { %8746 = vmatpush3.msra.mxu0 %v4163_v54 }
0x30d7   :  { %8747 = vmatprep.subr.mxu0 %v9100_v14 }
0x30d8   :  { %8748 = vmatpush3.msra.mxu0 %v4157_v12 }
0x30d9   :  { %8749 = vmatprep.subr.mxu0 %v9100_v14 }
0x30da   :  { %8750 = vmatpush3.msra.mxu0 %v4151_v42 }
0x30db   :  { %8751 = vmatprep.subr.mxu0 %v9100_v14 }
0x30dc   :  { %8752 = vmatpush3.msra.mxu0 %v4145_v22 }
0x30dd   :  { %8753 = vmatprep.subr.mxu0 %v9100_v14 }
0x30de   :  { %8754 = vmatpush3.msra.mxu0 %v4139_v23 }
0x30df   :  { %8755 = vmatprep.subr.mxu0 %v9100_v14 }
0x30e0   :  { %8756 = vmatpush3.msra.mxu0 %v4133_v0 }
0x30e1   :  { %8757 = vmatprep.subr.mxu0 %v9100_v14 }
0x30e2   :  { %v8953_v18 = vpop.eup %8952  ;;  %8758 = vmatpush3.msra.mxu0 %v4127_v16 }
0x30e3   :  { %v4068_v38 = vmul.f32 %v8953_v18, %v4065_v3  ;;  %8759 = vmatprep.subr.mxu0 %v9100_v14 }
0x30e4   :  { %8760 = vmatpush3.msra.mxu0 %v4121_v26 }
0x30e5   :  { %v4069_v50 = vsel %vm4053_vm10, %v4068_v38, 0.0  ;;  %8761 = vmatprep.subr.mxu0 %v9100_v14 }
0x30e6   :  { %4070 = vadd.xlane.f32.xlu1 %v4069_v50  ;;  %8762 = vmatpush3.msra.mxu0 %v4115_v27 }
0x30e7   :  { %8763 = vmatprep.subr.mxu0 %v9100_v14 }
0x30e8   :  { %8764 = vmatpush3.msra.mxu0 %v4109_v25 }
0x30e9   :  { %8765 = vmatprep.subr.mxu0 %v9100_v14 }
0x30ea   :  { %8766 = vmatpush3.msra.mxu0 %v4103_v24 }
0x3158   :  { %v7091_v41 = vpop.f32.mrf.mxu1 }
0x3159   :  { %8678 = vmatprep.mubr.msk.f32.mxu1 %vm2697_vm7, %v7091_v41 }
0x315a   :  { %v8656_v59 = vpop.f32.mrf.mxu1 }
0x315c   :  { %v7168_v46 = vpop.f32.mrf.mxu0 }
0x315d   :  { %8679 = vmatmul.mubr.msk.f32.vlgmr.msra.gmra.mxu1 %vm2697_vm7, %v7168_v46 }
0x315e   :  { %v8661_v36 = vpop.f32.mrf.mxu0  ;;  %8701 = vmatpush3.msra.mxu1 %v4192_v37  ;;  %8732 = vmatprep.mubr.msk.f32.mxu1 %vm9101_vm2, %v9100_v14 }
0x315f   :  { %8702 = vmatprep.subr.mxu1 %v9100_v14 }
0x3160   :  { %8703 = vmatpush3.msra.mxu1 %v4186_v10 }
0x3161   :  { %8704 = vmatprep.subr.mxu1 %v9100_v14 }
0x3162   :  { %8705 = vmatpush3.msra.mxu1 %v4180_v61 }
0x3163   :  { %8706 = vmatprep.subr.mxu1 %v9100_v14 }
0x3164   :  { %8707 = vmatpush3.msra.mxu1 %v4174_v47 }
0x3165   :  { %8708 = vmatprep.subr.mxu1 %v9100_v14 }
0x3166   :  { %8709 = vmatpush3.msra.mxu1 %v4168_v4 }
0x3167   :  { %8710 = vmatprep.subr.mxu1 %v9100_v14 }
0x3168   :  { %8711 = vmatpush3.msra.mxu1 %v4162_v48 }
0x3169   :  { %8712 = vmatprep.subr.mxu1 %v9100_v14 }
0x316a   :  { %8713 = vmatpush3.msra.mxu1 %v4156_v28 }
0x316b   :  { %8714 = vmatprep.subr.mxu1 %v9100_v14 }
0x316c   :  { %8715 = vmatpush3.msra.mxu1 %v4150_v53  ;;  %v8699_v1 = vpop.f32.mrf.mxu0 }
0x316d   :  { %8716 = vmatprep.subr.mxu1 %v9100_v14 }
0x316e   :  { %8717 = vmatpush3.msra.mxu1 %v4144_v51  ;;  %v7325_v15 = vpop.f32.mrf.mxu0 }
0x316f   :  { %8718 = vmatprep.subr.mxu1 %v9100_v14  ;;  %v4071_v3 = vpop.xlane.xlu1 %4070 }
0x3170   :  { %8719 = vmatpush3.msra.mxu1 %v4138_v34  ;;  %v4072_v39 = vsub.f32 0.0, %v4071_v3 }
0x3171   :  { %8720 = vmatprep.subr.mxu1 %v9100_v14 }
0x3172   :  { %8721 = vmatpush3.msra.mxu1 %v4132_v19  ;;  %v4073_v33 = vmul.f32 0.9102392, %v4072_v39 }
0x3173   :  { %8722 = vmatprep.subr.mxu1 %v9100_v14 }
0x3174   :  { %8723 = vmatpush3.msra.mxu1 %v4126_v57  ;;  %vm4074_vm11 = vcmp.le.f32.partialorder %v4073_v33, 0.5 }
0x3175   :  { %8724 = vmatprep.subr.mxu1 %v9100_v14 }
0x3176   :  { %8725 = vmatpush3.msra.mxu1 %v4120_v13 }
0x3177   :  { %8726 = vmatprep.subr.mxu1 %v9100_v14 }
0x3178   :  { %8727 = vmatpush3.msra.mxu1 %v4114_v58 }
0x3179   :  { %8728 = vmatprep.subr.mxu1 %v9100_v14 }
0x317a   :  { %8729 = vmatpush3.msra.mxu1 %v4108_v7 }
0x317b   :  { %8730 = vmatprep.subr.mxu1 %v9100_v14 }
0x317c   :  { %8731 = vmatpush3.msra.mxu1 %v4102_v29 }
0x321d   :  { %v8680_v2 = vpop.f32.mrf.mxu1 }
0x321e   :  { %v7331_v11 = vadd.f32 %v8699_v1, %v8680_v2 }
0x321f   :  { %v7244_v60 = vpop.f32.mrf.mxu1 }
0x3220   :  { %v7339_v45 = vadd.f32 %v7337_v43, %v7331_v11  ;;  %v7326_v17 = vadd.f32 %v7325_v15, %v7244_v60 }
0x3222   :  { %v7346_v56 = vrot.slane %v7339_v45, 7  ;;  %v7338_v21 = vadd.f32 %v7337_v43, %v7326_v17 }
0x3224   :  { %v7347_v44 = vsel %vm3905_vm0, %v7346_v56, %v7338_v21 }
0x3225   :  { %8733 = vmatmul.mubr.f32.vlgmr.msra.gmra.mxu1 %v7347_v44 }
0x32e5   :  { %v7415_v31 = vpop.f32.mrf.mxu1 }
0x32e6   :  { %v7416_v32 = vadd.f32 %v7415_v31, %v7343_v30 }
0x32e7   :  { %v8734_v35 = vpop.f32.mrf.mxu1 }
0x32e8   :  { %8954 = vtanh.f32 %v7416_v32 }
0x32f5   :  { %v8955_v55 = vpop.eup %8954 }
0x32f6   :  { %8768 = vmatmul.mubr.f32.vlgmr.msra.gmra.mxu0 %v8955_v55 }
0x33b6   :  { %v7490_v18 = vpop.f32.mrf.mxu0 }
0x33b7   :  { %v7491_v14 = vadd.f32 %v7490_v18, %v7423_v40 }
0x33b8   :  { %v8769_v38 = vpop.f32.mrf.mxu0 }
0x33b9   :  { %v7496_v9 = vsel %vm4074_vm11, %v10029_v6, %v7491_v14 }
0x33ba   :  { %7497 = vst [vmem:[#allocation11] sm:$0x3] %v7496_v9 }
0x33bb   :  { %9069 = shalt.err (!%p9066_p1)
}
0x33bc   :  { %7507 = dma.vmem_to_hbm [thread:$0]  %s7505_s19, 32, %s10106_s7, [#allocation4]  }
0x33bd   :  { %9084 = dma.done.wait [#allocation4], 32  }
0x33be   :  { %9085 = vsyncadd [#allocation4], 4294967264 }
0x33bf   :  { %7511 = vsyncpa [#allocation3], 1 }
0x33c0   :  { %7512 = vsyncpa [#allocation6], 1 }
0x33c1   :  { %7513 = vsyncpa [#allocation9], 1 }
0x33c2   :  { %7514 = vsyncpa [#allocation4], 1 }

</bundles_post_ra>
